<compile_context>
chip_gen: v7x
topology: tpu7x:2x2x1
jax: 0.10.0
libtpu: 0.0.40
codegen_flags: <defaults>
</compile_context>

<pallas_src>
import math

import jax
import jax.numpy as jnp
from jax.experimental import pallas as pl
from jax.experimental.pallas import tpu as pltpu

EPS = 1e-6
NEG_INF = -3.0e38   # plain Python float (never a jax array -> no captured consts)


def _make_decode_kernel(B, K, M, E, V):
    """Full T-step decode for one batch element per (b, t) grid point."""
    scale = 1.0 / math.sqrt(E)
    N = K * M
    pow2 = (M & (M - 1)) == 0
    m_shift = M.bit_length() - 1

    def kernel(
        # per-batch initial state
        z0_ref,        # (1, K, E)
        aar0_ref,      # (1, K, 1)
        # hoisted / packed parameters
        q_l_t_ref,     # (E, M)   : (mover_w @ Wq_l.T + bq_l).T  (step/batch invariant)
        wk_l_t_ref,    # (E, E)
        bk_l_ref,      # (1, E)
        wd_pack_ref,   # (E, M*E) : all M disp heads packed, lane-dense
        bd_pack_ref,   # (1, M*E)
        gamma_ref,     # (1, E)
        beta_ref,      # (1, E)
        wq_r_t_ref,    # (E, E)
        bq_r_ref,      # (1, E)
        k_r_t_ref,     # (1, E, M): key-projected anchor_value, transposed (invariant)
        v_r_ref,       # (1, M, E): value-projected anchor_value (invariant)
        wvoc_t_ref,    # (E, V)
        bvoc_ref,      # (1, V)
        # outputs
        z_out_ref,     # (1, K, E)    VMEM-resident state accumulator
        aar_out_ref,   # (1, K, 1)    VMEM-resident state accumulator
        emm_out_ref,   # (1, 1, K, E) per-step anchor-reader output
        idx_out_ref,   # (1, 1, K, 1) per-step top-k flat indices (k*M + m)
        y_out_ref,     # (1, 1, V)    log-probs, written on the last step only
    ):
        t = pl.program_id(1)
        t_last = pl.num_programs(1) - 1

        # ---- carry init: state lives in the output blocks across the T axis ----
        @pl.when(t == 0)
        def _():
            z_out_ref[...] = z0_ref[...]
            aar_out_ref[...] = aar0_ref[...]

        z = z_out_ref[0]        # (K, E)
        aar = aar_out_ref[0]    # (K, 1)

        # ---- decoder_anchor_attention_log(achs, z, achs): log-softmax attention ----
        k_l = jnp.dot(z, wk_l_t_ref[...],
                      preferred_element_type=jnp.float32) + bk_l_ref[...]        # (K, E)
        scoresT = jnp.dot(k_l, q_l_t_ref[...],
                          preferred_element_type=jnp.float32) * scale            # (K, M)
        # log-softmax over the key axis (the beam axis K == rows here)
        smax = jnp.max(scoresT, axis=0, keepdims=True)
        ss = scoresT - smax
        log_attT = ss - jnp.log(jnp.sum(jnp.exp(ss), axis=0, keepdims=True))     # (K, M)

        # anchor_value_cross = transpose(log_att) + previous beam scores
        cross = log_attT + aar                                                   # (K, M)

        # ---- iterative top-K over K*M candidates; flat index = k*M + m ----
        k_iota = jax.lax.broadcasted_iota(jnp.int32, (K, M), 0)
        m_iota = jax.lax.broadcasted_iota(jnp.int32, (K, M), 1)
        flat_iota = k_iota * M + m_iota

        work = cross
        vals, idxs = [], []
        for _ in range(K):
            cur_max = jnp.max(jnp.max(work, axis=1, keepdims=True),
                              axis=0, keepdims=True)                             # (1, 1)
            cand = jnp.where(work >= cur_max, flat_iota, N)
            cur_idx = jnp.min(jnp.min(cand, axis=1, keepdims=True),
                              axis=0, keepdims=True)                             # (1, 1)
            vals.append(cur_max)
            idxs.append(cur_idx)
            work = jnp.where(flat_iota == cur_idx, NEG_INF, work)

        val = jnp.concatenate(vals, axis=0)      # (K, 1) descending
        idx = jnp.concatenate(idxs, axis=0)      # (K, 1) int32, flat = k*M + m

        # arithmetic decode of (k, m) from the flat index
        if pow2:
            sel_k = jnp.right_shift(idx, m_shift)
            sel_m = jnp.bitwise_and(idx, M - 1)
        else:
            sel_k = idx // M
            sel_m = idx - sel_k * M

        # ---- gather: znew[j,:] = disp_{sel_m[j]}( z[sel_k[j], :] ) ----
        onehot_k = (sel_k == jax.lax.broadcasted_iota(jnp.int32, (K, K), 1)
                    ).astype(jnp.float32)                                        # (K, K)
        zsel = jnp.dot(onehot_k, z, preferred_element_type=jnp.float32)          # (K, E)

        # all M displacement heads in one lane-dense (K, M*E) matmul
        ym_all = jnp.dot(zsel, wd_pack_ref[...],
                         preferred_element_type=jnp.float32) + bd_pack_ref[...]  # (K, M*E)
        onehot_m = (sel_m == jax.lax.broadcasted_iota(jnp.int32, (K, M), 1)
                    ).astype(jnp.float32)                                        # (K, M)
        znew = onehot_m[:, 0:1] * ym_all[:, 0:E]
        for m in range(1, M):
            znew = znew + onehot_m[:, m:m + 1] * ym_all[:, m * E:(m + 1) * E]    # (K, E)

        # ---- LayerNorm (norm2): a2*(x-mean)/(std_unbiased+eps)+b2 ----
        mean = jnp.mean(znew, axis=1, keepdims=True)
        diff = znew - mean
        var = jnp.sum(diff * diff, axis=1, keepdims=True) * (1.0 / (E - 1))
        inv = pl.reciprocal(jnp.sqrt(var) + EPS, approx=True)
        z_norm = gamma_ref[...] * diff * inv + beta_ref[...]                     # (K, E)

        # ---- decoder_anchor_reader(z, anchor_value, anchor_value) ----
        q_r = jnp.dot(z_norm, wq_r_t_ref[...],
                      preferred_element_type=jnp.float32) + bq_r_ref[...]        # (K, E)
        sc = jnp.dot(q_r, k_r_t_ref[0],
                     preferred_element_type=jnp.float32) * scale                 # (K, M)
        sc_max = jnp.max(sc, axis=1, keepdims=True)
        p = jnp.exp(sc - sc_max)
        att = p * pl.reciprocal(jnp.sum(p, axis=1, keepdims=True), approx=True)
        emm = jnp.dot(att, v_r_ref[0], preferred_element_type=jnp.float32)       # (K, E)

        # ---- write state + per-step outputs ----
        z_out_ref[0] = z_norm
        aar_out_ref[0] = val - jnp.max(val, axis=0, keepdims=True)
        emm_out_ref[0, 0] = emm
        idx_out_ref[0, 0] = idx

        # ---- vocab head on beam 0 (only the last step's y is ever used) ----
        @pl.when(t == t_last)
        def _():
            logits = jnp.dot(z_norm[0:1, :], wvoc_t_ref[...],
                             preferred_element_type=jnp.float32) + bvoc_ref[...]  # (1, V)
            lmax = jnp.max(logits, axis=1, keepdims=True)
            lse = jnp.log(jnp.sum(jnp.exp(logits - lmax), axis=1, keepdims=True))
            y_out_ref[0] = logits - lmax - lse

    return kernel


def make_decode_fn(B, K, M, E, V, T):
    kernel = _make_decode_kernel(B, K, M, E, V)
    ME = M * E

    in_specs = [
        pl.BlockSpec((1, K, E), lambda b, t: (b, 0, 0)),     # z0
        pl.BlockSpec((1, K, 1), lambda b, t: (b, 0, 0)),     # aar0
        pl.BlockSpec((E, M), lambda b, t: (0, 0)),           # q_l_t
        pl.BlockSpec((E, E), lambda b, t: (0, 0)),           # wk_l_t
        pl.BlockSpec((1, E), lambda b, t: (0, 0)),           # bk_l
        pl.BlockSpec((E, ME), lambda b, t: (0, 0)),          # wd_pack
        pl.BlockSpec((1, ME), lambda b, t: (0, 0)),          # bd_pack
        pl.BlockSpec((1, E), lambda b, t: (0, 0)),           # gamma
        pl.BlockSpec((1, E), lambda b, t: (0, 0)),           # beta
        pl.BlockSpec((E, E), lambda b, t: (0, 0)),           # wq_r_t
        pl.BlockSpec((1, E), lambda b, t: (0, 0)),           # bq_r
        pl.BlockSpec((1, E, M), lambda b, t: (b, 0, 0)),     # k_r_t
        pl.BlockSpec((1, M, E), lambda b, t: (b, 0, 0)),     # v_r
        pl.BlockSpec((E, V), lambda b, t: (0, 0)),           # wvoc_t
        pl.BlockSpec((1, V), lambda b, t: (0, 0)),           # bvoc
    ]
    out_specs = (
        pl.BlockSpec((1, K, E), lambda b, t: (b, 0, 0)),        # z (post-norm, final)
        pl.BlockSpec((1, K, 1), lambda b, t: (b, 0, 0)),        # anchor_att_ret (final)
        pl.BlockSpec((1, 1, K, E), lambda b, t: (b, t, 0, 0)),  # emm per step
        pl.BlockSpec((1, 1, K, 1), lambda b, t: (b, t, 0, 0)),  # topk idx per step
        pl.BlockSpec((1, 1, V), lambda b, t: (b, 0, 0)),        # y (last step)
    )
    out_shape = (
        jax.ShapeDtypeStruct((B, K, E), jnp.float32),
        jax.ShapeDtypeStruct((B, K, 1), jnp.float32),
        jax.ShapeDtypeStruct((B, T, K, E), jnp.float32),
        jax.ShapeDtypeStruct((B, T, K, 1), jnp.int32),
        jax.ShapeDtypeStruct((B, 1, V), jnp.float32),
    )
    return pl.pallas_call(
        kernel,
        grid=(B, T),
        in_specs=in_specs,
        out_specs=out_specs,
        out_shape=out_shape,
        compiler_params=pltpu.CompilerParams(
            dimension_semantics=("parallel", "arbitrary")),
    )


def init_params(key, E, M, V_out):
    """Deterministic synthetic parameters (PyTorch nn.Linear-style init, (out,in))."""
    def linear(k, out_dim, in_dim):
        k1, k2 = jax.random.split(k)
        bound = 1.0 / math.sqrt(in_dim)
        w = jax.random.uniform(k1, (out_dim, in_dim), jnp.float32, -bound, bound)
        b = jax.random.uniform(k2, (1, out_dim), jnp.float32, -bound, bound)
        return w, b

    keys = jax.random.split(key, 9)
    mover_w, _ = linear(keys[0], M, E)            # decoder_mover.weight, (M, E)
    wq_l, bq_l = linear(keys[1], E, E)            # decoder_anchor_attention_log.query
    wk_l, bk_l = linear(keys[2], E, E)            # decoder_anchor_attention_log.key
    wd_list, bd_list = [], []
    for i in range(M):                            # decoder_anchor_disp_list
        w, b = linear(jax.random.fold_in(keys[3], i), E, E)
        wd_list.append(w)
        bd_list.append(b[0])
    wd = jnp.stack(wd_list)                       # (M, E, E) each (out, in)
    bd = jnp.stack(bd_list)                       # (M, E)
    gamma = jnp.ones((1, E), jnp.float32)         # norm2.a_2
    beta = jnp.zeros((1, E), jnp.float32)         # norm2.b_2
    wq_r, bq_r = linear(keys[4], E, E)            # decoder_anchor_reader.query
    wk_r, bk_r = linear(keys[5], E, E)            # decoder_anchor_reader.key
    wv_r, bv_r = linear(keys[6], E, E)            # decoder_anchor_reader.value
    wvoc, bvoc = linear(keys[7], V_out, E)        # vocab head
    return dict(
        mover_w=mover_w,
        wq_l=wq_l, bq_l=bq_l, wk_l=wk_l, bk_l=bk_l,
        wd=wd, bd=bd,
        gamma=gamma, beta=beta,
        wq_r=wq_r, bq_r=bq_r, wk_r=wk_r, bk_r=bk_r, wv_r=wv_r, bv_r=bv_r,
        wvoc=wvoc, bvoc=bvoc,
    )


def beam_anchor_mixture_rnn_forward(hidden_state, output_sequence, params):
    """Mirrors BeamAnchorMixtureRNN.forward: runs T decode steps, returns the
    *input* hidden components plus the last step's vocab log-probs."""
    z0, anchor_value, aar0, bpointer, zs0 = hidden_state
    B, K, E = z0.shape
    M = anchor_value.shape[1]
    V = params['wvoc'].shape[0]
    T = output_sequence.shape[1]

    if T == 0:
        # forward()'s pre-loop y = self.vocab(z)[:, 0:1, :]
        logits0 = jnp.einsum('bke,ve->bkv', z0[:, 0:1, :], params['wvoc']) + params['bvoc']
        y = jax.nn.log_softmax(logits0, axis=-1)
        return (z0, anchor_value, aar0, bpointer, zs0), y

    # ---- hoist all step-invariant projections out of the kernel ----
    q_l = params['mover_w'] @ params['wq_l'].T + params['bq_l']            # (M, E)
    q_l_t = q_l.T                                                          # (E, M)
    wk_l_t = params['wk_l'].T                                              # (E, E)
    # pack the M displacement heads: wd_pack[i, m*E + o] = wd[m, o, i]
    wd_pack = jnp.transpose(params['wd'], (2, 0, 1)).reshape(E, M * E)
    bd_pack = params['bd'].reshape(1, M * E)
    wq_r_t = params['wq_r'].T
    k_r = jnp.einsum('bme,fe->bmf', anchor_value, params['wk_r']) + params['bk_r']
    k_r_t = jnp.transpose(k_r, (0, 2, 1))                                  # (B, E, M)
    v_r = jnp.einsum('bme,fe->bmf', anchor_value, params['wv_r']) + params['bv_r']
    wvoc_t = params['wvoc'].T                                              # (E, V)

    # TODO(synk): self.embedding_out(output_sequence[:, i:i+1]) is computed in
    # the original step() but never used numerically, so the lookup is skipped.
    decode = make_decode_fn(B, K, M, E, V, T)
    z_f, aar_f, emm_steps, idx_steps, y = decode(
        z0, aar0,
        q_l_t, wk_l_t, params['bk_l'],
        wd_pack, bd_pack,
        params['gamma'], params['beta'],
        wq_r_t, params['bq_r'], k_r_t, v_r,
        wvoc_t, params['bvoc'])

    # zs / idxpointer accumulations are available from the per-step kernel
    # outputs (emm_steps -> zs, idx_steps -> idxpointer) but forward() returns
    # the *input* hidden components, so they are not re-assembled here:
    #   zs_full = jnp.concatenate([zs0, emm_steps], axis=1)
    #   idxptr  = jnp.concatenate([bpointer, idx_steps[..., 0]], axis=1)

    # Faithful to the PyTorch forward: return the input hidden components + last y.
    return (z0, anchor_value, aar0, bpointer, zs0), y


if __name__ == "__main__":
    B = 2          # batch
    E = 32         # embed_dim
    M = 4          # mixture_count
    K = 20         # topk (hard-coded to 20 in the module)
    V_OUT = 128    # output_vocab_size
    T = 4          # decode steps

    key = jax.random.PRNGKey(0)
    kp, kz, ka, kt = jax.random.split(key, 4)
    params = init_params(kp, E, M, V_OUT)

    # hidden_state with the shapes produced by encode():
    #   z (B, topk, E) — identical rows, anchor_value (B, M, E),
    #   anchor_att_ret zeros (B, topk, 1), empty idxpointer, zs zeros (B, 1, topk, E)
    z_row = jax.random.normal(kz, (B, 1, E), jnp.float32)
    z = z_row + jnp.zeros((B, K, E), jnp.float32)
    anchor_value = jax.random.normal(ka, (B, M, E), jnp.float32)
    anchor_att_ret = jnp.zeros((B, K, 1), jnp.float32)
    idxpointer = jnp.zeros((B, 0, K), jnp.int32)
    zs = jnp.zeros((B, 1, K, E), jnp.float32)
    hidden = (z, anchor_value, anchor_att_ret, idxpointer, zs)

    output_sequence = jax.random.randint(kt, (B, T), 0, V_OUT)

    (hz, hav, haar, hbp, hzs), y = beam_anchor_mixture_rnn_forward(
        hidden, output_sequence, params)
    jax.block_until_ready(y)
    assert y.shape == (B, 1, V_OUT)
    print("KERNEL_OK")
</pallas_src>

<mosaic_0001>
module attributes {stable_mosaic.version = 11 : i64} {
  func.func @kernel(%arg0: i32, %arg1: i32, %arg2: memref<1x20x32xf32, #tpu.memory_space<vmem>>, %arg3: memref<1x20x1xf32, #tpu.memory_space<vmem>>, %arg4: memref<32x4xf32, #tpu.memory_space<vmem>>, %arg5: memref<32x32xf32, #tpu.memory_space<vmem>>, %arg6: memref<1x32xf32, #tpu.memory_space<vmem>>, %arg7: memref<32x128xf32, #tpu.memory_space<vmem>>, %arg8: memref<1x128xf32, #tpu.memory_space<vmem>>, %arg9: memref<1x32xf32, #tpu.memory_space<vmem>>, %arg10: memref<1x32xf32, #tpu.memory_space<vmem>>, %arg11: memref<32x32xf32, #tpu.memory_space<vmem>>, %arg12: memref<1x32xf32, #tpu.memory_space<vmem>>, %arg13: memref<1x32x4xf32, #tpu.memory_space<vmem>>, %arg14: memref<1x4x32xf32, #tpu.memory_space<vmem>>, %arg15: memref<32x128xf32, #tpu.memory_space<vmem>>, %arg16: memref<1x128xf32, #tpu.memory_space<vmem>>, %arg17: memref<1x20x32xf32, #tpu.memory_space<vmem>>, %arg18: memref<1x20x1xf32, #tpu.memory_space<vmem>>, %arg19: memref<1x1x20x32xf32, #tpu.memory_space<vmem>>, %arg20: memref<1x1x20x1xi32, #tpu.memory_space<vmem>>, %arg21: memref<1x1x128xf32, #tpu.memory_space<vmem>>) attributes {dimension_semantics = [#tpu.dimension_semantics<parallel>, #tpu.dimension_semantics<arbitrary>], iteration_bounds = array<i64: 2, 4>, scalar_prefetch = 0 : i64, scratch_operands = 0 : i64, tpu.core_type = #tpu.core_type<tc>, window_params = [{transform_indices = @transform_0, window_bounds = array<i64: 1, 20, 32>}, {transform_indices = @transform_1, window_bounds = array<i64: 1, 20, 1>}, {pipeline_mode = #tpu.pipeline_mode<synchronous>, transform_indices = @transform_2, window_bounds = array<i64: 32, 4>}, {pipeline_mode = #tpu.pipeline_mode<synchronous>, transform_indices = @transform_3, window_bounds = array<i64: 32, 32>}, {pipeline_mode = #tpu.pipeline_mode<synchronous>, transform_indices = @transform_4, window_bounds = array<i64: 1, 32>}, {pipeline_mode = #tpu.pipeline_mode<synchronous>, transform_indices = @transform_5, window_bounds = array<i64: 32, 128>}, {pipeline_mode = #tpu.pipeline_mode<synchronous>, transform_indices = @transform_6, window_bounds = array<i64: 1, 128>}, {pipeline_mode = #tpu.pipeline_mode<synchronous>, transform_indices = @transform_7, window_bounds = array<i64: 1, 32>}, {pipeline_mode = #tpu.pipeline_mode<synchronous>, transform_indices = @transform_8, window_bounds = array<i64: 1, 32>}, {pipeline_mode = #tpu.pipeline_mode<synchronous>, transform_indices = @transform_9, window_bounds = array<i64: 32, 32>}, {pipeline_mode = #tpu.pipeline_mode<synchronous>, transform_indices = @transform_10, window_bounds = array<i64: 1, 32>}, {transform_indices = @transform_11, window_bounds = array<i64: 1, 32, 4>}, {transform_indices = @transform_12, window_bounds = array<i64: 1, 4, 32>}, {pipeline_mode = #tpu.pipeline_mode<synchronous>, transform_indices = @transform_13, window_bounds = array<i64: 32, 128>}, {pipeline_mode = #tpu.pipeline_mode<synchronous>, transform_indices = @transform_14, window_bounds = array<i64: 1, 128>}, {transform_indices = @transform_15, window_bounds = array<i64: 1, 20, 32>}, {transform_indices = @transform_16, window_bounds = array<i64: 1, 20, 1>}, {transform_indices = @transform_17, window_bounds = array<i64: 1, 1, 20, 32>}, {transform_indices = @transform_18, window_bounds = array<i64: 1, 1, 20, 1>}, {transform_indices = @transform_19, window_bounds = array<i64: 1, 1, 128>}]} {
    %c0_i32 = arith.constant 0 : i32
    %0 = arith.cmpi eq, %arg1, %c0_i32 : i32
    %1 = arith.extui %0 : i1 to i32
    %c0_i32_0 = arith.constant 0 : i32
    %2 = arith.cmpi ne, %1, %c0_i32_0 : i32
    scf.if %2 {
      %c0_182 = arith.constant 0 : index
      %c0_183 = arith.constant 0 : index
      %c0_184 = arith.constant 0 : index
      %459 = vector.load %arg2[%c0_182, %c0_183, %c0_184] : memref<1x20x32xf32, #tpu.memory_space<vmem>>, vector<1x20x32xf32>
      %c0_185 = arith.constant 0 : index
      %c0_186 = arith.constant 0 : index
      %c0_187 = arith.constant 0 : index
      %460 = vector.load %arg17[%c0_185, %c0_186, %c0_187] : memref<1x20x32xf32, #tpu.memory_space<vmem>>, vector<1x20x32xf32>
      tpu.vector_store %arg17[%c0_185, %c0_186, %c0_187], %459 {strides = array<i32>} : memref<1x20x32xf32, #tpu.memory_space<vmem>>, vector<1x20x32xf32>,
      %c0_188 = arith.constant 0 : index
      %c0_189 = arith.constant 0 : index
      %c0_190 = arith.constant 0 : index
      %461 = vector.load %arg3[%c0_188, %c0_189, %c0_190] : memref<1x20x1xf32, #tpu.memory_space<vmem>>, vector<1x20x1xf32>
      %c0_191 = arith.constant 0 : index
      %c0_192 = arith.constant 0 : index
      %c0_193 = arith.constant 0 : index
      %462 = vector.load %arg18[%c0_191, %c0_192, %c0_193] : memref<1x20x1xf32, #tpu.memory_space<vmem>>, vector<1x20x1xf32>
      tpu.vector_store %arg18[%c0_191, %c0_192, %c0_193], %461 {strides = array<i32>} : memref<1x20x1xf32, #tpu.memory_space<vmem>>, vector<1x20x1xf32>,
    } else {
    }
    %c0 = arith.constant 0 : index
    %c0_1 = arith.constant 0 : index
    %c0_2 = arith.constant 0 : index
    %3 = vector.load %arg17[%c0, %c0_1, %c0_2] : memref<1x20x32xf32, #tpu.memory_space<vmem>>, vector<1x20x32xf32>
    %4 = vector.shape_cast %3 : vector<1x20x32xf32> to vector<20x32xf32>
    %c0_3 = arith.constant 0 : index
    %c0_4 = arith.constant 0 : index
    %c0_5 = arith.constant 0 : index
    %5 = vector.load %arg18[%c0_3, %c0_4, %c0_5] : memref<1x20x1xf32, #tpu.memory_space<vmem>>, vector<1x20x1xf32>
    %6 = vector.shape_cast %5 : vector<1x20x1xf32> to vector<20x1xf32>
    %c0_6 = arith.constant 0 : index
    %c0_7 = arith.constant 0 : index
    %7 = vector.load %arg5[%c0_6, %c0_7] : memref<32x32xf32, #tpu.memory_space<vmem>>, vector<32x32xf32>
    %cst = arith.constant dense<0.000000e+00> : vector<20x32xf32>
    %8 = tpu.matmul %4, %7, %cst {dimension_numbers = #tpu.dot_dimension_numbers<[1], [0], [0], [1], [0, 0, 1, 1], [], []>} : vector<20x32xf32>, vector<32x32xf32>, vector<20x32xf32> -> vector<20x32xf32>
    %c0_8 = arith.constant 0 : index
    %c0_9 = arith.constant 0 : index
    %9 = vector.load %arg6[%c0_8, %c0_9] : memref<1x32xf32, #tpu.memory_space<vmem>>, vector<1x32xf32>
    %10 = vector.broadcast %9 : vector<1x32xf32> to vector<20x32xf32>
    %11 = arith.addf %8, %10 : vector<20x32xf32>
    %c0_10 = arith.constant 0 : index
    %c0_11 = arith.constant 0 : index
    %12 = vector.load %arg4[%c0_10, %c0_11] : memref<32x4xf32, #tpu.memory_space<vmem>>, vector<32x4xf32>
    %cst_12 = arith.constant dense<0.000000e+00> : vector<20x4xf32>
    %13 = tpu.matmul %11, %12, %cst_12 {dimension_numbers = #tpu.dot_dimension_numbers<[1], [0], [0], [1], [0, 0, 1, 1], [], []>} : vector<20x32xf32>, vector<32x4xf32>, vector<20x4xf32> -> vector<20x4xf32>
    %cst_13 = arith.constant 0.176776692 : f32
    %14 = vector.broadcast %cst_13 : f32 to vector<20x4xf32>
    %15 = arith.mulf %13, %14 : vector<20x4xf32>
    %cst_14 = arith.constant dense<0xFF800000> : vector<4xf32>
    %16 = vector.multi_reduction <maximumf>, %15, %cst_14 [0] : vector<20x4xf32> to vector<4xf32>
    %17 = vector.shape_cast %16 : vector<4xf32> to vector<1x4xf32>
    %18 = vector.broadcast %17 : vector<1x4xf32> to vector<20x4xf32>
    %19 = arith.subf %15, %18 : vector<20x4xf32>
    %20 = math.exp %19 : vector<20x4xf32>
    %cst_15 = arith.constant dense<0.000000e+00> : vector<4xf32>
    %21 = vector.multi_reduction <add>, %20, %cst_15 [0] : vector<20x4xf32> to vector<4xf32>
    %22 = vector.shape_cast %21 : vector<4xf32> to vector<1x4xf32>
    %23 = math.log %22 : vector<1x4xf32>
    %24 = vector.broadcast %23 : vector<1x4xf32> to vector<20x4xf32>
    %25 = arith.subf %19, %24 : vector<20x4xf32>
    %26 = vector.broadcast %6 : vector<20x1xf32> to vector<20x4xf32>
    %27 = arith.addf %25, %26 : vector<20x4xf32>
    %28 = tpu.iota {dimensions = array<i32: 0>} : vector<20x4xi32>
    %29 = tpu.iota {dimensions = array<i32: 1>} : vector<20x4xi32>
    %c4_i32 = arith.constant 4 : i32
    %30 = vector.broadcast %c4_i32 : i32 to vector<20x4xi32>
    %31 = arith.muli %28, %30 : vector<20x4xi32>
    %32 = arith.addi %31, %29 : vector<20x4xi32>
    %cst_16 = arith.constant dense<0xFF800000> : vector<20xf32>
    %33 = vector.multi_reduction <maximumf>, %27, %cst_16 [1] : vector<20x4xf32> to vector<20xf32>
    %34 = vector.shape_cast %33 : vector<20xf32> to vector<20x1xf32>
    %cst_17 = arith.constant dense<0xFF800000> : vector<1xf32>
    %35 = vector.multi_reduction <maximumf>, %34, %cst_17 [0] : vector<20x1xf32> to vector<1xf32>
    %36 = vector.shape_cast %35 : vector<1xf32> to vector<1x1xf32>
    %37 = vector.broadcast %36 : vector<1x1xf32> to vector<20x4xf32>
    %38 = arith.cmpf oge, %27, %37 : vector<20x4xf32>
    %c80_i32 = arith.constant 80 : i32
    %39 = vector.broadcast %c80_i32 : i32 to vector<20x4xi32>
    %40 = arith.select %38, %32, %39 : vector<20x4xi1>, vector<20x4xi32>
    %cst_18 = arith.constant dense<2147483647> : vector<20xi32>
    %41 = vector.multi_reduction <minsi>, %40, %cst_18 [1] : vector<20x4xi32> to vector<20xi32>
    %42 = vector.shape_cast %41 : vector<20xi32> to vector<20x1xi32>
    %cst_19 = arith.constant dense<2147483647> : vector<1xi32>
    %43 = vector.multi_reduction <minsi>, %42, %cst_19 [0] : vector<20x1xi32> to vector<1xi32>
    %44 = vector.shape_cast %43 : vector<1xi32> to vector<1x1xi32>
    %45 = vector.broadcast %44 : vector<1x1xi32> to vector<20x4xi32>
    %46 = arith.cmpi eq, %32, %45 : vector<20x4xi32>
    %cst_20 = arith.constant -3.000000e+38 : f32
    %47 = vector.broadcast %cst_20 : f32 to vector<20x4xf32>
    %48 = arith.select %46, %47, %27 : vector<20x4xi1>, vector<20x4xf32>
    %cst_21 = arith.constant dense<0xFF800000> : vector<20xf32>
    %49 = vector.multi_reduction <maximumf>, %48, %cst_21 [1] : vector<20x4xf32> to vector<20xf32>
    %50 = vector.shape_cast %49 : vector<20xf32> to vector<20x1xf32>
    %cst_22 = arith.constant dense<0xFF800000> : vector<1xf32>
    %51 = vector.multi_reduction <maximumf>, %50, %cst_22 [0] : vector<20x1xf32> to vector<1xf32>
    %52 = vector.shape_cast %51 : vector<1xf32> to vector<1x1xf32>
    %53 = vector.broadcast %52 : vector<1x1xf32> to vector<20x4xf32>
    %54 = arith.cmpf oge, %48, %53 : vector<20x4xf32>
    %c80_i32_23 = arith.constant 80 : i32
    %55 = vector.broadcast %c80_i32_23 : i32 to vector<20x4xi32>
    %56 = arith.select %54, %32, %55 : vector<20x4xi1>, vector<20x4xi32>
    %cst_24 = arith.constant dense<2147483647> : vector<20xi32>
    %57 = vector.multi_reduction <minsi>, %56, %cst_24 [1] : vector<20x4xi32> to vector<20xi32>
    %58 = vector.shape_cast %57 : vector<20xi32> to vector<20x1xi32>
    %cst_25 = arith.constant dense<2147483647> : vector<1xi32>
    %59 = vector.multi_reduction <minsi>, %58, %cst_25 [0] : vector<20x1xi32> to vector<1xi32>
    %60 = vector.shape_cast %59 : vector<1xi32> to vector<1x1xi32>
    %61 = vector.broadcast %60 : vector<1x1xi32> to vector<20x4xi32>
    %62 = arith.cmpi eq, %32, %61 : vector<20x4xi32>
    %cst_26 = arith.constant -3.000000e+38 : f32
    %63 = vector.broadcast %cst_26 : f32 to vector<20x4xf32>
    %64 = arith.select %62, %63, %48 : vector<20x4xi1>, vector<20x4xf32>
    %cst_27 = arith.constant dense<0xFF800000> : vector<20xf32>
    %65 = vector.multi_reduction <maximumf>, %64, %cst_27 [1] : vector<20x4xf32> to vector<20xf32>
    %66 = vector.shape_cast %65 : vector<20xf32> to vector<20x1xf32>
    %cst_28 = arith.constant dense<0xFF800000> : vector<1xf32>
    %67 = vector.multi_reduction <maximumf>, %66, %cst_28 [0] : vector<20x1xf32> to vector<1xf32>
    %68 = vector.shape_cast %67 : vector<1xf32> to vector<1x1xf32>
    %69 = vector.broadcast %68 : vector<1x1xf32> to vector<20x4xf32>
    %70 = arith.cmpf oge, %64, %69 : vector<20x4xf32>
    %c80_i32_29 = arith.constant 80 : i32
    %71 = vector.broadcast %c80_i32_29 : i32 to vector<20x4xi32>
    %72 = arith.select %70, %32, %71 : vector<20x4xi1>, vector<20x4xi32>
    %cst_30 = arith.constant dense<2147483647> : vector<20xi32>
    %73 = vector.multi_reduction <minsi>, %72, %cst_30 [1] : vector<20x4xi32> to vector<20xi32>
    %74 = vector.shape_cast %73 : vector<20xi32> to vector<20x1xi32>
    %cst_31 = arith.constant dense<2147483647> : vector<1xi32>
    %75 = vector.multi_reduction <minsi>, %74, %cst_31 [0] : vector<20x1xi32> to vector<1xi32>
    %76 = vector.shape_cast %75 : vector<1xi32> to vector<1x1xi32>
    %77 = vector.broadcast %76 : vector<1x1xi32> to vector<20x4xi32>
    %78 = arith.cmpi eq, %32, %77 : vector<20x4xi32>
    %cst_32 = arith.constant -3.000000e+38 : f32
    %79 = vector.broadcast %cst_32 : f32 to vector<20x4xf32>
    %80 = arith.select %78, %79, %64 : vector<20x4xi1>, vector<20x4xf32>
    %cst_33 = arith.constant dense<0xFF800000> : vector<20xf32>
    %81 = vector.multi_reduction <maximumf>, %80, %cst_33 [1] : vector<20x4xf32> to vector<20xf32>
    %82 = vector.shape_cast %81 : vector<20xf32> to vector<20x1xf32>
    %cst_34 = arith.constant dense<0xFF800000> : vector<1xf32>
    %83 = vector.multi_reduction <maximumf>, %82, %cst_34 [0] : vector<20x1xf32> to vector<1xf32>
    %84 = vector.shape_cast %83 : vector<1xf32> to vector<1x1xf32>
    %85 = vector.broadcast %84 : vector<1x1xf32> to vector<20x4xf32>
    %86 = arith.cmpf oge, %80, %85 : vector<20x4xf32>
    %c80_i32_35 = arith.constant 80 : i32
    %87 = vector.broadcast %c80_i32_35 : i32 to vector<20x4xi32>
    %88 = arith.select %86, %32, %87 : vector<20x4xi1>, vector<20x4xi32>
    %cst_36 = arith.constant dense<2147483647> : vector<20xi32>
    %89 = vector.multi_reduction <minsi>, %88, %cst_36 [1] : vector<20x4xi32> to vector<20xi32>
    %90 = vector.shape_cast %89 : vector<20xi32> to vector<20x1xi32>
    %cst_37 = arith.constant dense<2147483647> : vector<1xi32>
    %91 = vector.multi_reduction <minsi>, %90, %cst_37 [0] : vector<20x1xi32> to vector<1xi32>
    %92 = vector.shape_cast %91 : vector<1xi32> to vector<1x1xi32>
    %93 = vector.broadcast %92 : vector<1x1xi32> to vector<20x4xi32>
    %94 = arith.cmpi eq, %32, %93 : vector<20x4xi32>
    %cst_38 = arith.constant -3.000000e+38 : f32
    %95 = vector.broadcast %cst_38 : f32 to vector<20x4xf32>
    %96 = arith.select %94, %95, %80 : vector<20x4xi1>, vector<20x4xf32>
    %cst_39 = arith.constant dense<0xFF800000> : vector<20xf32>
    %97 = vector.multi_reduction <maximumf>, %96, %cst_39 [1] : vector<20x4xf32> to vector<20xf32>
    %98 = vector.shape_cast %97 : vector<20xf32> to vector<20x1xf32>
    %cst_40 = arith.constant dense<0xFF800000> : vector<1xf32>
    %99 = vector.multi_reduction <maximumf>, %98, %cst_40 [0] : vector<20x1xf32> to vector<1xf32>
    %100 = vector.shape_cast %99 : vector<1xf32> to vector<1x1xf32>
    %101 = vector.broadcast %100 : vector<1x1xf32> to vector<20x4xf32>
    %102 = arith.cmpf oge, %96, %101 : vector<20x4xf32>
    %c80_i32_41 = arith.constant 80 : i32
    %103 = vector.broadcast %c80_i32_41 : i32 to vector<20x4xi32>
    %104 = arith.select %102, %32, %103 : vector<20x4xi1>, vector<20x4xi32>
    %cst_42 = arith.constant dense<2147483647> : vector<20xi32>
    %105 = vector.multi_reduction <minsi>, %104, %cst_42 [1] : vector<20x4xi32> to vector<20xi32>
    %106 = vector.shape_cast %105 : vector<20xi32> to vector<20x1xi32>
    %cst_43 = arith.constant dense<2147483647> : vector<1xi32>
    %107 = vector.multi_reduction <minsi>, %106, %cst_43 [0] : vector<20x1xi32> to vector<1xi32>
    %108 = vector.shape_cast %107 : vector<1xi32> to vector<1x1xi32>
    %109 = vector.broadcast %108 : vector<1x1xi32> to vector<20x4xi32>
    %110 = arith.cmpi eq, %32, %109 : vector<20x4xi32>
    %cst_44 = arith.constant -3.000000e+38 : f32
    %111 = vector.broadcast %cst_44 : f32 to vector<20x4xf32>
    %112 = arith.select %110, %111, %96 : vector<20x4xi1>, vector<20x4xf32>
    %cst_45 = arith.constant dense<0xFF800000> : vector<20xf32>
    %113 = vector.multi_reduction <maximumf>, %112, %cst_45 [1] : vector<20x4xf32> to vector<20xf32>
    %114 = vector.shape_cast %113 : vector<20xf32> to vector<20x1xf32>
    %cst_46 = arith.constant dense<0xFF800000> : vector<1xf32>
    %115 = vector.multi_reduction <maximumf>, %114, %cst_46 [0] : vector<20x1xf32> to vector<1xf32>
    %116 = vector.shape_cast %115 : vector<1xf32> to vector<1x1xf32>
    %117 = vector.broadcast %116 : vector<1x1xf32> to vector<20x4xf32>
    %118 = arith.cmpf oge, %112, %117 : vector<20x4xf32>
    %c80_i32_47 = arith.constant 80 : i32
    %119 = vector.broadcast %c80_i32_47 : i32 to vector<20x4xi32>
    %120 = arith.select %118, %32, %119 : vector<20x4xi1>, vector<20x4xi32>
    %cst_48 = arith.constant dense<2147483647> : vector<20xi32>
    %121 = vector.multi_reduction <minsi>, %120, %cst_48 [1] : vector<20x4xi32> to vector<20xi32>
    %122 = vector.shape_cast %121 : vector<20xi32> to vector<20x1xi32>
    %cst_49 = arith.constant dense<2147483647> : vector<1xi32>
    %123 = vector.multi_reduction <minsi>, %122, %cst_49 [0] : vector<20x1xi32> to vector<1xi32>
    %124 = vector.shape_cast %123 : vector<1xi32> to vector<1x1xi32>
    %125 = vector.broadcast %124 : vector<1x1xi32> to vector<20x4xi32>
    %126 = arith.cmpi eq, %32, %125 : vector<20x4xi32>
    %cst_50 = arith.constant -3.000000e+38 : f32
    %127 = vector.broadcast %cst_50 : f32 to vector<20x4xf32>
    %128 = arith.select %126, %127, %112 : vector<20x4xi1>, vector<20x4xf32>
    %cst_51 = arith.constant dense<0xFF800000> : vector<20xf32>
    %129 = vector.multi_reduction <maximumf>, %128, %cst_51 [1] : vector<20x4xf32> to vector<20xf32>
    %130 = vector.shape_cast %129 : vector<20xf32> to vector<20x1xf32>
    %cst_52 = arith.constant dense<0xFF800000> : vector<1xf32>
    %131 = vector.multi_reduction <maximumf>, %130, %cst_52 [0] : vector<20x1xf32> to vector<1xf32>
    %132 = vector.shape_cast %131 : vector<1xf32> to vector<1x1xf32>
    %133 = vector.broadcast %132 : vector<1x1xf32> to vector<20x4xf32>
    %134 = arith.cmpf oge, %128, %133 : vector<20x4xf32>
    %c80_i32_53 = arith.constant 80 : i32
    %135 = vector.broadcast %c80_i32_53 : i32 to vector<20x4xi32>
    %136 = arith.select %134, %32, %135 : vector<20x4xi1>, vector<20x4xi32>
    %cst_54 = arith.constant dense<2147483647> : vector<20xi32>
    %137 = vector.multi_reduction <minsi>, %136, %cst_54 [1] : vector<20x4xi32> to vector<20xi32>
    %138 = vector.shape_cast %137 : vector<20xi32> to vector<20x1xi32>
    %cst_55 = arith.constant dense<2147483647> : vector<1xi32>
    %139 = vector.multi_reduction <minsi>, %138, %cst_55 [0] : vector<20x1xi32> to vector<1xi32>
    %140 = vector.shape_cast %139 : vector<1xi32> to vector<1x1xi32>
    %141 = vector.broadcast %140 : vector<1x1xi32> to vector<20x4xi32>
    %142 = arith.cmpi eq, %32, %141 : vector<20x4xi32>
    %cst_56 = arith.constant -3.000000e+38 : f32
    %143 = vector.broadcast %cst_56 : f32 to vector<20x4xf32>
    %144 = arith.select %142, %143, %128 : vector<20x4xi1>, vector<20x4xf32>
    %cst_57 = arith.constant dense<0xFF800000> : vector<20xf32>
    %145 = vector.multi_reduction <maximumf>, %144, %cst_57 [1] : vector<20x4xf32> to vector<20xf32>
    %146 = vector.shape_cast %145 : vector<20xf32> to vector<20x1xf32>
    %cst_58 = arith.constant dense<0xFF800000> : vector<1xf32>
    %147 = vector.multi_reduction <maximumf>, %146, %cst_58 [0] : vector<20x1xf32> to vector<1xf32>
    %148 = vector.shape_cast %147 : vector<1xf32> to vector<1x1xf32>
    %149 = vector.broadcast %148 : vector<1x1xf32> to vector<20x4xf32>
    %150 = arith.cmpf oge, %144, %149 : vector<20x4xf32>
    %c80_i32_59 = arith.constant 80 : i32
    %151 = vector.broadcast %c80_i32_59 : i32 to vector<20x4xi32>
    %152 = arith.select %150, %32, %151 : vector<20x4xi1>, vector<20x4xi32>
    %cst_60 = arith.constant dense<2147483647> : vector<20xi32>
    %153 = vector.multi_reduction <minsi>, %152, %cst_60 [1] : vector<20x4xi32> to vector<20xi32>
    %154 = vector.shape_cast %153 : vector<20xi32> to vector<20x1xi32>
    %cst_61 = arith.constant dense<2147483647> : vector<1xi32>
    %155 = vector.multi_reduction <minsi>, %154, %cst_61 [0] : vector<20x1xi32> to vector<1xi32>
    %156 = vector.shape_cast %155 : vector<1xi32> to vector<1x1xi32>
    %157 = vector.broadcast %156 : vector<1x1xi32> to vector<20x4xi32>
    %158 = arith.cmpi eq, %32, %157 : vector<20x4xi32>
    %cst_62 = arith.constant -3.000000e+38 : f32
    %159 = vector.broadcast %cst_62 : f32 to vector<20x4xf32>
    %160 = arith.select %158, %159, %144 : vector<20x4xi1>, vector<20x4xf32>
    %cst_63 = arith.constant dense<0xFF800000> : vector<20xf32>
    %161 = vector.multi_reduction <maximumf>, %160, %cst_63 [1] : vector<20x4xf32> to vector<20xf32>
    %162 = vector.shape_cast %161 : vector<20xf32> to vector<20x1xf32>
    %cst_64 = arith.constant dense<0xFF800000> : vector<1xf32>
    %163 = vector.multi_reduction <maximumf>, %162, %cst_64 [0] : vector<20x1xf32> to vector<1xf32>
    %164 = vector.shape_cast %163 : vector<1xf32> to vector<1x1xf32>
    %165 = vector.broadcast %164 : vector<1x1xf32> to vector<20x4xf32>
    %166 = arith.cmpf oge, %160, %165 : vector<20x4xf32>
    %c80_i32_65 = arith.constant 80 : i32
    %167 = vector.broadcast %c80_i32_65 : i32 to vector<20x4xi32>
    %168 = arith.select %166, %32, %167 : vector<20x4xi1>, vector<20x4xi32>
    %cst_66 = arith.constant dense<2147483647> : vector<20xi32>
    %169 = vector.multi_reduction <minsi>, %168, %cst_66 [1] : vector<20x4xi32> to vector<20xi32>
    %170 = vector.shape_cast %169 : vector<20xi32> to vector<20x1xi32>
    %cst_67 = arith.constant dense<2147483647> : vector<1xi32>
    %171 = vector.multi_reduction <minsi>, %170, %cst_67 [0] : vector<20x1xi32> to vector<1xi32>
    %172 = vector.shape_cast %171 : vector<1xi32> to vector<1x1xi32>
    %173 = vector.broadcast %172 : vector<1x1xi32> to vector<20x4xi32>
    %174 = arith.cmpi eq, %32, %173 : vector<20x4xi32>
    %cst_68 = arith.constant -3.000000e+38 : f32
    %175 = vector.broadcast %cst_68 : f32 to vector<20x4xf32>
    %176 = arith.select %174, %175, %160 : vector<20x4xi1>, vector<20x4xf32>
    %cst_69 = arith.constant dense<0xFF800000> : vector<20xf32>
    %177 = vector.multi_reduction <maximumf>, %176, %cst_69 [1] : vector<20x4xf32> to vector<20xf32>
    %178 = vector.shape_cast %177 : vector<20xf32> to vector<20x1xf32>
    %cst_70 = arith.constant dense<0xFF800000> : vector<1xf32>
    %179 = vector.multi_reduction <maximumf>, %178, %cst_70 [0] : vector<20x1xf32> to vector<1xf32>
    %180 = vector.shape_cast %179 : vector<1xf32> to vector<1x1xf32>
    %181 = vector.broadcast %180 : vector<1x1xf32> to vector<20x4xf32>
    %182 = arith.cmpf oge, %176, %181 : vector<20x4xf32>
    %c80_i32_71 = arith.constant 80 : i32
    %183 = vector.broadcast %c80_i32_71 : i32 to vector<20x4xi32>
    %184 = arith.select %182, %32, %183 : vector<20x4xi1>, vector<20x4xi32>
    %cst_72 = arith.constant dense<2147483647> : vector<20xi32>
    %185 = vector.multi_reduction <minsi>, %184, %cst_72 [1] : vector<20x4xi32> to vector<20xi32>
    %186 = vector.shape_cast %185 : vector<20xi32> to vector<20x1xi32>
    %cst_73 = arith.constant dense<2147483647> : vector<1xi32>
    %187 = vector.multi_reduction <minsi>, %186, %cst_73 [0] : vector<20x1xi32> to vector<1xi32>
    %188 = vector.shape_cast %187 : vector<1xi32> to vector<1x1xi32>
    %189 = vector.broadcast %188 : vector<1x1xi32> to vector<20x4xi32>
    %190 = arith.cmpi eq, %32, %189 : vector<20x4xi32>
    %cst_74 = arith.constant -3.000000e+38 : f32
    %191 = vector.broadcast %cst_74 : f32 to vector<20x4xf32>
    %192 = arith.select %190, %191, %176 : vector<20x4xi1>, vector<20x4xf32>
    %cst_75 = arith.constant dense<0xFF800000> : vector<20xf32>
    %193 = vector.multi_reduction <maximumf>, %192, %cst_75 [1] : vector<20x4xf32> to vector<20xf32>
    %194 = vector.shape_cast %193 : vector<20xf32> to vector<20x1xf32>
    %cst_76 = arith.constant dense<0xFF800000> : vector<1xf32>
    %195 = vector.multi_reduction <maximumf>, %194, %cst_76 [0] : vector<20x1xf32> to vector<1xf32>
    %196 = vector.shape_cast %195 : vector<1xf32> to vector<1x1xf32>
    %197 = vector.broadcast %196 : vector<1x1xf32> to vector<20x4xf32>
    %198 = arith.cmpf oge, %192, %197 : vector<20x4xf32>
    %c80_i32_77 = arith.constant 80 : i32
    %199 = vector.broadcast %c80_i32_77 : i32 to vector<20x4xi32>
    %200 = arith.select %198, %32, %199 : vector<20x4xi1>, vector<20x4xi32>
    %cst_78 = arith.constant dense<2147483647> : vector<20xi32>
    %201 = vector.multi_reduction <minsi>, %200, %cst_78 [1] : vector<20x4xi32> to vector<20xi32>
    %202 = vector.shape_cast %201 : vector<20xi32> to vector<20x1xi32>
    %cst_79 = arith.constant dense<2147483647> : vector<1xi32>
    %203 = vector.multi_reduction <minsi>, %202, %cst_79 [0] : vector<20x1xi32> to vector<1xi32>
    %204 = vector.shape_cast %203 : vector<1xi32> to vector<1x1xi32>
    %205 = vector.broadcast %204 : vector<1x1xi32> to vector<20x4xi32>
    %206 = arith.cmpi eq, %32, %205 : vector<20x4xi32>
    %cst_80 = arith.constant -3.000000e+38 : f32
    %207 = vector.broadcast %cst_80 : f32 to vector<20x4xf32>
    %208 = arith.select %206, %207, %192 : vector<20x4xi1>, vector<20x4xf32>
    %cst_81 = arith.constant dense<0xFF800000> : vector<20xf32>
    %209 = vector.multi_reduction <maximumf>, %208, %cst_81 [1] : vector<20x4xf32> to vector<20xf32>
    %210 = vector.shape_cast %209 : vector<20xf32> to vector<20x1xf32>
    %cst_82 = arith.constant dense<0xFF800000> : vector<1xf32>
    %211 = vector.multi_reduction <maximumf>, %210, %cst_82 [0] : vector<20x1xf32> to vector<1xf32>
    %212 = vector.shape_cast %211 : vector<1xf32> to vector<1x1xf32>
    %213 = vector.broadcast %212 : vector<1x1xf32> to vector<20x4xf32>
    %214 = arith.cmpf oge, %208, %213 : vector<20x4xf32>
    %c80_i32_83 = arith.constant 80 : i32
    %215 = vector.broadcast %c80_i32_83 : i32 to vector<20x4xi32>
    %216 = arith.select %214, %32, %215 : vector<20x4xi1>, vector<20x4xi32>
    %cst_84 = arith.constant dense<2147483647> : vector<20xi32>
    %217 = vector.multi_reduction <minsi>, %216, %cst_84 [1] : vector<20x4xi32> to vector<20xi32>
    %218 = vector.shape_cast %217 : vector<20xi32> to vector<20x1xi32>
    %cst_85 = arith.constant dense<2147483647> : vector<1xi32>
    %219 = vector.multi_reduction <minsi>, %218, %cst_85 [0] : vector<20x1xi32> to vector<1xi32>
    %220 = vector.shape_cast %219 : vector<1xi32> to vector<1x1xi32>
    %221 = vector.broadcast %220 : vector<1x1xi32> to vector<20x4xi32>
    %222 = arith.cmpi eq, %32, %221 : vector<20x4xi32>
    %cst_86 = arith.constant -3.000000e+38 : f32
    %223 = vector.broadcast %cst_86 : f32 to vector<20x4xf32>
    %224 = arith.select %222, %223, %208 : vector<20x4xi1>, vector<20x4xf32>
    %cst_87 = arith.constant dense<0xFF800000> : vector<20xf32>
    %225 = vector.multi_reduction <maximumf>, %224, %cst_87 [1] : vector<20x4xf32> to vector<20xf32>
    %226 = vector.shape_cast %225 : vector<20xf32> to vector<20x1xf32>
    %cst_88 = arith.constant dense<0xFF800000> : vector<1xf32>
    %227 = vector.multi_reduction <maximumf>, %226, %cst_88 [0] : vector<20x1xf32> to vector<1xf32>
    %228 = vector.shape_cast %227 : vector<1xf32> to vector<1x1xf32>
    %229 = vector.broadcast %228 : vector<1x1xf32> to vector<20x4xf32>
    %230 = arith.cmpf oge, %224, %229 : vector<20x4xf32>
    %c80_i32_89 = arith.constant 80 : i32
    %231 = vector.broadcast %c80_i32_89 : i32 to vector<20x4xi32>
    %232 = arith.select %230, %32, %231 : vector<20x4xi1>, vector<20x4xi32>
    %cst_90 = arith.constant dense<2147483647> : vector<20xi32>
    %233 = vector.multi_reduction <minsi>, %232, %cst_90 [1] : vector<20x4xi32> to vector<20xi32>
    %234 = vector.shape_cast %233 : vector<20xi32> to vector<20x1xi32>
    %cst_91 = arith.constant dense<2147483647> : vector<1xi32>
    %235 = vector.multi_reduction <minsi>, %234, %cst_91 [0] : vector<20x1xi32> to vector<1xi32>
    %236 = vector.shape_cast %235 : vector<1xi32> to vector<1x1xi32>
    %237 = vector.broadcast %236 : vector<1x1xi32> to vector<20x4xi32>
    %238 = arith.cmpi eq, %32, %237 : vector<20x4xi32>
    %cst_92 = arith.constant -3.000000e+38 : f32
    %239 = vector.broadcast %cst_92 : f32 to vector<20x4xf32>
    %240 = arith.select %238, %239, %224 : vector<20x4xi1>, vector<20x4xf32>
    %cst_93 = arith.constant dense<0xFF800000> : vector<20xf32>
    %241 = vector.multi_reduction <maximumf>, %240, %cst_93 [1] : vector<20x4xf32> to vector<20xf32>
    %242 = vector.shape_cast %241 : vector<20xf32> to vector<20x1xf32>
    %cst_94 = arith.constant dense<0xFF800000> : vector<1xf32>
    %243 = vector.multi_reduction <maximumf>, %242, %cst_94 [0] : vector<20x1xf32> to vector<1xf32>
    %244 = vector.shape_cast %243 : vector<1xf32> to vector<1x1xf32>
    %245 = vector.broadcast %244 : vector<1x1xf32> to vector<20x4xf32>
    %246 = arith.cmpf oge, %240, %245 : vector<20x4xf32>
    %c80_i32_95 = arith.constant 80 : i32
    %247 = vector.broadcast %c80_i32_95 : i32 to vector<20x4xi32>
    %248 = arith.select %246, %32, %247 : vector<20x4xi1>, vector<20x4xi32>
    %cst_96 = arith.constant dense<2147483647> : vector<20xi32>
    %249 = vector.multi_reduction <minsi>, %248, %cst_96 [1] : vector<20x4xi32> to vector<20xi32>
    %250 = vector.shape_cast %249 : vector<20xi32> to vector<20x1xi32>
    %cst_97 = arith.constant dense<2147483647> : vector<1xi32>
    %251 = vector.multi_reduction <minsi>, %250, %cst_97 [0] : vector<20x1xi32> to vector<1xi32>
    %252 = vector.shape_cast %251 : vector<1xi32> to vector<1x1xi32>
    %253 = vector.broadcast %252 : vector<1x1xi32> to vector<20x4xi32>
    %254 = arith.cmpi eq, %32, %253 : vector<20x4xi32>
    %cst_98 = arith.constant -3.000000e+38 : f32
    %255 = vector.broadcast %cst_98 : f32 to vector<20x4xf32>
    %256 = arith.select %254, %255, %240 : vector<20x4xi1>, vector<20x4xf32>
    %cst_99 = arith.constant dense<0xFF800000> : vector<20xf32>
    %257 = vector.multi_reduction <maximumf>, %256, %cst_99 [1] : vector<20x4xf32> to vector<20xf32>
    %258 = vector.shape_cast %257 : vector<20xf32> to vector<20x1xf32>
    %cst_100 = arith.constant dense<0xFF800000> : vector<1xf32>
    %259 = vector.multi_reduction <maximumf>, %258, %cst_100 [0] : vector<20x1xf32> to vector<1xf32>
    %260 = vector.shape_cast %259 : vector<1xf32> to vector<1x1xf32>
    %261 = vector.broadcast %260 : vector<1x1xf32> to vector<20x4xf32>
    %262 = arith.cmpf oge, %256, %261 : vector<20x4xf32>
    %c80_i32_101 = arith.constant 80 : i32
    %263 = vector.broadcast %c80_i32_101 : i32 to vector<20x4xi32>
    %264 = arith.select %262, %32, %263 : vector<20x4xi1>, vector<20x4xi32>
    %cst_102 = arith.constant dense<2147483647> : vector<20xi32>
    %265 = vector.multi_reduction <minsi>, %264, %cst_102 [1] : vector<20x4xi32> to vector<20xi32>
    %266 = vector.shape_cast %265 : vector<20xi32> to vector<20x1xi32>
    %cst_103 = arith.constant dense<2147483647> : vector<1xi32>
    %267 = vector.multi_reduction <minsi>, %266, %cst_103 [0] : vector<20x1xi32> to vector<1xi32>
    %268 = vector.shape_cast %267 : vector<1xi32> to vector<1x1xi32>
    %269 = vector.broadcast %268 : vector<1x1xi32> to vector<20x4xi32>
    %270 = arith.cmpi eq, %32, %269 : vector<20x4xi32>
    %cst_104 = arith.constant -3.000000e+38 : f32
    %271 = vector.broadcast %cst_104 : f32 to vector<20x4xf32>
    %272 = arith.select %270, %271, %256 : vector<20x4xi1>, vector<20x4xf32>
    %cst_105 = arith.constant dense<0xFF800000> : vector<20xf32>
    %273 = vector.multi_reduction <maximumf>, %272, %cst_105 [1] : vector<20x4xf32> to vector<20xf32>
    %274 = vector.shape_cast %273 : vector<20xf32> to vector<20x1xf32>
    %cst_106 = arith.constant dense<0xFF800000> : vector<1xf32>
    %275 = vector.multi_reduction <maximumf>, %274, %cst_106 [0] : vector<20x1xf32> to vector<1xf32>
    %276 = vector.shape_cast %275 : vector<1xf32> to vector<1x1xf32>
    %277 = vector.broadcast %276 : vector<1x1xf32> to vector<20x4xf32>
    %278 = arith.cmpf oge, %272, %277 : vector<20x4xf32>
    %c80_i32_107 = arith.constant 80 : i32
    %279 = vector.broadcast %c80_i32_107 : i32 to vector<20x4xi32>
    %280 = arith.select %278, %32, %279 : vector<20x4xi1>, vector<20x4xi32>
    %cst_108 = arith.constant dense<2147483647> : vector<20xi32>
    %281 = vector.multi_reduction <minsi>, %280, %cst_108 [1] : vector<20x4xi32> to vector<20xi32>
    %282 = vector.shape_cast %281 : vector<20xi32> to vector<20x1xi32>
    %cst_109 = arith.constant dense<2147483647> : vector<1xi32>
    %283 = vector.multi_reduction <minsi>, %282, %cst_109 [0] : vector<20x1xi32> to vector<1xi32>
    %284 = vector.shape_cast %283 : vector<1xi32> to vector<1x1xi32>
    %285 = vector.broadcast %284 : vector<1x1xi32> to vector<20x4xi32>
    %286 = arith.cmpi eq, %32, %285 : vector<20x4xi32>
    %cst_110 = arith.constant -3.000000e+38 : f32
    %287 = vector.broadcast %cst_110 : f32 to vector<20x4xf32>
    %288 = arith.select %286, %287, %272 : vector<20x4xi1>, vector<20x4xf32>
    %cst_111 = arith.constant dense<0xFF800000> : vector<20xf32>
    %289 = vector.multi_reduction <maximumf>, %288, %cst_111 [1] : vector<20x4xf32> to vector<20xf32>
    %290 = vector.shape_cast %289 : vector<20xf32> to vector<20x1xf32>
    %cst_112 = arith.constant dense<0xFF800000> : vector<1xf32>
    %291 = vector.multi_reduction <maximumf>, %290, %cst_112 [0] : vector<20x1xf32> to vector<1xf32>
    %292 = vector.shape_cast %291 : vector<1xf32> to vector<1x1xf32>
    %293 = vector.broadcast %292 : vector<1x1xf32> to vector<20x4xf32>
    %294 = arith.cmpf oge, %288, %293 : vector<20x4xf32>
    %c80_i32_113 = arith.constant 80 : i32
    %295 = vector.broadcast %c80_i32_113 : i32 to vector<20x4xi32>
    %296 = arith.select %294, %32, %295 : vector<20x4xi1>, vector<20x4xi32>
    %cst_114 = arith.constant dense<2147483647> : vector<20xi32>
    %297 = vector.multi_reduction <minsi>, %296, %cst_114 [1] : vector<20x4xi32> to vector<20xi32>
    %298 = vector.shape_cast %297 : vector<20xi32> to vector<20x1xi32>
    %cst_115 = arith.constant dense<2147483647> : vector<1xi32>
    %299 = vector.multi_reduction <minsi>, %298, %cst_115 [0] : vector<20x1xi32> to vector<1xi32>
    %300 = vector.shape_cast %299 : vector<1xi32> to vector<1x1xi32>
    %301 = vector.broadcast %300 : vector<1x1xi32> to vector<20x4xi32>
    %302 = arith.cmpi eq, %32, %301 : vector<20x4xi32>
    %cst_116 = arith.constant -3.000000e+38 : f32
    %303 = vector.broadcast %cst_116 : f32 to vector<20x4xf32>
    %304 = arith.select %302, %303, %288 : vector<20x4xi1>, vector<20x4xf32>
    %cst_117 = arith.constant dense<0xFF800000> : vector<20xf32>
    %305 = vector.multi_reduction <maximumf>, %304, %cst_117 [1] : vector<20x4xf32> to vector<20xf32>
    %306 = vector.shape_cast %305 : vector<20xf32> to vector<20x1xf32>
    %cst_118 = arith.constant dense<0xFF800000> : vector<1xf32>
    %307 = vector.multi_reduction <maximumf>, %306, %cst_118 [0] : vector<20x1xf32> to vector<1xf32>
    %308 = vector.shape_cast %307 : vector<1xf32> to vector<1x1xf32>
    %309 = vector.broadcast %308 : vector<1x1xf32> to vector<20x4xf32>
    %310 = arith.cmpf oge, %304, %309 : vector<20x4xf32>
    %c80_i32_119 = arith.constant 80 : i32
    %311 = vector.broadcast %c80_i32_119 : i32 to vector<20x4xi32>
    %312 = arith.select %310, %32, %311 : vector<20x4xi1>, vector<20x4xi32>
    %cst_120 = arith.constant dense<2147483647> : vector<20xi32>
    %313 = vector.multi_reduction <minsi>, %312, %cst_120 [1] : vector<20x4xi32> to vector<20xi32>
    %314 = vector.shape_cast %313 : vector<20xi32> to vector<20x1xi32>
    %cst_121 = arith.constant dense<2147483647> : vector<1xi32>
    %315 = vector.multi_reduction <minsi>, %314, %cst_121 [0] : vector<20x1xi32> to vector<1xi32>
    %316 = vector.shape_cast %315 : vector<1xi32> to vector<1x1xi32>
    %317 = vector.broadcast %316 : vector<1x1xi32> to vector<20x4xi32>
    %318 = arith.cmpi eq, %32, %317 : vector<20x4xi32>
    %cst_122 = arith.constant -3.000000e+38 : f32
    %319 = vector.broadcast %cst_122 : f32 to vector<20x4xf32>
    %320 = arith.select %318, %319, %304 : vector<20x4xi1>, vector<20x4xf32>
    %cst_123 = arith.constant dense<0xFF800000> : vector<20xf32>
    %321 = vector.multi_reduction <maximumf>, %320, %cst_123 [1] : vector<20x4xf32> to vector<20xf32>
    %322 = vector.shape_cast %321 : vector<20xf32> to vector<20x1xf32>
    %cst_124 = arith.constant dense<0xFF800000> : vector<1xf32>
    %323 = vector.multi_reduction <maximumf>, %322, %cst_124 [0] : vector<20x1xf32> to vector<1xf32>
    %324 = vector.shape_cast %323 : vector<1xf32> to vector<1x1xf32>
    %325 = vector.broadcast %324 : vector<1x1xf32> to vector<20x4xf32>
    %326 = arith.cmpf oge, %320, %325 : vector<20x4xf32>
    %c80_i32_125 = arith.constant 80 : i32
    %327 = vector.broadcast %c80_i32_125 : i32 to vector<20x4xi32>
    %328 = arith.select %326, %32, %327 : vector<20x4xi1>, vector<20x4xi32>
    %cst_126 = arith.constant dense<2147483647> : vector<20xi32>
    %329 = vector.multi_reduction <minsi>, %328, %cst_126 [1] : vector<20x4xi32> to vector<20xi32>
    %330 = vector.shape_cast %329 : vector<20xi32> to vector<20x1xi32>
    %cst_127 = arith.constant dense<2147483647> : vector<1xi32>
    %331 = vector.multi_reduction <minsi>, %330, %cst_127 [0] : vector<20x1xi32> to vector<1xi32>
    %332 = vector.shape_cast %331 : vector<1xi32> to vector<1x1xi32>
    %333 = vector.broadcast %332 : vector<1x1xi32> to vector<20x4xi32>
    %334 = arith.cmpi eq, %32, %333 : vector<20x4xi32>
    %cst_128 = arith.constant -3.000000e+38 : f32
    %335 = vector.broadcast %cst_128 : f32 to vector<20x4xf32>
    %336 = arith.select %334, %335, %320 : vector<20x4xi1>, vector<20x4xf32>
    %cst_129 = arith.constant dense<0xFF800000> : vector<20xf32>
    %337 = vector.multi_reduction <maximumf>, %336, %cst_129 [1] : vector<20x4xf32> to vector<20xf32>
    %338 = vector.shape_cast %337 : vector<20xf32> to vector<20x1xf32>
    %cst_130 = arith.constant dense<0xFF800000> : vector<1xf32>
    %339 = vector.multi_reduction <maximumf>, %338, %cst_130 [0] : vector<20x1xf32> to vector<1xf32>
    %340 = vector.shape_cast %339 : vector<1xf32> to vector<1x1xf32>
    %341 = vector.broadcast %340 : vector<1x1xf32> to vector<20x4xf32>
    %342 = arith.cmpf oge, %336, %341 : vector<20x4xf32>
    %c80_i32_131 = arith.constant 80 : i32
    %343 = vector.broadcast %c80_i32_131 : i32 to vector<20x4xi32>
    %344 = arith.select %342, %32, %343 : vector<20x4xi1>, vector<20x4xi32>
    %cst_132 = arith.constant dense<2147483647> : vector<20xi32>
    %345 = vector.multi_reduction <minsi>, %344, %cst_132 [1] : vector<20x4xi32> to vector<20xi32>
    %346 = vector.shape_cast %345 : vector<20xi32> to vector<20x1xi32>
    %cst_133 = arith.constant dense<2147483647> : vector<1xi32>
    %347 = vector.multi_reduction <minsi>, %346, %cst_133 [0] : vector<20x1xi32> to vector<1xi32>
    %348 = vector.shape_cast %347 : vector<1xi32> to vector<1x1xi32>
    %349 = tpu.concatenate %36, %52, %68, %84, %100, %116, %132, %148, %164, %180, %196, %212, %228, %244, %260, %276 in 0 : vector<1x1xf32>, vector<1x1xf32>, vector<1x1xf32>, vector<1x1xf32>, vector<1x1xf32>, vector<1x1xf32>, vector<1x1xf32>, vector<1x1xf32>, vector<1x1xf32>, vector<1x1xf32>, vector<1x1xf32>, vector<1x1xf32>, vector<1x1xf32>, vector<1x1xf32>, vector<1x1xf32>, vector<1x1xf32> -> vector<16x1xf32>
    %350 = tpu.concatenate %292, %308, %324, %340 in 0 : vector<1x1xf32>, vector<1x1xf32>, vector<1x1xf32>, vector<1x1xf32> -> vector<4x1xf32>
    %351 = tpu.concatenate %349, %350 in 0 : vector<16x1xf32>, vector<4x1xf32> -> vector<20x1xf32>
    %352 = tpu.concatenate %44, %60, %76, %92, %108, %124, %140, %156, %172, %188, %204, %220, %236, %252, %268, %284 in 0 : vector<1x1xi32>, vector<1x1xi32>, vector<1x1xi32>, vector<1x1xi32>, vector<1x1xi32>, vector<1x1xi32>, vector<1x1xi32>, vector<1x1xi32>, vector<1x1xi32>, vector<1x1xi32>, vector<1x1xi32>, vector<1x1xi32>, vector<1x1xi32>, vector<1x1xi32>, vector<1x1xi32>, vector<1x1xi32> -> vector<16x1xi32>
    %353 = tpu.concatenate %300, %316, %332, %348 in 0 : vector<1x1xi32>, vector<1x1xi32>, vector<1x1xi32>, vector<1x1xi32> -> vector<4x1xi32>
    %354 = tpu.concatenate %352, %353 in 0 : vector<16x1xi32>, vector<4x1xi32> -> vector<20x1xi32>
    %c2_i32 = arith.constant 2 : i32
    %355 = vector.broadcast %c2_i32 : i32 to vector<20x1xi32>
    %356 = arith.shrsi %354, %355 : vector<20x1xi32>
    %c3_i32 = arith.constant 3 : i32
    %357 = vector.broadcast %c3_i32 : i32 to vector<20x1xi32>
    %358 = arith.andi %354, %357 : vector<20x1xi32>
    %359 = tpu.iota {dimensions = array<i32: 1>} : vector<20x20xi32>
    %360 = vector.broadcast %356 : vector<20x1xi32> to vector<20x20xi32>
    %361 = arith.cmpi eq, %360, %359 : vector<20x20xi32>
    %362 = arith.extui %361 : vector<20x20xi1> to vector<20x20xi32>
    %363 = arith.sitofp %362 : vector<20x20xi32> to vector<20x20xf32>
    %cst_134 = arith.constant dense<0.000000e+00> : vector<20x32xf32>
    %364 = tpu.matmul %363, %4, %cst_134 {dimension_numbers = #tpu.dot_dimension_numbers<[1], [0], [0], [1], [0, 0, 1, 1], [], []>} : vector<20x20xf32>, vector<20x32xf32>, vector<20x32xf32> -> vector<20x32xf32>
    %c0_135 = arith.constant 0 : index
    %c0_136 = arith.constant 0 : index
    %365 = vector.load %arg7[%c0_135, %c0_136] : memref<32x128xf32, #tpu.memory_space<vmem>>, vector<32x128xf32>
    %cst_137 = arith.constant dense<0.000000e+00> : vector<20x128xf32>
    %366 = tpu.matmul %364, %365, %cst_137 {dimension_numbers = #tpu.dot_dimension_numbers<[1], [0], [0], [1], [0, 0, 1, 1], [], []>} : vector<20x32xf32>, vector<32x128xf32>, vector<20x128xf32> -> vector<20x128xf32>
    %c0_138 = arith.constant 0 : index
    %c0_139 = arith.constant 0 : index
    %367 = vector.load %arg8[%c0_138, %c0_139] : memref<1x128xf32, #tpu.memory_space<vmem>>, vector<1x128xf32>
    %368 = vector.broadcast %367 : vector<1x128xf32> to vector<20x128xf32>
    %369 = arith.addf %366, %368 : vector<20x128xf32>
    %370 = tpu.iota {dimensions = array<i32: 1>} : vector<20x4xi32>
    %371 = vector.broadcast %358 : vector<20x1xi32> to vector<20x4xi32>
    %372 = arith.cmpi eq, %371, %370 : vector<20x4xi32>
    %373 = arith.extui %372 : vector<20x4xi1> to vector<20x4xi32>
    %374 = arith.sitofp %373 : vector<20x4xi32> to vector<20x4xf32>
    %375 = vector.extract_strided_slice %374 {offsets = [0, 0], sizes = [20, 1], strides = [1, 1]} : vector<20x4xf32> to vector<20x1xf32>
    %376 = vector.extract_strided_slice %369 {offsets = [0, 0], sizes = [20, 32], strides = [1, 1]} : vector<20x128xf32> to vector<20x32xf32>
    %377 = vector.broadcast %375 : vector<20x1xf32> to vector<20x32xf32>
    %378 = arith.mulf %377, %376 : vector<20x32xf32>
    %379 = vector.extract_strided_slice %374 {offsets = [0, 1], sizes = [20, 1], strides = [1, 1]} : vector<20x4xf32> to vector<20x1xf32>
    %380 = vector.extract_strided_slice %369 {offsets = [0, 32], sizes = [20, 32], strides = [1, 1]} : vector<20x128xf32> to vector<20x32xf32>
    %381 = vector.broadcast %379 : vector<20x1xf32> to vector<20x32xf32>
    %382 = arith.mulf %381, %380 : vector<20x32xf32>
    %383 = arith.addf %378, %382 : vector<20x32xf32>
    %384 = vector.extract_strided_slice %374 {offsets = [0, 2], sizes = [20, 1], strides = [1, 1]} : vector<20x4xf32> to vector<20x1xf32>
    %385 = vector.extract_strided_slice %369 {offsets = [0, 64], sizes = [20, 32], strides = [1, 1]} : vector<20x128xf32> to vector<20x32xf32>
    %386 = vector.broadcast %384 : vector<20x1xf32> to vector<20x32xf32>
    %387 = arith.mulf %386, %385 : vector<20x32xf32>
    %388 = arith.addf %383, %387 : vector<20x32xf32>
    %389 = vector.extract_strided_slice %374 {offsets = [0, 3], sizes = [20, 1], strides = [1, 1]} : vector<20x4xf32> to vector<20x1xf32>
    %390 = vector.extract_strided_slice %369 {offsets = [0, 96], sizes = [20, 32], strides = [1, 1]} : vector<20x128xf32> to vector<20x32xf32>
    %391 = vector.broadcast %389 : vector<20x1xf32> to vector<20x32xf32>
    %392 = arith.mulf %391, %390 : vector<20x32xf32>
    %393 = arith.addf %388, %392 : vector<20x32xf32>
    %cst_140 = arith.constant dense<0.000000e+00> : vector<20xf32>
    %394 = vector.multi_reduction <add>, %393, %cst_140 [1] : vector<20x32xf32> to vector<20xf32>
    %395 = vector.shape_cast %394 : vector<20xf32> to vector<20x1xf32>
    %cst_141 = arith.constant 3.200000e+01 : f32
    %396 = vector.broadcast %cst_141 : f32 to vector<20x1xf32>
    %397 = arith.divf %395, %396 : vector<20x1xf32>
    %398 = vector.broadcast %397 : vector<20x1xf32> to vector<20x32xf32>
    %399 = arith.subf %393, %398 : vector<20x32xf32>
    %400 = arith.mulf %399, %399 : vector<20x32xf32>
    %cst_142 = arith.constant dense<0.000000e+00> : vector<20xf32>
    %401 = vector.multi_reduction <add>, %400, %cst_142 [1] : vector<20x32xf32> to vector<20xf32>
    %402 = vector.shape_cast %401 : vector<20xf32> to vector<20x1xf32>
    %cst_143 = arith.constant 0.0322580636 : f32
    %403 = vector.broadcast %cst_143 : f32 to vector<20x1xf32>
    %404 = arith.mulf %402, %403 : vector<20x1xf32>
    %405 = math.sqrt %404 : vector<20x1xf32>
    %cst_144 = arith.constant 9.99999997E-7 : f32
    %406 = vector.broadcast %cst_144 : f32 to vector<20x1xf32>
    %407 = arith.addf %405, %406 : vector<20x1xf32>
    %408 = tpu.reciprocal %407 {approx = true} : vector<20x1xf32> -> vector<20x1xf32>
    %c0_145 = arith.constant 0 : index
    %c0_146 = arith.constant 0 : index
    %409 = vector.load %arg9[%c0_145, %c0_146] : memref<1x32xf32, #tpu.memory_space<vmem>>, vector<1x32xf32>
    %410 = vector.broadcast %409 : vector<1x32xf32> to vector<20x32xf32>
    %411 = arith.mulf %410, %399 : vector<20x32xf32>
    %412 = vector.broadcast %408 : vector<20x1xf32> to vector<20x32xf32>
    %413 = arith.mulf %411, %412 : vector<20x32xf32>
    %c0_147 = arith.constant 0 : index
    %c0_148 = arith.constant 0 : index
    %414 = vector.load %arg10[%c0_147, %c0_148] : memref<1x32xf32, #tpu.memory_space<vmem>>, vector<1x32xf32>
    %415 = vector.broadcast %414 : vector<1x32xf32> to vector<20x32xf32>
    %416 = arith.addf %413, %415 : vector<20x32xf32>
    %c0_149 = arith.constant 0 : index
    %c0_150 = arith.constant 0 : index
    %417 = vector.load %arg11[%c0_149, %c0_150] : memref<32x32xf32, #tpu.memory_space<vmem>>, vector<32x32xf32>
    %cst_151 = arith.constant dense<0.000000e+00> : vector<20x32xf32>
    %418 = tpu.matmul %416, %417, %cst_151 {dimension_numbers = #tpu.dot_dimension_numbers<[1], [0], [0], [1], [0, 0, 1, 1], [], []>} : vector<20x32xf32>, vector<32x32xf32>, vector<20x32xf32> -> vector<20x32xf32>
    %c0_152 = arith.constant 0 : index
    %c0_153 = arith.constant 0 : index
    %419 = vector.load %arg12[%c0_152, %c0_153] : memref<1x32xf32, #tpu.memory_space<vmem>>, vector<1x32xf32>
    %420 = vector.broadcast %419 : vector<1x32xf32> to vector<20x32xf32>
    %421 = arith.addf %418, %420 : vector<20x32xf32>
    %c0_154 = arith.constant 0 : index
    %c0_155 = arith.constant 0 : index
    %c0_156 = arith.constant 0 : index
    %422 = vector.load %arg13[%c0_154, %c0_155, %c0_156] : memref<1x32x4xf32, #tpu.memory_space<vmem>>, vector<1x32x4xf32>
    %423 = vector.shape_cast %422 : vector<1x32x4xf32> to vector<32x4xf32>
    %cst_157 = arith.constant dense<0.000000e+00> : vector<20x4xf32>
    %424 = tpu.matmul %421, %423, %cst_157 {dimension_numbers = #tpu.dot_dimension_numbers<[1], [0], [0], [1], [0, 0, 1, 1], [], []>} : vector<20x32xf32>, vector<32x4xf32>, vector<20x4xf32> -> vector<20x4xf32>
    %cst_158 = arith.constant 0.176776692 : f32
    %425 = vector.broadcast %cst_158 : f32 to vector<20x4xf32>
    %426 = arith.mulf %424, %425 : vector<20x4xf32>
    %cst_159 = arith.constant dense<0xFF800000> : vector<20xf32>
    %427 = vector.multi_reduction <maximumf>, %426, %cst_159 [1] : vector<20x4xf32> to vector<20xf32>
    %428 = vector.shape_cast %427 : vector<20xf32> to vector<20x1xf32>
    %429 = vector.broadcast %428 : vector<20x1xf32> to vector<20x4xf32>
    %430 = arith.subf %426, %429 : vector<20x4xf32>
    %431 = math.exp %430 : vector<20x4xf32>
    %cst_160 = arith.constant dense<0.000000e+00> : vector<20xf32>
    %432 = vector.multi_reduction <add>, %431, %cst_160 [1] : vector<20x4xf32> to vector<20xf32>
    %433 = vector.shape_cast %432 : vector<20xf32> to vector<20x1xf32>
    %434 = tpu.reciprocal %433 {approx = true} : vector<20x1xf32> -> vector<20x1xf32>
    %435 = vector.broadcast %434 : vector<20x1xf32> to vector<20x4xf32>
    %436 = arith.mulf %431, %435 : vector<20x4xf32>
    %c0_161 = arith.constant 0 : index
    %c0_162 = arith.constant 0 : index
    %c0_163 = arith.constant 0 : index
    %437 = vector.load %arg14[%c0_161, %c0_162, %c0_163] : memref<1x4x32xf32, #tpu.memory_space<vmem>>, vector<1x4x32xf32>
    %438 = vector.shape_cast %437 : vector<1x4x32xf32> to vector<4x32xf32>
    %cst_164 = arith.constant dense<0.000000e+00> : vector<20x32xf32>
    %439 = tpu.matmul %436, %438, %cst_164 {dimension_numbers = #tpu.dot_dimension_numbers<[1], [0], [0], [1], [0, 0, 1, 1], [], []>} : vector<20x4xf32>, vector<4x32xf32>, vector<20x32xf32> -> vector<20x32xf32>
    %c0_165 = arith.constant 0 : index
    %c0_166 = arith.constant 0 : index
    %c0_167 = arith.constant 0 : index
    %440 = vector.load %arg17[%c0_165, %c0_166, %c0_167] : memref<1x20x32xf32, #tpu.memory_space<vmem>>, vector<1x20x32xf32>
    %441 = vector.shape_cast %440 : vector<1x20x32xf32> to vector<20x32xf32>
    %442 = vector.shape_cast %416 : vector<20x32xf32> to vector<1x20x32xf32>
    tpu.vector_store %arg17[%c0_165, %c0_166, %c0_167], %442 {strides = array<i32>} : memref<1x20x32xf32, #tpu.memory_space<vmem>>, vector<1x20x32xf32>,
    %cst_168 = arith.constant dense<0xFF800000> : vector<1xf32>
    %443 = vector.multi_reduction <maximumf>, %351, %cst_168 [0] : vector<20x1xf32> to vector<1xf32>
    %444 = vector.shape_cast %443 : vector<1xf32> to vector<1x1xf32>
    %445 = vector.broadcast %444 : vector<1x1xf32> to vector<20x1xf32>
    %446 = arith.subf %351, %445 : vector<20x1xf32>
    %c0_169 = arith.constant 0 : index
    %c0_170 = arith.constant 0 : index
    %c0_171 = arith.constant 0 : index
    %447 = vector.load %arg18[%c0_169, %c0_170, %c0_171] : memref<1x20x1xf32, #tpu.memory_space<vmem>>, vector<1x20x1xf32>
    %448 = vector.shape_cast %447 : vector<1x20x1xf32> to vector<20x1xf32>
    %449 = vector.shape_cast %446 : vector<20x1xf32> to vector<1x20x1xf32>
    tpu.vector_store %arg18[%c0_169, %c0_170, %c0_171], %449 {strides = array<i32>} : memref<1x20x1xf32, #tpu.memory_space<vmem>>, vector<1x20x1xf32>,
    %c0_172 = arith.constant 0 : index
    %c0_173 = arith.constant 0 : index
    %c0_174 = arith.constant 0 : index
    %c0_175 = arith.constant 0 : index
    %450 = vector.load %arg19[%c0_172, %c0_173, %c0_174, %c0_175] : memref<1x1x20x32xf32, #tpu.memory_space<vmem>>, vector<1x1x20x32xf32>
    %451 = vector.shape_cast %450 : vector<1x1x20x32xf32> to vector<20x32xf32>
    %452 = vector.shape_cast %439 : vector<20x32xf32> to vector<1x1x20x32xf32>
    tpu.vector_store %arg19[%c0_172, %c0_173, %c0_174, %c0_175], %452 {strides = array<i32>} : memref<1x1x20x32xf32, #tpu.memory_space<vmem>>, vector<1x1x20x32xf32>,
    %c0_176 = arith.constant 0 : index
    %c0_177 = arith.constant 0 : index
    %c0_178 = arith.constant 0 : index
    %c0_179 = arith.constant 0 : index
    %453 = vector.load %arg20[%c0_176, %c0_177, %c0_178, %c0_179] : memref<1x1x20x1xi32, #tpu.memory_space<vmem>>, vector<1x1x20x1xi32>
    %454 = vector.shape_cast %453 : vector<1x1x20x1xi32> to vector<20x1xi32>
    %455 = vector.shape_cast %354 : vector<20x1xi32> to vector<1x1x20x1xi32>
    tpu.vector_store %arg20[%c0_176, %c0_177, %c0_178, %c0_179], %455 {strides = array<i32>} : memref<1x1x20x1xi32, #tpu.memory_space<vmem>>, vector<1x1x20x1xi32>,
    %c3_i32_180 = arith.constant 3 : i32
    %456 = arith.cmpi eq, %arg1, %c3_i32_180 : i32
    %457 = arith.extui %456 : i1 to i32
    %c0_i32_181 = arith.constant 0 : i32
    %458 = arith.cmpi ne, %457, %c0_i32_181 : i32
    scf.if %458 {
      %459 = vector.extract_strided_slice %416 {offsets = [0, 0], sizes = [1, 32], strides = [1, 1]} : vector<20x32xf32> to vector<1x32xf32>
      %c0_182 = arith.constant 0 : index
      %c0_183 = arith.constant 0 : index
      %460 = vector.load %arg15[%c0_182, %c0_183] : memref<32x128xf32, #tpu.memory_space<vmem>>, vector<32x128xf32>
      %cst_184 = arith.constant dense<0.000000e+00> : vector<1x128xf32>
      %461 = tpu.matmul %459, %460, %cst_184 {dimension_numbers = #tpu.dot_dimension_numbers<[1], [0], [0], [1], [0, 0, 1, 1], [], []>} : vector<1x32xf32>, vector<32x128xf32>, vector<1x128xf32> -> vector<1x128xf32>
      %c0_185 = arith.constant 0 : index
      %c0_186 = arith.constant 0 : index
      %462 = vector.load %arg16[%c0_185, %c0_186] : memref<1x128xf32, #tpu.memory_space<vmem>>, vector<1x128xf32>
      %463 = arith.addf %461, %462 : vector<1x128xf32>
      %cst_187 = arith.constant dense<0xFF800000> : vector<1xf32>
      %464 = vector.multi_reduction <maximumf>, %463, %cst_187 [1] : vector<1x128xf32> to vector<1xf32>
      %465 = vector.shape_cast %464 : vector<1xf32> to vector<1x1xf32>
      %466 = vector.broadcast %465 : vector<1x1xf32> to vector<1x128xf32>
      %467 = arith.subf %463, %466 : vector<1x128xf32>
      %468 = math.exp %467 : vector<1x128xf32>
      %cst_188 = arith.constant dense<0.000000e+00> : vector<1xf32>
      %469 = vector.multi_reduction <add>, %468, %cst_188 [1] : vector<1x128xf32> to vector<1xf32>
      %470 = vector.shape_cast %469 : vector<1xf32> to vector<1x1xf32>
      %471 = math.log %470 : vector<1x1xf32>
      %472 = vector.broadcast %465 : vector<1x1xf32> to vector<1x128xf32>
      %473 = arith.subf %463, %472 : vector<1x128xf32>
      %474 = vector.broadcast %471 : vector<1x1xf32> to vector<1x128xf32>
      %475 = arith.subf %473, %474 : vector<1x128xf32>
      %c0_189 = arith.constant 0 : index
      %c0_190 = arith.constant 0 : index
      %c0_191 = arith.constant 0 : index
      %476 = vector.load %arg21[%c0_189, %c0_190, %c0_191] : memref<1x1x128xf32, #tpu.memory_space<vmem>>, vector<1x1x128xf32>
      %477 = vector.shape_cast %476 : vector<1x1x128xf32> to vector<1x128xf32>
      %478 = vector.shape_cast %475 : vector<1x128xf32> to vector<1x1x128xf32>
      tpu.vector_store %arg21[%c0_189, %c0_190, %c0_191], %478 {strides = array<i32>} : memref<1x1x128xf32, #tpu.memory_space<vmem>>, vector<1x1x128xf32>,
    } else {
    }
    return
  }
  func.func @transform_0(%arg0: i32, %arg1: i32) -> (i32, i32, i32) {
    %c0_i32 = arith.constant 0 : i32
    %c0_i32_0 = arith.constant 0 : i32
    %c0_i32_1 = arith.constant 0 : i32
    return %arg0, %c0_i32, %c0_i32_0 : i32, i32, i32
  }
  func.func @transform_1(%arg0: i32, %arg1: i32) -> (i32, i32, i32) {
    %c0_i32 = arith.constant 0 : i32
    %c0_i32_0 = arith.constant 0 : i32
    %c0_i32_1 = arith.constant 0 : i32
    return %arg0, %c0_i32, %c0_i32_0 : i32, i32, i32
  }
  func.func @transform_2(%arg0: i32, %arg1: i32) -> (i32, i32) {
    %c0_i32 = arith.constant 0 : i32
    %c0_i32_0 = arith.constant 0 : i32
    %c0_i32_1 = arith.constant 0 : i32
    return %c0_i32, %c0_i32_0 : i32, i32
  }
  func.func @transform_3(%arg0: i32, %arg1: i32) -> (i32, i32) {
    %c0_i32 = arith.constant 0 : i32
    %c0_i32_0 = arith.constant 0 : i32
    %c0_i32_1 = arith.constant 0 : i32
    return %c0_i32, %c0_i32_0 : i32, i32
  }
  func.func @transform_4(%arg0: i32, %arg1: i32) -> (i32, i32) {
    %c0_i32 = arith.constant 0 : i32
    %c0_i32_0 = arith.constant 0 : i32
    %c0_i32_1 = arith.constant 0 : i32
    return %c0_i32, %c0_i32_0 : i32, i32
  }
  func.func @transform_5(%arg0: i32, %arg1: i32) -> (i32, i32) {
    %c0_i32 = arith.constant 0 : i32
    %c0_i32_0 = arith.constant 0 : i32
    %c0_i32_1 = arith.constant 0 : i32
    return %c0_i32, %c0_i32_0 : i32, i32
  }
  func.func @transform_6(%arg0: i32, %arg1: i32) -> (i32, i32) {
    %c0_i32 = arith.constant 0 : i32
    %c0_i32_0 = arith.constant 0 : i32
    %c0_i32_1 = arith.constant 0 : i32
    return %c0_i32, %c0_i32_0 : i32, i32
  }
  func.func @transform_7(%arg0: i32, %arg1: i32) -> (i32, i32) {
    %c0_i32 = arith.constant 0 : i32
    %c0_i32_0 = arith.constant 0 : i32
    %c0_i32_1 = arith.constant 0 : i32
    return %c0_i32, %c0_i32_0 : i32, i32
  }
  func.func @transform_8(%arg0: i32, %arg1: i32) -> (i32, i32) {
    %c0_i32 = arith.constant 0 : i32
    %c0_i32_0 = arith.constant 0 : i32
    %c0_i32_1 = arith.constant 0 : i32
    return %c0_i32, %c0_i32_0 : i32, i32
  }
  func.func @transform_9(%arg0: i32, %arg1: i32) -> (i32, i32) {
    %c0_i32 = arith.constant 0 : i32
    %c0_i32_0 = arith.constant 0 : i32
    %c0_i32_1 = arith.constant 0 : i32
    return %c0_i32, %c0_i32_0 : i32, i32
  }
  func.func @transform_10(%arg0: i32, %arg1: i32) -> (i32, i32) {
    %c0_i32 = arith.constant 0 : i32
    %c0_i32_0 = arith.constant 0 : i32
    %c0_i32_1 = arith.constant 0 : i32
    return %c0_i32, %c0_i32_0 : i32, i32
  }
  func.func @transform_11(%arg0: i32, %arg1: i32) -> (i32, i32, i32) {
    %c0_i32 = arith.constant 0 : i32
    %c0_i32_0 = arith.constant 0 : i32
    %c0_i32_1 = arith.constant 0 : i32
    return %arg0, %c0_i32, %c0_i32_0 : i32, i32, i32
  }
  func.func @transform_12(%arg0: i32, %arg1: i32) -> (i32, i32, i32) {
    %c0_i32 = arith.constant 0 : i32
    %c0_i32_0 = arith.constant 0 : i32
    %c0_i32_1 = arith.constant 0 : i32
    return %arg0, %c0_i32, %c0_i32_0 : i32, i32, i32
  }
  func.func @transform_13(%arg0: i32, %arg1: i32) -> (i32, i32) {
    %c0_i32 = arith.constant 0 : i32
    %c0_i32_0 = arith.constant 0 : i32
    %c0_i32_1 = arith.constant 0 : i32
    return %c0_i32, %c0_i32_0 : i32, i32
  }
  func.func @transform_14(%arg0: i32, %arg1: i32) -> (i32, i32) {
    %c0_i32 = arith.constant 0 : i32
    %c0_i32_0 = arith.constant 0 : i32
    %c0_i32_1 = arith.constant 0 : i32
    return %c0_i32, %c0_i32_0 : i32, i32
  }
  func.func @transform_15(%arg0: i32, %arg1: i32) -> (i32, i32, i32) {
    %c0_i32 = arith.constant 0 : i32
    %c0_i32_0 = arith.constant 0 : i32
    %c0_i32_1 = arith.constant 0 : i32
    return %arg0, %c0_i32, %c0_i32_0 : i32, i32, i32
  }
  func.func @transform_16(%arg0: i32, %arg1: i32) -> (i32, i32, i32) {
    %c0_i32 = arith.constant 0 : i32
    %c0_i32_0 = arith.constant 0 : i32
    %c0_i32_1 = arith.constant 0 : i32
    return %arg0, %c0_i32, %c0_i32_0 : i32, i32, i32
  }
  func.func @transform_17(%arg0: i32, %arg1: i32) -> (i32, i32, i32, i32) {
    %c0_i32 = arith.constant 0 : i32
    %c0_i32_0 = arith.constant 0 : i32
    %c0_i32_1 = arith.constant 0 : i32
    return %arg0, %arg1, %c0_i32, %c0_i32_0 : i32, i32, i32, i32
  }
  func.func @transform_18(%arg0: i32, %arg1: i32) -> (i32, i32, i32, i32) {
    %c0_i32 = arith.constant 0 : i32
    %c0_i32_0 = arith.constant 0 : i32
    %c0_i32_1 = arith.constant 0 : i32
    return %arg0, %arg1, %c0_i32, %c0_i32_0 : i32, i32, i32, i32
  }
  func.func @transform_19(%arg0: i32, %arg1: i32) -> (i32, i32, i32) {
    %c0_i32 = arith.constant 0 : i32
    %c0_i32_0 = arith.constant 0 : i32
    %c0_i32_1 = arith.constant 0 : i32
    return %arg0, %c0_i32, %c0_i32_0 : i32, i32, i32
  }
}

</mosaic_0001>

<bundles_post_ra>
// kernel: tpu_custom_call.1
= control target key start
LH: loop header
LB: loop body
LE: loop exit
PB: predicated region body
PF: predicated region fallthrough
CT: control target
= control target key end

     0   :  { %s5829_s0 = inlined_call_operand.vmem [shape: f32[2,20,32], index: 0, kind: input, shape index: {}]   ;;  %s5830_s1 = inlined_call_operand.vmem [shape: f32[2,20,1], index: 1, kind: input, shape index: {}]   ;;  %s5831_s2 = inlined_call_operand.vmem [shape: f32[32,4], index: 2, kind: input, shape index: {}]   ;;  %s5832_s3 = inlined_call_operand.vmem [shape: f32[32,32], index: 3, kind: input, shape index: {}]   ;;  %s5833_s4 = inlined_call_operand.vmem [shape: f32[1,32], index: 4, kind: input, shape index: {}]   ;;  %s5834_s5 = inlined_call_operand.vmem [shape: f32[32,128], index: 5, kind: input, shape index: {}]   ;;  %s5835_s6 = inlined_call_operand.vmem [shape: f32[1,128], index: 6, kind: input, shape index: {}]   ;;  %s5836_s7 = inlined_call_operand.vmem [shape: f32[1,32], index: 7, kind: input, shape index: {}]   ;;  %s5837_s8 = inlined_call_operand.vmem [shape: f32[1,32], index: 8, kind: input, shape index: {}]   ;;  %s5838_s9 = inlined_call_operand.vmem [shape: f32[32,32], index: 9, kind: input, shape index: {}]   ;;  %s5839_s10 = inlined_call_operand.vmem [shape: f32[1,32], index: 10, kind: input, shape index: {}]   ;;  %s5840_s11 = inlined_call_operand.vmem [shape: f32[2,32,4], index: 11, kind: input, shape index: {}]   ;;  %s5841_s12 = inlined_call_operand.vmem [shape: f32[2,4,32], index: 12, kind: input, shape index: {}]   ;;  %s5842_s13 = inlined_call_operand.vmem [shape: f32[32,128], index: 13, kind: input, shape index: {}]   ;;  %s5843_s14 = inlined_call_operand.vmem [shape: f32[1,128], index: 14, kind: input, shape index: {}]   ;;  %s5844_s15 = inlined_call_operand.vmem [shape: f32[2,20,32], index: 15, kind: output, shape index: {0}]   ;;  %s5845_s16 = inlined_call_operand.vmem [shape: f32[2,20,1], index: 16, kind: output, shape index: {1}]   ;;  %s5846_s17 = inlined_call_operand.vmem [shape: f32[2,4,20,32], index: 17, kind: output, shape index: {2}]   ;;  %s5847_s18 = inlined_call_operand.vmem [shape: s32[2,4,20,1], index: 18, kind: output, shape index: {3}]   ;;  %s5848_s19 = inlined_call_operand.hbm [shape: f32[2,1,128], index: 19, kind: output, shape index: {4}]  }
   0x1   :  { %5869 = sst [smem:[#allocation16_spill]] %s5829_s0 }
   0x2   :  { %5870 = sst [smem:[#allocation17_spill]] %s5830_s1 }
   0x3   :  { %5871 = sst [smem:[#allocation18_spill]] %s5831_s2 }
   0x4   :  { %5872 = sst [smem:[#allocation19_spill]] %s5832_s3 }
   0x5   :  { %5873 = sst [smem:[#allocation20_spill]] %s5835_s6 }
   0x6   :  { %5874 = sst [smem:[#allocation21_spill]] %s5836_s7 }
   0x7   :  { %5875 = sst [smem:[#allocation22_spill]] %s5837_s8 }
   0x8   :  { %5876 = sst [smem:[#allocation23_spill]] %s5838_s9 }
   0x9   :  { %5877 = sst [smem:[#allocation24_spill]] %s5839_s10 }
   0xa   :  { %5878 = sst [smem:[#allocation25_spill]] %s5840_s11 }
   0xb   :  { %5879 = sst [smem:[#allocation26_spill]] %s5841_s12 }
   0xc   :  { %5880 = sst [smem:[#allocation27_spill]] %s5842_s13 }
   0xd   :  { %5881 = sst [smem:[#allocation28_spill]] %s5843_s14 }
   0xe   :  { %5882 = sst [smem:[#allocation29_spill]] %s5848_s19 }
   0xf   :  { %25 = vsyncpa [#allocation3], 0 }
  0x10   :  { %27 = vsyncpa [#allocation3 + $0x1], 0  ;;  %s4630_s0 = smov 0   ;;  %s4632_s30 = smov 0  }
  0x11   :  { %s4634_s20 = smov 0   ;;  %s4636_s21 = smov 0  }
  0x12   :  { %s4638_s1 = smov 0   ;;  %s4640_s22 = smov 0  }
  0x13   :  { %s4642_s2 = smov 0   ;;  %s4644_s23 = smov 0  }
  0x14 LB: > { %5883 = sst [smem:[#allocation5_spill]] %s4486_s0  ;;  %s3997_s24 = sadd.s32 4294967295, %s4514_s23   ;;  %s4514_s23 = sphi %s4644_s23, %s33_s23   ;;  %s4510_s2 = sphi %s4642_s2, %s5948_s2   ;;  %s4506_s22 = sphi %s4640_s22, %s5944_s22   ;;  %s4502_s1 = sphi %s4638_s1, %s5943_s1   ;;  %s4498_s21 = sphi %s4636_s21, %s5942_s21   ;;  %s4494_s20 = sphi %s4634_s20, %s5941_s20   ;;  %s4490_s30 = sphi %s4632_s30, %s5947_s30   ;;  %s4486_s0 = sphi %s4630_s0, %s5946_s0  }
  0x15   : > { %5884 = sst [smem:[#allocation6_spill]] %s4494_s20  ;;  %s3998_s25 = sadd.s32 4294967294, %s4514_s23  }
  0x16   : > { %5885 = sst [smem:[#allocation7_spill]] %s4502_s1  ;;  %s42_s3 = sadd.s32 1, %s4506_s22 }
  0x17   : > { %5886 = sst [smem:[#allocation8_spill]] %s4506_s22  ;;  %p43_p0 = scmp.ge.s32.totalorder %s42_s3, 4 }
  0x18   : > { %5887 = sst [smem:[#allocation9_spill]] %s4510_s2  ;;  %s45_s26 = sadd.s32 1, %s4510_s2 }
  0x19   : > { %5888 = sst [smem:[#allocation10_spill]] %s4514_s23  ;;  %p505_p1 = scmp.ne.s32.totalorder %s4494_s20, %s4490_s30 }
  0x1a   : > { %p506_p2 = scmp.eq.s32.totalorder %s3997_s24, 7  ;;  %s5950_s3 = smov (%p43_p0, %s42_s3), 0 }
  0x1b   : > { %5889 = sst [smem:[#allocation11_spill]] %s5950_s3  ;;  %s5952_s26 = smov (!%p43_p0, %s45_s26), %s4510_s2 }
  0x1c   : > { %p4679_p3 = por %p506_p2, %p505_p1  ;;  %p511_p4 = scmp.ne.s32.totalorder %s4490_s30, %s4486_s0 }
  0x1d   : > { %p47_p5 = scmp.ge.s32.totalorder %s5952_s26, 2  ;;  %p512_p6 = scmp.eq.s32.totalorder %s3998_s25, 7 }
  0x1e   : > { %s5890_s27 = scalar_select %p4679_p3, 1, 0 }
  0x1f   : > { %p4001_p7 = scmp.ge.s32.totalorder %s4514_s23, 1  ;;  %p594_p8 = scmp.lt.s32.totalorder %s4514_s23, 9 }
  0x20   : > { %5891 = sst [smem:[#allocation12_spill]] %s5890_s27  ;;  %s5954_s26 = smov (%p47_p5, %s5952_s26), 0 }
  0x21   : > { %5892 = sst [smem:[#allocation13_spill]] %s5954_s26  ;;  %p4689_p9 = por %p512_p6, %p511_p4 }
  0x22   : > { %p595_p10 = pnand %p4001_p7, %p594_p8  ;;  %s492_s29 = ssub.s32 %s4510_s2, %s5954_s26 }
  0x23   : > { %s5893_s28 = scalar_select %p4689_p9, 1, 0 }
  0x24   : > { %s495_s24 = sadd.s32 1, %s4494_s20  ;;  %p493_p11 = scmp.eq.s32.totalorder %s492_s29, 0 }
  0x25   : > { %5894 = sst [smem:[#allocation14_spill]] %s5893_s28  ;;  %598 = sbr.rel (%p595_p10) target bundleno = 12490 (0x30ca), region = 80 }
  0x26   : > { %s4697_s3 = scalar_select %p493_p11, %s4494_s20, %s495_s24  }
  0x27   : > { %p691_p12 = scmp.lt.s32.totalorder (!%p595_p10), %s4502_s1, 1  ;;  %p722_p13 = scmp.lt.s32.totalorder (!%p595_p10), %s4498_s21, 3 }
  0x28   : > { %5895 = sst [smem:[#allocation15_spill]] %s4697_s3  ;;  %s5896_s11 = sld [smem:[#allocation25_spill]] (!%p595_p10) }
  0x29   : > { %s5897_s20 = sld [smem:[#allocation16_spill]] (!%p595_p10)  ;;  %s5898_s25 = sld [smem:[#allocation17_spill]] (!%p595_p10) }
  0x2a   : > { %s5899_s12 = sld [smem:[#allocation26_spill]] (!%p595_p10)  ;;  %s5900_s9 = sand.u32 (!%p595_p10), 1, %s4490_s30  }
  0x2b   : > { %p4011_p0 = scmp.ne.s32.totalorder (!%p595_p10), %s4498_s21, 0 }
  0x2c   : > { %s692_s22 = scalar_select %p691_p12, %s4502_s1, 1 }
  0x2d   : > { %s723_s0 = scalar_select %p722_p13, %s4498_s21, 3 }
  0x2e   : > { %s4267_s23 = smul.u32 24, %s692_s22  ;;  %s4051_s28 = sshll.u32 %s692_s22, 5  ;;  %vm745_vm0 = vcmask (!%p4011_p0), 261120   ;;  %vm748_vm1 = vcmask (!%p4011_p0), 257024   ;;  %vm753_vm2 = vcmask (!%p4011_p0), 7168   ;;  %vm756_vm3 = vcmask (!%p4011_p0), 3072  }
  0x2f   : > { %s4707_s29 = scalar_lea.vmem %s5896_s11, %s4051_s28  ;;  %s4006_s24 = sshll.u32 %s692_s22, 2 }
  0x30   : > { %s695_s27 = scalar_lea.vmem %s5897_s20, %s4267_s23  ;;  %s700_s10 = scalar_lea.vmem %s5898_s25, %s4267_s23 }
  0x31   : > { %s4718_s7 = scalar_lea.vmem %s5899_s12, %s4006_s24  ;;  %s4723_s19 = scalar_lea.vmem %s5844_s15, %s4267_s23  ;;  %v742_v0 = vld [vmem:[%s695_s27] sm:$0xff] (!%p4011_p0)  ;;  %v743_v1 = vld [vmem:[%s695_s27 + $0x8] sm:$0xff] (!%p4011_p0)  ;;  %v744_v2 = vld [vmem:[%s695_s27 + $0x10] sm:$0xf] (!%p4011_p0) }
  0x32   : > { %s4728_s11 = scalar_lea.vmem %s5845_s16, %s4267_s23  ;;  %s4268_s20 = smul.u32 3, %s723_s0  ;;  %746 = vst.msk [vmem:[%s4723_s19] sm:$0xff] (!%p4011_p0), %vm745_vm0, %v742_v0  ;;  %747 = vst.msk [vmem:[%s4723_s19 + $0x8] sm:$0xff] (!%p4011_p0), %vm745_vm0, %v743_v1  ;;  %v750_v3 = vld [vmem:[%s700_s10] sm:$0xff] (!%p4011_p0)  ;;  %v751_v4 = vld [vmem:[%s700_s10 + $0x8] sm:$0xff] (!%p4011_p0) }
  0x33   : > { %s4269_s2 = smul.u32 12, %s692_s22  ;;  %s4742_s12 = scalar_lea.vmem [#allocation2], %s5900_s9  ;;  %749 = vst.msk [vmem:[%s4723_s19 + $0x10] sm:$0xf] (!%p4011_p0), %vm748_vm1, %v744_v2  ;;  %v752_v5 = vld [vmem:[%s700_s10 + $0x10] sm:$0xf] (!%p4011_p0) }
  0x34   : > { %741 = sbr.rel (%p4011_p0) target bundleno = 59 (0x3b), region = 84  ;;  %754 = vst.msk [vmem:[%s4728_s11] sm:$0xff] (!%p4011_p0), %vm753_vm2, %v750_v3  ;;  %755 = vst.msk [vmem:[%s4728_s11 + $0x8] sm:$0xff] (!%p4011_p0), %vm753_vm2, %v751_v4 }
  0x35   : > { %s726_s3 = sadd.s32 %s4269_s2, %s4268_s20  ;;  %757 = vst.msk [vmem:[%s4728_s11 + $0x10] sm:$0xf] (!%p4011_p0), %vm756_vm3, %v752_v5 }
  0x36   : > { %s4009_s13 = sshll.u32 %s726_s3, 3 }
  0x37   : > { %s4733_s8 = scalar_lea.vmem %s5846_s17, %s4009_s13  ;;  %s4738_s6 = scalar_lea.vmem %s5847_s18, %s4009_s13 }
  0x3b PF: > { %s5901_s23 = sld [smem:[#allocation19_spill]]  ;;  %v4516_v9 = vmov 0.0|0.0   ;;  %vm5866_vm4 = vmmov 0   ;;  %v4518_v12 = vmov 0.0   ;;  %s5903_s25 = sld [smem:[#allocation18_spill]]  ;;  %v758_v16 = vld [vmem:[%s4723_s19] sm:$0xff] }
  0x3c   : > { %4224 = vmatprep.subr.bf16.mxu0 %v4516_v9  ;;  %4263 = vmatprep.subr.bf16.mxu1 %v4516_v9  ;;  %vm5865_vm5 = vcmask 261120   ;;  %v4779_v17 = vld [vmem:[%s4723_s19 + $0x10] sm:$0xf]  ;;  %v759_v19 = vld [vmem:[%s4723_s19 + $0x8] sm:$0xff]  ;;  %v761_v24 = vld [vmem:[%s4728_s11] sm:$0xff]  ;;  %v4519_v26 = vmov 0  }
  0x3d   : > { %4110 = vmatprep.mubr.msk.f32.mxu0 %vm5866_vm4, %v4518_v12  ;;  %4116 = vmatprep.mubr.msk.f32.mxu1 %vm5866_vm4, %v4518_v12  ;;  %v4237_v20 = vpack.c.bf16 %v759_v19, %v758_v16  ;;  %v763_v25 = vld [vmem:[%s4728_s11 + $0x10] sm:$0xf]  ;;  %v762_v27 = vld [vmem:[%s4728_s11 + $0x8] sm:$0xff]  ;;  %v4012_v28 = vld [vmem:[%s5833_s4] ss:$0 sm:$0xff]  ;;  %vm961_vm6 = vcmask 31744  }
  0x3e   : > { %4354 = vset.pattern.permute.xlu0 %v4519_v26  ;;  %4355 = vset.pattern.permute.xlu1 %v4519_v26  ;;  %vm964_vm7 = vcmask 27648   ;;  %vm1038_vm8 = vcmask 1043456   ;;  %s5910_s9 = sld [smem:[#allocation20_spill]]  ;;  %s4523_s0 = smov 64  }
  0x3f   : > { %1001 = vperm.xlu0 %4354, %v761_v24   ;;  %1011 = vperm.xlu1 %4355, %v763_v25   ;;  %s4524_s22 = smov 96   ;;  %s5916_s24 = sld [smem:[#allocation21_spill]] }
  0x40   : > { %s5923_s20 = sld [smem:[#allocation24_spill]]  ;;  %p4046_p1 = scmp.ne.s32.totalorder %s4498_s21, 3 }
  0x41   : > { %s5902_s26 = smov %s5901_s23  ;;  %v764_v6 = vld [vmem:[%s5901_s23] sm:$0xff]  ;;  %v866_v15 = vld [vmem:[%s5903_s25 + $0x8] sm:$0xff]  ;;  %v867_v21 = vld [vmem:[%s5903_s25 + $0x10] sm:$0xff]  ;;  %s4525_s23 = smov 32  }
  0x42   : > { %v765_v7 = vld [vmem:[%s5902_s26 + $0x8] sm:$0xff]  ;;  %v766_v8 = vld [vmem:[%s5902_s26 + $0x10] sm:$0xff]  ;;  %v767_v11 = vld [vmem:[%s5902_s26 + $0x18] sm:$0xff]  ;;  %s5931_s14 = sld [smem:[#allocation28_spill]] (!%p4046_p1) }
  0x43   : > { %v4225_v10 = vpack.c.bf16 %v765_v7, %v764_v6  ;;  %v4228_v13 = vpack.c.bf16 %v767_v11, %v766_v8  ;;  %v865_v14 = vld [vmem:[%s5903_s25] sm:$0xff]  ;;  %v868_v22 = vld [vmem:[%s5903_s25 + $0x18] sm:$0xff]  ;;  %1006 = vperm.xlu0 %4354, %v762_v27  }
  0x44   : > { %v4231_v18 = vpack.c.bf16 %v866_v15, %v865_v14  ;;  %v4234_v23 = vpack.c.bf16 %v868_v22, %v867_v21 }
  0x45   : > { %4226 = vmatpush3.bf16.msra.mxu0 %v4225_v10  ;;  %4265 = vmatpush3.bf16.msra.mxu1 %v4225_v10 }
  0x46   : > { %4227 = vmatprep.subr.bf16.mxu0 %v4516_v9  ;;  %4264 = vmatprep.subr.bf16.mxu1 %v4516_v9 }
  0x49   : > { %4229 = vmatpush3.bf16.msra.mxu0 %v4228_v13  ;;  %4266 = vmatpush3.bf16.msra.mxu1 %v4228_v13 }
  0x4a   : > { %4230 = vmatprep.subr.bf16.mxu1 %v4516_v9  ;;  %4236 = vmatprep.subr.bf16.mxu0 %v4516_v9 }
  0x4c   : > { %4111 = vmatmul.mubr.msk.f32.vlgmr.msra.gmra.mrb[0].mxu0 %vm5865_vm5, %v758_v16  ;;  %4117 = vmatmul.mubr.msk.f32.vlgmr.msra.gmra.mrb[0].mxu1 %vm5865_vm5, %v4779_v17 }
  0x4d   : > { %4113 = vmatprep.mubr.msk.f32.mxu0 %vm5866_vm4, %v4518_v12  ;;  %4232 = vmatpush3.bf16.msra.mxu1 %v4231_v18 }
  0x4e   : > { %4233 = vmatprep.subr.bf16.mxu1 %v4516_v9  ;;  %4127 = vmatprep.mubr.msk.f32.mxu1 %vm5866_vm4, %v4518_v12 }
  0x4f   : > { %4238 = vmatpush3.bf16.msra.mxu0 %v4237_v20 }
  0x50   : > { %4114 = vmatmul.mubr.msk.f32.gmra.mrb[2].mxu0 %vm5865_vm5, %v759_v19  ;;  %4140 = vmatprep.subr.mxu0 %v4518_v12 }
  0x51   : > { %4142 = vmatprep.mubr.msk.f32.mxu0 %vm5866_vm4, %v4518_v12  ;;  %4235 = vmatpush3.bf16.msra.mxu1 %v4234_v23 }
  0x52   : > { %4239 = vmatprep.subr.bf16.mxu1 %v4516_v9 }
  0x53   : > { %4141 = vmatpush3.msk.msra.mxu0 %vm1038_vm8, %v4779_v17 }
  0x54   : > { %4245 = vmatprep.subr.bf16.mxu0 %v4516_v9 }
  0xbe   : > { %v1002_v16 = vpop.permute.xlu0 %1001  ;;  %v1012_v24 = vpop.permute.xlu1 %1011 }
  0xc2   : > { %v1007_v23 = vpop.permute.xlu0 %1006 }
 0x11f   : > { %v851_v29 = vpop.f32.mrb[0].mxu0  ;;  %v861_v30 = vpop.f32.mrb[0].mxu1 }
 0x120   : > { %v852_v31 = vadd.f32 %v4012_v28, %v851_v29  ;;  %v4112_v32 = vpop.f32.mrb[1].mxu0  ;;  %v4118_v33 = vpop.f32.mrb[1].mxu1  ;;  %v862_v37 = vadd.f32 %v4012_v28, %v861_v30 }
 0x121   : > { %v1017_v33 = vlaneseq }
 0x122   : > { %4128 = vmatmul.mubr.msk.f32.vlgmr.msra.gmra.mrb[2].mxu1 %vm5865_vm5, %v852_v31 }
 0x123   : > { %v856_v34 = vpop.f32.mrb[2].mxu0  ;;  %4130 = vmatprep.mubr.msk.f32.mxu1 %vm5866_vm4, %v4518_v12 }
 0x124   : > { %v857_v35 = vadd.f32 %v4012_v28, %v856_v34  ;;  %v4115_v36 = vpop.f32.mrb[3].mxu0 }
 0x126   : > { %4131 = vmatmul.mubr.msk.f32.gmra.mrb[4].mxu1 %vm5865_vm5, %v857_v35 }
 0x127   : > { %4133 = vmatprep.mubr.msk.f32.mxu1 %vm5866_vm4, %v4518_v12 }
 0x12a   : > { %4134 = vmatmul.mubr.msk.f32.gmra.mrb[6].mxu1 %vm5865_vm5, %v862_v37  ;;  %v1018_v37 = vshrl.u32 %v1017_v33, 7 }
 0x12b   : > { %4159 = vmatprep.mubr.msk.f32.mxu1 %vm5866_vm4, %v4518_v12 }
 0x12c   : > { %v1023_v17 = vmul.u32 4, %v1018_v37 }
 0x1f5   : > { %v944_v38 = vpop.f32.mrb[2].mxu1 }
 0x1f6   : > { %v4129_v39 = vpop.f32.mrb[3].mxu1  ;;  %v958_v40 = vmul.f32 0.17677669, %v944_v38 }
 0x1f8   : > { %v962_v44 = vsel %vm961_vm6, %v958_v40, -inf }
 0x1f9   : > { %v949_v41 = vpop.f32.mrb[4].mxu1 }
 0x1fa   : > { %v959_v42 = vmul.f32 0.17677669, %v949_v41  ;;  %v4132_v43 = vpop.f32.mrb[5].mxu1  ;;  %v1019_v41 = vadd.s32 8, %v1018_v37 }
 0x1fc   : > { %v963_v45 = vsel %vm961_vm6, %v959_v42, -inf }
 0x1fd   : > { %v966_v46 = vmax.f32 %v962_v44, %v963_v45  ;;  %v954_v47 = vpop.f32.mrb[6].mxu1  ;;  %v1024_v45 = vmul.u32 4, %v1019_v41 }
 0x1fe   : > { %v960_v48 = vmul.f32 0.17677669, %v954_v47  ;;  %v4135_v49 = vpop.f32.mrb[7].mxu1 }
 0x200   : > { %v965_v50 = vsel %vm964_vm7, %v960_v48, -inf }
 0x201   : > { %v967_v51 = vmax.f32 %v966_v46, %v965_v50  ;;  %v4842_v46 = vand.u32 127, %v1017_v33 }
 0x203   : > { %v968_v52 = vrot.slane %v967_v51, 4  ;;  %v4845_v50 = vadd.s32 %v1024_v45, %v4842_v46 }
 0x205   : > { %v969_v53 = vmax.f32 %v967_v51, %v968_v52  ;;  %v4848_v51 = vadd.s32 %v1023_v17, %v4842_v46 }
 0x207   : > { %v970_v54 = vrot.slane %v969_v53, 2 }
 0x209   : > { %v971_v55 = vmax.f32 %v969_v53, %v970_v54 }
 0x20b   : > { %v972_v56 = vrot.slane %v971_v55, 1 }
 0x20d   : > { %v973_v57 = vmax.f32 %v971_v55, %v972_v56 }
 0x20f   : > { %v975_v58 = vsub.f32 %v959_v42, %v973_v57  ;;  %v976_v59 = vsub.f32 %v960_v48, %v973_v57  ;;  %v974_v60 = vsub.f32 %v958_v40, %v973_v57  ;;  %v1020_v42 = vadd.s32 16, %v1018_v37 }
 0x211   : > { %v979_v61 = vmul.f32 1.442695, %v975_v58  ;;  %v981_v62 = vmul.f32 1.442695, %v976_v59  ;;  %v977_v63 = vmul.f32 1.442695, %v974_v60 }
 0x212   : > { %v1025_v47 = vmul.u32 4, %v1020_v42 }
 0x213   : > { %4384 = vpow2.f32 %v979_v61 }
 0x214   : > { %4386 = vpow2.f32 %v981_v62  ;;  %v4851_v52 = vadd.s32 %v1025_v47, %v4842_v46 }
 0x215   : > { %4388 = vpow2.f32 %v977_v63 }
 0x21d   : > { %v4385_v0 = vpop.eup %4384 }
 0x21e   : > { %v4387_v1 = vpop.eup %4386  ;;  %v984_v2 = vsel %vm961_vm6, %v4385_v0, 0.0 }
 0x21f   : > { %v4389_v3 = vpop.eup %4388  ;;  %v986_v6 = vsel %vm964_vm7, %v4387_v1, 0.0 }
 0x220   : > { %v983_v4 = vsel %vm961_vm6, %v4389_v3, 0.0 }
 0x221   : > { %v985_v5 = vadd.f32 %v984_v2, %v983_v4 }
 0x223   : > { %v987_v7 = vadd.f32 %v986_v6, %v985_v5 }
 0x225   : > { %v988_v8 = vrot.slane %v987_v7, 4 }
 0x227   : > { %v989_v10 = vadd.f32 %v988_v8, %v987_v7 }
 0x229   : > { %v990_v11 = vrot.slane %v989_v10, 2 }
 0x22b   : > { %v991_v13 = vadd.f32 %v990_v11, %v989_v10 }
 0x22d   : > { %v992_v14 = vrot.slane %v991_v13, 1 }
 0x22f   : > { %v993_v15 = vadd.f32 %v992_v14, %v991_v13 }
 0x231   : > { %4390 = vlog2.f32 %v993_v15 }
 0x23b   : > { %v4391_v18 = vpop.eup %4390 }
 0x23c   : > { %v995_v19 = vmul.f32 0.6931472, %v4391_v18 }
 0x23e   : > { %v996_v20 = vsub.f32 %v974_v60, %v995_v19  ;;  %v997_v21 = vsub.f32 %v975_v58, %v995_v19  ;;  %v998_v22 = vsub.f32 %v976_v59, %v995_v19 }
 0x240   : > { %v4826_v25 = vadd.f32 %v1002_v16, %v996_v20  ;;  %v4828_v27 = vadd.f32 %v1007_v23, %v997_v21  ;;  %v4830_v28 = vadd.f32 %v1012_v24, %v998_v22 }
 0x242   : > { %v1032_v29 = vsel %vm961_vm6, %v4828_v27, -inf  ;;  %v1029_v30 = vsel %vm961_vm6, %v4826_v25, -inf  ;;  %v1035_v31 = vsel %vm964_vm7, %v4830_v28, -inf }
 0x243   : > { %1033 = vmax.xlane.f32.xlu0 %v1032_v29  ;;  %1030 = vmax.xlane.f32.xlu1 %v1029_v30 }
 0x247   : > { %1036 = vmax.xlane.f32.xlu0 %v1035_v31 }
 0x2d0   : > { %v1034_v32 = vpop.xlane.xlu0 %1033  ;;  %v1031_v34 = vpop.xlane.xlu1 %1030 }
 0x2d1   : > { %v1040_v35 = vmax.f32 %v1031_v34, %v1034_v32 }
 0x2d4   : > { %v1037_v36 = vpop.xlane.xlu0 %1036 }
 0x2d5   : > { %v1039_v38 = vsel %vm1038_vm8, %v1037_v36, -inf }
 0x2d6   : > { %v1041_v39 = vmax.f32 %v1040_v35, %v1039_v38 }
 0x2d8   : > { %v1042_v40 = vrot.slane %v1041_v39, 4 }
 0x2da   : > { %v1043_v43 = vmax.f32 %v1041_v39, %v1042_v40 }
 0x2dc   : > { %v1044_v44 = vrot.slane %v1043_v43, 2 }
 0x2de   : > { %v1045_v48 = vmax.f32 %v1043_v43, %v1044_v44 }
 0x2e0   : > { %v1046_v49 = vrot.slane %v1045_v48, 1 }
 0x2e2   : > { %v4853_v53 = vmax.f32 %v1045_v48, %v1046_v49 }
 0x2e4   : > { %vm1049_vm9 = vcmp.ge.f32.partialorder %v4828_v27, %v4853_v53  ;;  %vm1048_vm10 = vcmp.ge.f32.partialorder %v4826_v25, %v4853_v53  ;;  %vm1050_vm11 = vcmp.ge.f32.partialorder %v4830_v28, %v4853_v53 }
 0x2e5   : > { %v1052_v54 = vsel %vm1049_vm9, %v4845_v50, 80  ;;  %v1051_v55 = vsel %vm1048_vm10, %v4848_v51, 80  ;;  %v1053_v56 = vsel %vm1050_vm11, %v4851_v52, 80 }
 0x2e6   : > { %v1069_v57 = vsel %vm961_vm6, %v1052_v54, 2147483647  ;;  %v1054_v58 = vsel %vm961_vm6, %v1051_v55, 2147483647  ;;  %v1084_v59 = vsel %vm964_vm7, %v1053_v56, 2147483647 }
 0x2e7   : > { %v1071_v60 = vshra.s32 %v1069_v57, 16  ;;  %v1056_v61 = vshra.s32 %v1054_v58, 16  ;;  %v1086_v0 = vshra.s32 %v1084_v59, 16  ;;  %v1070_v2 = vand.u32 65535, %v1069_v57 }
 0x2e8   : > { %v1055_v3 = vand.u32 65535, %v1054_v58  ;;  %v1085_v8 = vand.u32 65535, %v1084_v59 }
 0x2e9   : > { %v1073_v62 = vcvt.s32.f32 %v1071_v60  ;;  %v1058_v63 = vcvt.s32.f32 %v1056_v61  ;;  %v1088_v1 = vcvt.s32.f32 %v1086_v0  ;;  %v1072_v6 = vcvt.s32.f32 %v1070_v2 }
 0x2ea   : > { %v1057_v7 = vcvt.s32.f32 %v1055_v3  ;;  %v1087_v14 = vcvt.s32.f32 %v1085_v8 }
 0x2eb   : > { %1074 = vmin.xlane.f32.xlu0 %v1073_v62  ;;  %1059 = vmin.xlane.f32.xlu1 %v1058_v63 }
 0x2ef   : > { %1089 = vmin.xlane.f32.xlu1 %v1088_v1 }
 0x378   : > { %v1075_v4 = vpop.xlane.xlu0 %1074  ;;  %v1060_v5 = vpop.xlane.xlu1 %1059 }
 0x379   : > { %vm1076_vm12 = vcmp.eq.f32.partialorder %v1073_v62, %v1075_v4  ;;  %vm1061_vm13 = vcmp.eq.f32.partialorder %v1058_v63, %v1060_v5  ;;  %v1081_v16 = vcvt.f32.s32 %v1075_v4  ;;  %v1066_v18 = vcvt.f32.s32 %v1060_v5 }
 0x37a   : > { %v1077_v10 = vsel %vm1076_vm12, %v1072_v6, inf  ;;  %v1062_v11 = vsel %vm1061_vm13, %v1057_v7, inf }
 0x37b   : > { %1078 = vmin.xlane.f32.xlu1 %v1077_v10  ;;  %1063 = vmin.xlane.f32.xlu0 %v1062_v11  ;;  %v1082_v19 = vshll.u32 %v1081_v16, 16  ;;  %v1067_v22 = vshll.u32 %v1066_v18, 16 }
 0x37c   : > { %v1090_v13 = vpop.xlane.xlu1 %1089 }
 0x37d   : > { %vm1091_vm14 = vcmp.eq.f32.partialorder %v1088_v1, %v1090_v13  ;;  %v1096_v23 = vcvt.f32.s32 %v1090_v13 }
 0x37e   : > { %v1092_v15 = vsel %vm1091_vm14, %v1087_v14, inf }
 0x37f   : > { %1093 = vmin.xlane.f32.xlu0 %v1092_v15  ;;  %v1097_v33 = vshll.u32 %v1096_v23, 16 }
 0x408   : > { %v1079_v20 = vpop.xlane.xlu1 %1078  ;;  %v1064_v21 = vpop.xlane.xlu0 %1063 }
 0x409   : > { %v1080_v24 = vcvt.f32.s32 %v1079_v20  ;;  %v1065_v29 = vcvt.f32.s32 %v1064_v21 }
 0x40b   : > { %v1083_v30 = vadd.s32 %v1082_v19, %v1080_v24  ;;  %v1068_v31 = vadd.s32 %v1067_v22, %v1065_v29 }
 0x40c   : > { %v1094_v32 = vpop.xlane.xlu0 %1093 }
 0x40d   : > { %v1095_v34 = vcvt.f32.s32 %v1094_v32  ;;  %vm1100_vm15 = vcmp.lt.s32.totalorder %v1068_v31, %v1083_v30 }
 0x40e   : > { %v1101_v36 = vsel %vm1100_vm15, %v1068_v31, %v1083_v30 }
 0x40f   : > { %v1098_v35 = vadd.s32 %v1097_v33, %v1095_v34 }
 0x411   : > { %v1099_v37 = vsel %vm1038_vm8, %v1098_v35, 2147483647 }
 0x412   : > { %vm1102_vm0 = vcmp.lt.s32.totalorder %v1101_v36, %v1099_v37 }
 0x413   : > { %v1103_v38 = vsel %vm1102_vm0, %v1101_v36, %v1099_v37 }
 0x414   : > { %v1104_v39 = vrot.slane %v1103_v38, 4 }
 0x416   : > { %vm1105_vm1 = vcmp.lt.s32.totalorder %v1103_v38, %v1104_v39 }
 0x417   : > { %v1106_v40 = vsel %vm1105_vm1, %v1103_v38, %v1104_v39 }
 0x418   : > { %v1107_v41 = vrot.slane %v1106_v40, 2 }
 0x41a   : > { %vm1108_vm2 = vcmp.lt.s32.totalorder %v1106_v40, %v1107_v41 }
 0x41b   : > { %v1109_v42 = vsel %vm1108_vm2, %v1106_v40, %v1107_v41 }
 0x41c   : > { %v1110_v43 = vrot.slane %v1109_v42, 1 }
 0x41e   : > { %vm1111_vm3 = vcmp.lt.s32.totalorder %v1109_v42, %v1110_v43 }
 0x41f   : > { %v4868_v44 = vsel %vm1111_vm3, %v1109_v42, %v1110_v43 }
 0x420   : > { %vm1114_vm9 = vcmp.eq.s32.totalorder %v4845_v50, %v4868_v44  ;;  %vm1113_vm10 = vcmp.eq.s32.totalorder %v4848_v51, %v4868_v44  ;;  %vm1115_vm11 = vcmp.eq.s32.totalorder %v4851_v52, %v4868_v44 }
 0x421   : > { %v4877_v45 = vsel %vm1114_vm9, -3e+38, %v4828_v27  ;;  %v4880_v17 = vsel %vm1113_vm10, -3e+38, %v4826_v25  ;;  %v4887_v49 = vsel %vm1115_vm11, -3e+38, %v4830_v28 }
 0x422   : > { %v1122_v47 = vsel %vm961_vm6, %v4877_v45, -inf  ;;  %v1119_v48 = vsel %vm961_vm6, %v4880_v17, -inf  ;;  %v1125_v54 = vsel %vm964_vm7, %v4887_v49, -inf }
 0x423   : > { %1123 = vmax.xlane.f32.xlu0 %v1122_v47  ;;  %1120 = vmax.xlane.f32.xlu1 %v1119_v48 }
 0x427   : > { %1126 = vmax.xlane.f32.xlu1 %v1125_v54 }
 0x4b0   : > { %v1121_v27 = vpop.xlane.xlu1 %1120  ;;  %v1124_v55 = vpop.xlane.xlu0 %1123 }
 0x4b1   : > { %v1129_v56 = vmax.f32 %v1121_v27, %v1124_v55 }
 0x4b4   : > { %v1127_v25 = vpop.xlane.xlu1 %1126 }
 0x4b5   : > { %v1128_v57 = vsel %vm1038_vm8, %v1127_v25, -inf }
 0x4b6   : > { %v1130_v58 = vmax.f32 %v1129_v56, %v1128_v57 }
 0x4b8   : > { %v1131_v59 = vrot.slane %v1130_v58, 4 }
 0x4ba   : > { %v1132_v60 = vmax.f32 %v1130_v58, %v1131_v59 }
 0x4bc   : > { %v1133_v61 = vrot.slane %v1132_v60, 2 }
 0x4be   : > { %v1134_v62 = vmax.f32 %v1132_v60, %v1133_v61 }
 0x4c0   : > { %v1135_v63 = vrot.slane %v1134_v62, 1 }
 0x4c2   : > { %v4892_v0 = vmax.f32 %v1134_v62, %v1135_v63 }
 0x4c4   : > { %vm1138_vm12 = vcmp.ge.f32.partialorder %v4877_v45, %v4892_v0  ;;  %vm1137_vm13 = vcmp.ge.f32.partialorder %v4880_v17, %v4892_v0  ;;  %vm1139_vm14 = vcmp.ge.f32.partialorder %v4887_v49, %v4892_v0 }
 0x4c5   : > { %v1141_v28 = vsel %vm1138_vm12, %v4845_v50, 80  ;;  %v1140_v1 = vsel %vm1137_vm13, %v4848_v51, 80  ;;  %v1142_v2 = vsel %vm1139_vm14, %v4851_v52, 80 }
 0x4c6   : > { %v1158_v3 = vsel %vm961_vm6, %v1141_v28, 2147483647  ;;  %v1143_v4 = vsel %vm961_vm6, %v1140_v1, 2147483647  ;;  %v1173_v5 = vsel %vm964_vm7, %v1142_v2, 2147483647 }
 0x4c7   : > { %v1160_v6 = vshra.s32 %v1158_v3, 16  ;;  %v1145_v7 = vshra.s32 %v1143_v4, 16  ;;  %v1175_v11 = vshra.s32 %v1173_v5, 16  ;;  %v1159_v14 = vand.u32 65535, %v1158_v3 }
 0x4c8   : > { %v1144_v15 = vand.u32 65535, %v1143_v4  ;;  %v1174_v21 = vand.u32 65535, %v1173_v5 }
 0x4c9   : > { %v1162_v8 = vcvt.s32.f32 %v1160_v6  ;;  %v1147_v10 = vcvt.s32.f32 %v1145_v7  ;;  %v1177_v13 = vcvt.s32.f32 %v1175_v11  ;;  %v1161_v19 = vcvt.s32.f32 %v1159_v14 }
 0x4ca   : > { %v1146_v20 = vcvt.s32.f32 %v1144_v15  ;;  %v1176_v29 = vcvt.s32.f32 %v1174_v21 }
 0x4cb   : > { %1163 = vmin.xlane.f32.xlu1 %v1162_v8  ;;  %1148 = vmin.xlane.f32.xlu0 %v1147_v10 }
 0x4cf   : > { %1178 = vmin.xlane.f32.xlu0 %v1177_v13 }
 0x558   : > { %v1164_v16 = vpop.xlane.xlu1 %1163  ;;  %v1149_v18 = vpop.xlane.xlu0 %1148 }
 0x559   : > { %vm1165_vm15 = vcmp.eq.f32.partialorder %v1162_v8, %v1164_v16  ;;  %vm1150_vm0 = vcmp.eq.f32.partialorder %v1147_v10, %v1149_v18  ;;  %v1170_v31 = vcvt.f32.s32 %v1164_v16  ;;  %v1155_v32 = vcvt.f32.s32 %v1149_v18 }
 0x55a   : > { %v1166_v22 = vsel %vm1165_vm15, %v1161_v19, inf  ;;  %v1151_v23 = vsel %vm1150_vm0, %v1146_v20, inf  ;;  %vm2804_vm15 = vcmask 1040384   ;;  %vm2806_vm0 = vcmask 1041408  }
 0x55b   : > { %1167 = vmin.xlane.f32.xlu0 %v1166_v22  ;;  %1152 = vmin.xlane.f32.xlu1 %v1151_v23  ;;  %v1171_v33 = vshll.u32 %v1170_v31, 16  ;;  %v1156_v36 = vshll.u32 %v1155_v32, 16  ;;  %v2805_v14 = vsel %vm2804_vm15, %v4853_v53, %v4892_v0 }
 0x55c   : > { %v1179_v24 = vpop.xlane.xlu0 %1178 }
 0x55d   : > { %vm1180_vm1 = vcmp.eq.f32.partialorder %v1177_v13, %v1179_v24  ;;  %v1185_v37 = vcvt.f32.s32 %v1179_v24 }
 0x55e   : > { %v1181_v30 = vsel %vm1180_vm1, %v1176_v29, inf }
 0x55f   : > { %1182 = vmin.xlane.f32.xlu1 %v1181_v30  ;;  %v1186_v43 = vshll.u32 %v1185_v37, 16 }
 0x5e8   : > { %v1168_v34 = vpop.xlane.xlu0 %1167  ;;  %v1153_v35 = vpop.xlane.xlu1 %1152 }
 0x5e9   : > { %v1169_v38 = vcvt.f32.s32 %v1168_v34  ;;  %v1154_v39 = vcvt.f32.s32 %v1153_v35 }
 0x5eb   : > { %v1172_v40 = vadd.s32 %v1171_v33, %v1169_v38  ;;  %v1157_v41 = vadd.s32 %v1156_v36, %v1154_v39 }
 0x5ec   : > { %v1183_v42 = vpop.xlane.xlu1 %1182 }
 0x5ed   : > { %v1184_v47 = vcvt.f32.s32 %v1183_v42  ;;  %vm1189_vm2 = vcmp.lt.s32.totalorder %v1157_v41, %v1172_v40 }
 0x5ee   : > { %v1190_v54 = vsel %vm1189_vm2, %v1157_v41, %v1172_v40 }
 0x5ef   : > { %v1187_v48 = vadd.s32 %v1186_v43, %v1184_v47 }
 0x5f1   : > { %v1188_v27 = vsel %vm1038_vm8, %v1187_v48, 2147483647 }
 0x5f2   : > { %vm1191_vm3 = vcmp.lt.s32.totalorder %v1190_v54, %v1188_v27 }
 0x5f3   : > { %v1192_v55 = vsel %vm1191_vm3, %v1190_v54, %v1188_v27 }
 0x5f4   : > { %v1193_v56 = vrot.slane %v1192_v55, 4 }
 0x5f6   : > { %vm1194_vm9 = vcmp.lt.s32.totalorder %v1192_v55, %v1193_v56 }
 0x5f7   : > { %v1195_v25 = vsel %vm1194_vm9, %v1192_v55, %v1193_v56 }
 0x5f8   : > { %v1196_v57 = vrot.slane %v1195_v25, 2 }
 0x5fa   : > { %vm1197_vm10 = vcmp.lt.s32.totalorder %v1195_v25, %v1196_v57 }
 0x5fb   : > { %v1198_v58 = vsel %vm1197_vm10, %v1195_v25, %v1196_v57 }
 0x5fc   : > { %v1199_v59 = vrot.slane %v1198_v58, 1 }
 0x5fe   : > { %vm1200_vm11 = vcmp.lt.s32.totalorder %v1198_v58, %v1199_v59 }
 0x5ff   : > { %v4907_v60 = vsel %vm1200_vm11, %v1198_v58, %v1199_v59 }
 0x600   : > { %vm1203_vm12 = vcmp.eq.s32.totalorder %v4845_v50, %v4907_v60  ;;  %vm1202_vm13 = vcmp.eq.s32.totalorder %v4848_v51, %v4907_v60  ;;  %vm1204_vm14 = vcmp.eq.s32.totalorder %v4851_v52, %v4907_v60 }
 0x601   : > { %v4916_v61 = vsel %vm1203_vm12, -3e+38, %v4877_v45  ;;  %v4919_v62 = vsel %vm1202_vm13, -3e+38, %v4880_v17  ;;  %v4926_v1 = vsel %vm1204_vm14, -3e+38, %v4887_v49 }
 0x602   : > { %v1211_v63 = vsel %vm961_vm6, %v4916_v61, -inf  ;;  %v1208_v28 = vsel %vm961_vm6, %v4919_v62, -inf  ;;  %v1214_v2 = vsel %vm964_vm7, %v4926_v1, -inf }
 0x603   : > { %1212 = vmax.xlane.f32.xlu1 %v1211_v63  ;;  %1209 = vmax.xlane.f32.xlu0 %v1208_v28 }
 0x607   : > { %1215 = vmax.xlane.f32.xlu0 %v1214_v2 }
 0x690   : > { %v1210_v45 = vpop.xlane.xlu0 %1209  ;;  %v1213_v3 = vpop.xlane.xlu1 %1212 }
 0x691   : > { %v1218_v4 = vmax.f32 %v1210_v45, %v1213_v3 }
 0x694   : > { %v1216_v17 = vpop.xlane.xlu0 %1215 }
 0x695   : > { %v1217_v5 = vsel %vm1038_vm8, %v1216_v17, -inf }
 0x696   : > { %v1219_v6 = vmax.f32 %v1218_v4, %v1217_v5 }
 0x698   : > { %v1220_v7 = vrot.slane %v1219_v6, 4 }
 0x69a   : > { %v1221_v8 = vmax.f32 %v1219_v6, %v1220_v7 }
 0x69c   : > { %v1222_v10 = vrot.slane %v1221_v8, 2 }
 0x69e   : > { %v1223_v11 = vmax.f32 %v1221_v8, %v1222_v10 }
 0x6a0   : > { %v1224_v13 = vrot.slane %v1223_v11, 1 }
 0x6a2   : > { %v1225_v49 = vmax.f32 %v1223_v11, %v1224_v13  ;;  %v2827_v11 = vsel %vm2804_vm15, %v4868_v44, %v4907_v60 }
 0x6a4   : > { %v4935_v15 = vsel %vm2806_vm0, %v2805_v14, %v1225_v49  ;;  %vm1227_vm1 = vcmp.ge.f32.partialorder %v4916_v61, %v1225_v49  ;;  %vm1226_vm2 = vcmp.ge.f32.partialorder %v4919_v62, %v1225_v49  ;;  %vm1228_vm3 = vcmp.ge.f32.partialorder %v4926_v1, %v1225_v49 }
 0x6a5   : > { %v1230_v16 = vsel %vm1227_vm1, %v4845_v50, 80  ;;  %v1229_v18 = vsel %vm1226_vm2, %v4848_v51, 80  ;;  %v1231_v19 = vsel %vm1228_vm3, %v4851_v52, 80 }
 0x6a6   : > { %v1247_v20 = vsel %vm961_vm6, %v1230_v16, 2147483647  ;;  %v1232_v21 = vsel %vm961_vm6, %v1229_v18, 2147483647  ;;  %v1262_v53 = vsel %vm964_vm7, %v1231_v19, 2147483647 }
 0x6a7   : > { %v1249_v0 = vshra.s32 %v1247_v20, 16  ;;  %v1234_v22 = vshra.s32 %v1232_v21, 16  ;;  %v1264_v29 = vshra.s32 %v1262_v53, 16  ;;  %v1248_v31 = vand.u32 65535, %v1247_v20 }
 0x6a8   : > { %v1233_v32 = vand.u32 65535, %v1232_v21  ;;  %v1263_v37 = vand.u32 65535, %v1262_v53 }
 0x6a9   : > { %v1251_v23 = vcvt.s32.f32 %v1249_v0  ;;  %v1236_v24 = vcvt.s32.f32 %v1234_v22  ;;  %v1266_v30 = vcvt.s32.f32 %v1264_v29  ;;  %v1250_v35 = vcvt.s32.f32 %v1248_v31 }
 0x6aa   : > { %v1235_v36 = vcvt.s32.f32 %v1233_v32  ;;  %v1265_v41 = vcvt.s32.f32 %v1263_v37 }
 0x6ab   : > { %1252 = vmin.xlane.f32.xlu0 %v1251_v23  ;;  %1237 = vmin.xlane.f32.xlu1 %v1236_v24 }
 0x6af   : > { %1267 = vmin.xlane.f32.xlu1 %v1266_v30 }
 0x738   : > { %v1253_v33 = vpop.xlane.xlu0 %1252  ;;  %v1238_v34 = vpop.xlane.xlu1 %1237 }
 0x739   : > { %vm1254_vm9 = vcmp.eq.f32.partialorder %v1251_v23, %v1253_v33  ;;  %vm1239_vm10 = vcmp.eq.f32.partialorder %v1236_v24, %v1238_v34  ;;  %v1259_v43 = vcvt.f32.s32 %v1253_v33  ;;  %v1244_v47 = vcvt.f32.s32 %v1238_v34 }
 0x73a   : > { %v1255_v38 = vsel %vm1254_vm9, %v1250_v35, inf  ;;  %v1240_v39 = vsel %vm1239_vm10, %v1235_v36, inf }
 0x73b   : > { %1256 = vmin.xlane.f32.xlu1 %v1255_v38  ;;  %1241 = vmin.xlane.f32.xlu0 %v1240_v39  ;;  %v1260_v48 = vshll.u32 %v1259_v43, 16  ;;  %v1245_v55 = vshll.u32 %v1244_v47, 16 }
 0x73c   : > { %v1268_v40 = vpop.xlane.xlu1 %1267 }
 0x73d   : > { %vm1269_vm11 = vcmp.eq.f32.partialorder %v1266_v30, %v1268_v40  ;;  %v1274_v56 = vcvt.f32.s32 %v1268_v40 }
 0x73e   : > { %v1270_v42 = vsel %vm1269_vm11, %v1265_v41, inf  ;;  %vm2808_vm11 = vcmask 1042432  }
 0x73f   : > { %1271 = vmin.xlane.f32.xlu0 %v1270_v42  ;;  %v1275_v28 = vshll.u32 %v1274_v56, 16 }
 0x7c8   : > { %v1257_v54 = vpop.xlane.xlu1 %1256  ;;  %v1242_v27 = vpop.xlane.xlu0 %1241 }
 0x7c9   : > { %v1258_v25 = vcvt.f32.s32 %v1257_v54  ;;  %v1243_v57 = vcvt.f32.s32 %v1242_v27 }
 0x7cb   : > { %v1261_v58 = vadd.s32 %v1260_v48, %v1258_v25  ;;  %v1246_v59 = vadd.s32 %v1245_v55, %v1243_v57 }
 0x7cc   : > { %v1272_v63 = vpop.xlane.xlu0 %1271 }
 0x7cd   : > { %v1273_v2 = vcvt.f32.s32 %v1272_v63  ;;  %vm1278_vm12 = vcmp.lt.s32.totalorder %v1246_v59, %v1261_v58 }
 0x7ce   : > { %v1279_v3 = vsel %vm1278_vm12, %v1246_v59, %v1261_v58 }
 0x7cf   : > { %v1276_v45 = vadd.s32 %v1275_v28, %v1273_v2 }
 0x7d1   : > { %v1277_v4 = vsel %vm1038_vm8, %v1276_v45, 2147483647 }
 0x7d2   : > { %vm1280_vm13 = vcmp.lt.s32.totalorder %v1279_v3, %v1277_v4 }
 0x7d3   : > { %v1281_v17 = vsel %vm1280_vm13, %v1279_v3, %v1277_v4 }
 0x7d4   : > { %v1282_v5 = vrot.slane %v1281_v17, 4 }
 0x7d6   : > { %vm1283_vm14 = vcmp.lt.s32.totalorder %v1281_v17, %v1282_v5 }
 0x7d7   : > { %v1284_v6 = vsel %vm1283_vm14, %v1281_v17, %v1282_v5 }
 0x7d8   : > { %v1285_v7 = vrot.slane %v1284_v6, 2 }
 0x7da   : > { %vm1286_vm1 = vcmp.lt.s32.totalorder %v1284_v6, %v1285_v7 }
 0x7db   : > { %v1287_v8 = vsel %vm1286_vm1, %v1284_v6, %v1285_v7 }
 0x7dc   : > { %v1288_v10 = vrot.slane %v1287_v8, 1 }
 0x7de   : > { %vm1289_vm2 = vcmp.lt.s32.totalorder %v1287_v8, %v1288_v10 }
 0x7df   : > { %v1290_v13 = vsel %vm1289_vm2, %v1287_v8, %v1288_v10 }
 0x7e0   : > { %vm1292_vm3 = vcmp.eq.s32.totalorder %v4845_v50, %v1290_v13  ;;  %v4952_v49 = vsel %vm2806_vm0, %v2827_v11, %v1290_v13  ;;  %vm1291_vm9 = vcmp.eq.s32.totalorder %v4848_v51, %v1290_v13  ;;  %vm1293_vm10 = vcmp.eq.s32.totalorder %v4851_v52, %v1290_v13 }
 0x7e1   : > { %v4957_v14 = vsel %vm1292_vm3, -3e+38, %v4916_v61  ;;  %v4960_v16 = vsel %vm1291_vm9, -3e+38, %v4919_v62  ;;  %v4967_v60 = vsel %vm1293_vm10, -3e+38, %v4926_v1 }
 0x7e2   : > { %v1300_v18 = vsel %vm961_vm6, %v4957_v14, -inf  ;;  %v1297_v44 = vsel %vm961_vm6, %v4960_v16, -inf  ;;  %v1303_v19 = vsel %vm964_vm7, %v4967_v60, -inf }
 0x7e3   : > { %1301 = vmax.xlane.f32.xlu0 %v1300_v18  ;;  %1298 = vmax.xlane.f32.xlu1 %v1297_v44 }
 0x7e7   : > { %1304 = vmax.xlane.f32.xlu1 %v1303_v19 }
 0x870   : > { %v1299_v61 = vpop.xlane.xlu1 %1298  ;;  %v1302_v20 = vpop.xlane.xlu0 %1301 }
 0x871   : > { %v1307_v21 = vmax.f32 %v1299_v61, %v1302_v20 }
 0x874   : > { %v1305_v62 = vpop.xlane.xlu1 %1304 }
 0x875   : > { %v1306_v53 = vsel %vm1038_vm8, %v1305_v62, -inf }
 0x876   : > { %v1308_v0 = vmax.f32 %v1307_v21, %v1306_v53 }
 0x878   : > { %v1309_v22 = vrot.slane %v1308_v0, 4 }
 0x87a   : > { %v1310_v23 = vmax.f32 %v1308_v0, %v1309_v22 }
 0x87c   : > { %v1311_v24 = vrot.slane %v1310_v23, 2 }
 0x87e   : > { %v1312_v29 = vmax.f32 %v1310_v23, %v1311_v24 }
 0x880   : > { %v1313_v30 = vrot.slane %v1312_v29, 1 }
 0x882   : > { %v1314_v31 = vmax.f32 %v1312_v29, %v1313_v30 }
 0x884   : > { %v4974_v1 = vsel %vm2808_vm11, %v4935_v15, %v1314_v31  ;;  %vm1316_vm12 = vcmp.ge.f32.partialorder %v4957_v14, %v1314_v31  ;;  %vm1315_vm13 = vcmp.ge.f32.partialorder %v4960_v16, %v1314_v31  ;;  %vm1317_vm14 = vcmp.ge.f32.partialorder %v4967_v60, %v1314_v31 }
 0x885   : > { %v1319_v32 = vsel %vm1316_vm12, %v4845_v50, 80  ;;  %v1318_v33 = vsel %vm1315_vm13, %v4848_v51, 80  ;;  %v1320_v34 = vsel %vm1317_vm14, %v4851_v52, 80 }
 0x886   : > { %v1336_v35 = vsel %vm961_vm6, %v1319_v32, 2147483647  ;;  %v1321_v36 = vsel %vm961_vm6, %v1318_v33, 2147483647  ;;  %v1351_v37 = vsel %vm964_vm7, %v1320_v34, 2147483647 }
 0x887   : > { %v1338_v15 = vshra.s32 %v1336_v35, 16  ;;  %v1323_v38 = vshra.s32 %v1321_v36, 16  ;;  %v1353_v41 = vshra.s32 %v1351_v37, 16  ;;  %v1337_v43 = vand.u32 65535, %v1336_v35 }
 0x888   : > { %v1322_v47 = vand.u32 65535, %v1321_v36  ;;  %v1352_v56 = vand.u32 65535, %v1351_v37 }
 0x889   : > { %v1340_v39 = vcvt.s32.f32 %v1338_v15  ;;  %v1325_v40 = vcvt.s32.f32 %v1323_v38  ;;  %v1355_v42 = vcvt.s32.f32 %v1353_v41  ;;  %v1339_v27 = vcvt.s32.f32 %v1337_v43 }
 0x88a   : > { %v1324_v55 = vcvt.s32.f32 %v1322_v47  ;;  %v1354_v59 = vcvt.s32.f32 %v1352_v56 }
 0x88b   : > { %1341 = vmin.xlane.f32.xlu1 %v1340_v39  ;;  %1326 = vmin.xlane.f32.xlu0 %v1325_v40 }
 0x88f   : > { %1356 = vmin.xlane.f32.xlu0 %v1355_v42 }
 0x918   : > { %v1342_v48 = vpop.xlane.xlu1 %1341  ;;  %v1327_v54 = vpop.xlane.xlu0 %1326 }
 0x919   : > { %vm1343_vm1 = vcmp.eq.f32.partialorder %v1340_v39, %v1342_v48  ;;  %vm1328_vm2 = vcmp.eq.f32.partialorder %v1325_v40, %v1327_v54  ;;  %v1348_v28 = vcvt.f32.s32 %v1342_v48  ;;  %v1333_v2 = vcvt.f32.s32 %v1327_v54 }
 0x91a   : > { %v1344_v25 = vsel %vm1343_vm1, %v1339_v27, inf  ;;  %v1329_v57 = vsel %vm1328_vm2, %v1324_v55, inf }
 0x91b   : > { %1345 = vmin.xlane.f32.xlu0 %v1344_v25  ;;  %1330 = vmin.xlane.f32.xlu1 %v1329_v57  ;;  %v1349_v45 = vshll.u32 %v1348_v28, 16  ;;  %v1334_v17 = vshll.u32 %v1333_v2, 16 }
 0x91c   : > { %v1357_v58 = vpop.xlane.xlu0 %1356 }
 0x91d   : > { %vm1358_vm3 = vcmp.eq.f32.partialorder %v1355_v42, %v1357_v58  ;;  %v1363_v5 = vcvt.f32.s32 %v1357_v58 }
 0x91e   : > { %v1359_v63 = vsel %vm1358_vm3, %v1354_v59, inf }
 0x91f   : > { %1360 = vmin.xlane.f32.xlu1 %v1359_v63  ;;  %v1364_v13 = vshll.u32 %v1363_v5, 16 }
 0x9a8   : > { %v1346_v3 = vpop.xlane.xlu0 %1345  ;;  %v1331_v4 = vpop.xlane.xlu1 %1330 }
 0x9a9   : > { %v1347_v6 = vcvt.f32.s32 %v1346_v3  ;;  %v1332_v7 = vcvt.f32.s32 %v1331_v4 }
 0x9ab   : > { %v1350_v8 = vadd.s32 %v1349_v45, %v1347_v6  ;;  %v1335_v10 = vadd.s32 %v1334_v17, %v1332_v7 }
 0x9ac   : > { %v1361_v11 = vpop.xlane.xlu1 %1360 }
 0x9ad   : > { %v1362_v18 = vcvt.f32.s32 %v1361_v11  ;;  %vm1367_vm9 = vcmp.lt.s32.totalorder %v1335_v10, %v1350_v8 }
 0x9ae   : > { %v1368_v19 = vsel %vm1367_vm9, %v1335_v10, %v1350_v8 }
 0x9af   : > { %v1365_v44 = vadd.s32 %v1364_v13, %v1362_v18 }
 0x9b1   : > { %v1366_v61 = vsel %vm1038_vm8, %v1365_v44, 2147483647 }
 0x9b2   : > { %vm1369_vm10 = vcmp.lt.s32.totalorder %v1368_v19, %v1366_v61 }
 0x9b3   : > { %v1370_v20 = vsel %vm1369_vm10, %v1368_v19, %v1366_v61 }
 0x9b4   : > { %v1371_v21 = vrot.slane %v1370_v20, 4 }
 0x9b6   : > { %vm1372_vm12 = vcmp.lt.s32.totalorder %v1370_v20, %v1371_v21 }
 0x9b7   : > { %v1373_v62 = vsel %vm1372_vm12, %v1370_v20, %v1371_v21 }
 0x9b8   : > { %v1374_v53 = vrot.slane %v1373_v62, 2 }
 0x9ba   : > { %vm1375_vm13 = vcmp.lt.s32.totalorder %v1373_v62, %v1374_v53 }
 0x9bb   : > { %v1376_v0 = vsel %vm1375_vm13, %v1373_v62, %v1374_v53 }
 0x9bc   : > { %v1377_v22 = vrot.slane %v1376_v0, 1 }
 0x9be   : > { %vm1378_vm14 = vcmp.lt.s32.totalorder %v1376_v0, %v1377_v22 }
 0x9bf   : > { %v1379_v23 = vsel %vm1378_vm14, %v1376_v0, %v1377_v22 }
 0x9c0   : > { %vm1381_vm1 = vcmp.eq.s32.totalorder %v4845_v50, %v1379_v23  ;;  %v4989_v24 = vsel %vm2808_vm11, %v4952_v49, %v1379_v23  ;;  %vm1380_vm2 = vcmp.eq.s32.totalorder %v4848_v51, %v1379_v23  ;;  %vm1382_vm3 = vcmp.eq.s32.totalorder %v4851_v52, %v1379_v23 }
 0x9c1   : > { %v4994_v29 = vsel %vm1381_vm1, -3e+38, %v4957_v14  ;;  %v4997_v30 = vsel %vm1380_vm2, -3e+38, %v4960_v16  ;;  %v5004_v49 = vsel %vm1382_vm3, -3e+38, %v4967_v60 }
 0x9c2   : > { %v1389_v31 = vsel %vm961_vm6, %v4994_v29, -inf  ;;  %v1386_v32 = vsel %vm961_vm6, %v4997_v30, -inf  ;;  %v1392_v33 = vsel %vm964_vm7, %v5004_v49, -inf }
 0x9c3   : > { %1390 = vmax.xlane.f32.xlu1 %v1389_v31  ;;  %1387 = vmax.xlane.f32.xlu0 %v1386_v32 }
 0x9c7   : > { %1393 = vmax.xlane.f32.xlu0 %v1392_v33 }
 0xa50   : > { %v1388_v14 = vpop.xlane.xlu0 %1387  ;;  %v1391_v34 = vpop.xlane.xlu1 %1390 }
 0xa51   : > { %v1396_v35 = vmax.f32 %v1388_v14, %v1391_v34 }
 0xa54   : > { %v1394_v16 = vpop.xlane.xlu0 %1393 }
 0xa55   : > { %v1395_v36 = vsel %vm1038_vm8, %v1394_v16, -inf }
 0xa56   : > { %v1397_v37 = vmax.f32 %v1396_v35, %v1395_v36 }
 0xa58   : > { %v1398_v15 = vrot.slane %v1397_v37, 4 }
 0xa5a   : > { %v1399_v38 = vmax.f32 %v1397_v37, %v1398_v15 }
 0xa5c   : > { %v1400_v39 = vrot.slane %v1399_v38, 2 }
 0xa5e   : > { %v1401_v40 = vmax.f32 %v1399_v38, %v1400_v39 }
 0xa60   : > { %v1402_v41 = vrot.slane %v1401_v40, 1 }
 0xa62   : > { %v1403_v42 = vmax.f32 %v1401_v40, %v1402_v41 }
 0xa64   : > { %v5011_v60 = vsel %vm1038_vm8, %v4974_v1, %v1403_v42  ;;  %vm1405_vm9 = vcmp.ge.f32.partialorder %v4994_v29, %v1403_v42  ;;  %vm1404_vm10 = vcmp.ge.f32.partialorder %v4997_v30, %v1403_v42  ;;  %vm1406_vm12 = vcmp.ge.f32.partialorder %v5004_v49, %v1403_v42 }
 0xa65   : > { %v1408_v43 = vsel %vm1405_vm9, %v4845_v50, 80  ;;  %v1407_v47 = vsel %vm1404_vm10, %v4848_v51, 80  ;;  %v1409_v48 = vsel %vm1406_vm12, %v4851_v52, 80 }
 0xa66   : > { %v1425_v54 = vsel %vm961_vm6, %v1408_v43, 2147483647  ;;  %v1410_v27 = vsel %vm961_vm6, %v1407_v47, 2147483647  ;;  %v1440_v55 = vsel %vm964_vm7, %v1409_v48, 2147483647 }
 0xa67   : > { %v1427_v1 = vshra.s32 %v1425_v54, 16  ;;  %v1412_v56 = vshra.s32 %v1410_v27, 16  ;;  %v1442_v58 = vshra.s32 %v1440_v55, 16  ;;  %v1426_v63 = vand.u32 65535, %v1425_v54 }
 0xa68   : > { %v1411_v28 = vand.u32 65535, %v1410_v27  ;;  %v1441_v17 = vand.u32 65535, %v1440_v55 }
 0xa69   : > { %v1429_v25 = vcvt.s32.f32 %v1427_v1  ;;  %v1414_v57 = vcvt.s32.f32 %v1412_v56  ;;  %v1444_v59 = vcvt.s32.f32 %v1442_v58  ;;  %v1428_v3 = vcvt.s32.f32 %v1426_v63 }
 0xa6a   : > { %v1413_v4 = vcvt.s32.f32 %v1411_v28  ;;  %v1443_v8 = vcvt.s32.f32 %v1441_v17 }
 0xa6b   : > { %1430 = vmin.xlane.f32.xlu0 %v1429_v25  ;;  %1415 = vmin.xlane.f32.xlu1 %v1414_v57 }
 0xa6f   : > { %1445 = vmin.xlane.f32.xlu1 %v1444_v59 }
 0xaf8   : > { %v1431_v2 = vpop.xlane.xlu0 %1430  ;;  %v1416_v45 = vpop.xlane.xlu1 %1415 }
 0xaf9   : > { %vm1432_vm13 = vcmp.eq.f32.partialorder %v1429_v25, %v1431_v2  ;;  %vm1417_vm14 = vcmp.eq.f32.partialorder %v1414_v57, %v1416_v45  ;;  %v1437_v11 = vcvt.f32.s32 %v1431_v2  ;;  %v1422_v13 = vcvt.f32.s32 %v1416_v45 }
 0xafa   : > { %v1433_v5 = vsel %vm1432_vm13, %v1428_v3, inf  ;;  %v1418_v6 = vsel %vm1417_vm14, %v1413_v4, inf }
 0xafb   : > { %1434 = vmin.xlane.f32.xlu1 %v1433_v5  ;;  %1419 = vmin.xlane.f32.xlu0 %v1418_v6  ;;  %v1438_v18 = vshll.u32 %v1437_v11, 16  ;;  %v1423_v61 = vshll.u32 %v1422_v13, 16 }
 0xafc   : > { %v1446_v7 = vpop.xlane.xlu1 %1445 }
 0xafd   : > { %vm1447_vm1 = vcmp.eq.f32.partialorder %v1444_v59, %v1446_v7  ;;  %v1452_v20 = vcvt.f32.s32 %v1446_v7 }
 0xafe   : > { %v1448_v10 = vsel %vm1447_vm1, %v1443_v8, inf }
 0xaff   : > { %1449 = vmin.xlane.f32.xlu0 %v1448_v10  ;;  %v1453_v23 = vshll.u32 %v1452_v20, 16 }
 0xb88   : > { %v1435_v44 = vpop.xlane.xlu1 %1434  ;;  %v1420_v19 = vpop.xlane.xlu0 %1419 }
 0xb89   : > { %v1436_v21 = vcvt.f32.s32 %v1435_v44  ;;  %v1421_v62 = vcvt.f32.s32 %v1420_v19 }
 0xb8b   : > { %v1439_v53 = vadd.s32 %v1438_v18, %v1436_v21  ;;  %v1424_v0 = vadd.s32 %v1423_v61, %v1421_v62 }
 0xb8c   : > { %v1450_v22 = vpop.xlane.xlu0 %1449 }
 0xb8d   : > { %v1451_v31 = vcvt.f32.s32 %v1450_v22  ;;  %vm1456_vm2 = vcmp.lt.s32.totalorder %v1424_v0, %v1439_v53 }
 0xb8e   : > { %v1457_v33 = vsel %vm1456_vm2, %v1424_v0, %v1439_v53  ;;  %vm2811_vm2 = vcmask 1044480  }
 0xb8f   : > { %v1454_v32 = vadd.s32 %v1453_v23, %v1451_v31 }
 0xb91   : > { %v1455_v14 = vsel %vm1038_vm8, %v1454_v32, 2147483647 }
 0xb92   : > { %vm1458_vm3 = vcmp.lt.s32.totalorder %v1457_v33, %v1455_v14 }
 0xb93   : > { %v1459_v34 = vsel %vm1458_vm3, %v1457_v33, %v1455_v14 }
 0xb94   : > { %v1460_v35 = vrot.slane %v1459_v34, 4 }
 0xb96   : > { %vm1461_vm9 = vcmp.lt.s32.totalorder %v1459_v34, %v1460_v35 }
 0xb97   : > { %v1462_v16 = vsel %vm1461_vm9, %v1459_v34, %v1460_v35 }
 0xb98   : > { %v1463_v36 = vrot.slane %v1462_v16, 2 }
 0xb9a   : > { %vm1464_vm10 = vcmp.lt.s32.totalorder %v1462_v16, %v1463_v36 }
 0xb9b   : > { %v1465_v37 = vsel %vm1464_vm10, %v1462_v16, %v1463_v36 }
 0xb9c   : > { %v1466_v15 = vrot.slane %v1465_v37, 1 }
 0xb9e   : > { %vm1467_vm12 = vcmp.lt.s32.totalorder %v1465_v37, %v1466_v15 }
 0xb9f   : > { %v1468_v38 = vsel %vm1467_vm12, %v1465_v37, %v1466_v15 }
 0xba0   : > { %vm1470_vm13 = vcmp.eq.s32.totalorder %v4845_v50, %v1468_v38  ;;  %v5026_v39 = vsel %vm1038_vm8, %v4989_v24, %v1468_v38  ;;  %vm1469_vm14 = vcmp.eq.s32.totalorder %v4848_v51, %v1468_v38  ;;  %vm1471_vm1 = vcmp.eq.s32.totalorder %v4851_v52, %v1468_v38 }
 0xba1   : > { %v5031_v40 = vsel %vm1470_vm13, -3e+38, %v4994_v29  ;;  %v5034_v41 = vsel %vm1469_vm14, -3e+38, %v4997_v30  ;;  %v5041_v24 = vsel %vm1471_vm1, -3e+38, %v5004_v49 }
 0xba2   : > { %v1478_v42 = vsel %vm961_vm6, %v5031_v40, -inf  ;;  %v1475_v43 = vsel %vm961_vm6, %v5034_v41, -inf  ;;  %v1481_v47 = vsel %vm964_vm7, %v5041_v24, -inf }
 0xba3   : > { %1479 = vmax.xlane.f32.xlu0 %v1478_v42  ;;  %1476 = vmax.xlane.f32.xlu1 %v1475_v43 }
 0xba7   : > { %1482 = vmax.xlane.f32.xlu1 %v1481_v47 }
 0xc30   : > { %v1477_v29 = vpop.xlane.xlu1 %1476  ;;  %v1480_v48 = vpop.xlane.xlu0 %1479 }
 0xc31   : > { %v1485_v54 = vmax.f32 %v1477_v29, %v1480_v48 }
 0xc34   : > { %v1483_v30 = vpop.xlane.xlu1 %1482 }
 0xc35   : > { %v1484_v27 = vsel %vm1038_vm8, %v1483_v30, -inf }
 0xc36   : > { %v1486_v55 = vmax.f32 %v1485_v54, %v1484_v27 }
 0xc38   : > { %v1487_v1 = vrot.slane %v1486_v55, 4 }
 0xc3a   : > { %v1488_v56 = vmax.f32 %v1486_v55, %v1487_v1 }
 0xc3c   : > { %v1489_v25 = vrot.slane %v1488_v56, 2 }
 0xc3e   : > { %v1490_v57 = vmax.f32 %v1488_v56, %v1489_v25 }
 0xc40   : > { %v1491_v58 = vrot.slane %v1490_v57, 1 }
 0xc42   : > { %v1492_v59 = vmax.f32 %v1490_v57, %v1491_v58 }
 0xc44   : > { %vm1494_vm3 = vcmp.ge.f32.partialorder %v5031_v40, %v1492_v59  ;;  %vm1493_vm9 = vcmp.ge.f32.partialorder %v5034_v41, %v1492_v59  ;;  %vm1495_vm10 = vcmp.ge.f32.partialorder %v5041_v24, %v1492_v59  ;;  %v5051_v49 = vsel %vm2811_vm2, %v5011_v60, %v1492_v59 }
 0xc45   : > { %v1497_v63 = vsel %vm1494_vm3, %v4845_v50, 80  ;;  %v1496_v28 = vsel %vm1493_vm9, %v4848_v51, 80  ;;  %v1498_v2 = vsel %vm1495_vm10, %v4851_v52, 80 }
 0xc46   : > { %v1514_v45 = vsel %vm961_vm6, %v1497_v63, 2147483647  ;;  %v1499_v3 = vsel %vm961_vm6, %v1496_v28, 2147483647  ;;  %v1529_v4 = vsel %vm964_vm7, %v1498_v2, 2147483647 }
 0xc47   : > { %v1516_v17 = vshra.s32 %v1514_v45, 16  ;;  %v1501_v5 = vshra.s32 %v1499_v3, 16  ;;  %v1531_v8 = vshra.s32 %v1529_v4, 16  ;;  %v1515_v10 = vand.u32 65535, %v1514_v45 }
 0xc48   : > { %v1500_v11 = vand.u32 65535, %v1499_v3  ;;  %v1530_v61 = vand.u32 65535, %v1529_v4 }
 0xc49   : > { %v1518_v6 = vcvt.s32.f32 %v1516_v17  ;;  %v1503_v7 = vcvt.s32.f32 %v1501_v5  ;;  %v1533_v60 = vcvt.s32.f32 %v1531_v8  ;;  %v1517_v44 = vcvt.s32.f32 %v1515_v10 }
 0xc4a   : > { %v1502_v19 = vcvt.s32.f32 %v1500_v11  ;;  %v1532_v53 = vcvt.s32.f32 %v1530_v61 }
 0xc4b   : > { %1519 = vmin.xlane.f32.xlu1 %v1518_v6  ;;  %1504 = vmin.xlane.f32.xlu0 %v1503_v7 }
 0xc4f   : > { %1534 = vmin.xlane.f32.xlu0 %v1533_v60 }
 0xcd8   : > { %v1520_v13 = vpop.xlane.xlu1 %1519  ;;  %v1505_v18 = vpop.xlane.xlu0 %1504 }
 0xcd9   : > { %vm1521_vm12 = vcmp.eq.f32.partialorder %v1518_v6, %v1520_v13  ;;  %vm1506_vm13 = vcmp.eq.f32.partialorder %v1503_v7, %v1505_v18  ;;  %v1526_v22 = vcvt.f32.s32 %v1520_v13  ;;  %v1511_v23 = vcvt.f32.s32 %v1505_v18 }
 0xcda   : > { %v1522_v20 = vsel %vm1521_vm12, %v1517_v44, inf  ;;  %v1507_v21 = vsel %vm1506_vm13, %v1502_v19, inf }
 0xcdb   : > { %1523 = vmin.xlane.f32.xlu0 %v1522_v20  ;;  %1508 = vmin.xlane.f32.xlu1 %v1507_v21  ;;  %v1527_v31 = vshll.u32 %v1526_v22, 16  ;;  %v1512_v14 = vshll.u32 %v1511_v23, 16 }
 0xcdc   : > { %v1535_v62 = vpop.xlane.xlu0 %1534 }
 0xcdd   : > { %vm1536_vm14 = vcmp.eq.f32.partialorder %v1533_v60, %v1535_v62  ;;  %v1541_v34 = vcvt.f32.s32 %v1535_v62 }
 0xcde   : > { %v1537_v0 = vsel %vm1536_vm14, %v1532_v53, inf }
 0xcdf   : > { %1538 = vmin.xlane.f32.xlu1 %v1537_v0  ;;  %v1542_v38 = vshll.u32 %v1541_v34, 16 }
 0xd68   : > { %v1524_v32 = vpop.xlane.xlu0 %1523  ;;  %v1509_v33 = vpop.xlane.xlu1 %1508 }
 0xd69   : > { %v1525_v35 = vcvt.f32.s32 %v1524_v32  ;;  %v1510_v16 = vcvt.f32.s32 %v1509_v33 }
 0xd6b   : > { %v1528_v36 = vadd.s32 %v1527_v31, %v1525_v35  ;;  %v1513_v37 = vadd.s32 %v1512_v14, %v1510_v16 }
 0xd6c   : > { %v1539_v15 = vpop.xlane.xlu1 %1538 }
 0xd6d   : > { %v1540_v42 = vcvt.f32.s32 %v1539_v15  ;;  %vm1545_vm1 = vcmp.lt.s32.totalorder %v1513_v37, %v1528_v36 }
 0xd6e   : > { %v1546_v47 = vsel %vm1545_vm1, %v1513_v37, %v1528_v36 }
 0xd6f   : > { %v1543_v43 = vadd.s32 %v1542_v38, %v1540_v42 }
 0xd71   : > { %v1544_v29 = vsel %vm1038_vm8, %v1543_v43, 2147483647 }
 0xd72   : > { %vm1547_vm3 = vcmp.lt.s32.totalorder %v1546_v47, %v1544_v29 }
 0xd73   : > { %v1548_v48 = vsel %vm1547_vm3, %v1546_v47, %v1544_v29  ;;  %vm5868_vm3 = vcmask 1045504  }
 0xd74   : > { %v1549_v54 = vrot.slane %v1548_v48, 4 }
 0xd76   : > { %vm1550_vm9 = vcmp.lt.s32.totalorder %v1548_v48, %v1549_v54 }
 0xd77   : > { %v1551_v30 = vsel %vm1550_vm9, %v1548_v48, %v1549_v54 }
 0xd78   : > { %v1552_v27 = vrot.slane %v1551_v30, 2 }
 0xd7a   : > { %vm1553_vm10 = vcmp.lt.s32.totalorder %v1551_v30, %v1552_v27 }
 0xd7b   : > { %v1554_v55 = vsel %vm1553_vm10, %v1551_v30, %v1552_v27 }
 0xd7c   : > { %v1555_v1 = vrot.slane %v1554_v55, 1 }
 0xd7e   : > { %vm1556_vm12 = vcmp.lt.s32.totalorder %v1554_v55, %v1555_v1 }
 0xd7f   : > { %v1557_v56 = vsel %vm1556_vm12, %v1554_v55, %v1555_v1 }
 0xd80   : > { %vm1559_vm13 = vcmp.eq.s32.totalorder %v4845_v50, %v1557_v56  ;;  %v5063_v25 = vsel %vm2811_vm2, %v5026_v39, %v1557_v56  ;;  %vm1558_vm14 = vcmp.eq.s32.totalorder %v4848_v51, %v1557_v56  ;;  %vm1560_vm1 = vcmp.eq.s32.totalorder %v4851_v52, %v1557_v56 }
 0xd81   : > { %v5068_v57 = vsel %vm1559_vm13, -3e+38, %v5031_v40  ;;  %v5071_v58 = vsel %vm1558_vm14, -3e+38, %v5034_v41  ;;  %v5078_v39 = vsel %vm1560_vm1, -3e+38, %v5041_v24 }
 0xd82   : > { %v1567_v59 = vsel %vm961_vm6, %v5068_v57, -inf  ;;  %v1564_v63 = vsel %vm961_vm6, %v5071_v58, -inf  ;;  %v1570_v28 = vsel %vm964_vm7, %v5078_v39, -inf }
 0xd83   : > { %1568 = vmax.xlane.f32.xlu1 %v1567_v59  ;;  %1565 = vmax.xlane.f32.xlu0 %v1564_v63 }
 0xd87   : > { %1571 = vmax.xlane.f32.xlu0 %v1570_v28 }
 0xe10   : > { %v1566_v40 = vpop.xlane.xlu0 %1565  ;;  %v1569_v2 = vpop.xlane.xlu1 %1568 }
 0xe11   : > { %v1574_v45 = vmax.f32 %v1566_v40, %v1569_v2 }
 0xe14   : > { %v1572_v41 = vpop.xlane.xlu0 %1571 }
 0xe15   : > { %v1573_v3 = vsel %vm1038_vm8, %v1572_v41, -inf }
 0xe16   : > { %v1575_v4 = vmax.f32 %v1574_v45, %v1573_v3 }
 0xe18   : > { %v1576_v17 = vrot.slane %v1575_v4, 4 }
 0xe1a   : > { %v1577_v5 = vmax.f32 %v1575_v4, %v1576_v17 }
 0xe1c   : > { %v1578_v6 = vrot.slane %v1577_v5, 2 }
 0xe1e   : > { %v1579_v7 = vmax.f32 %v1577_v5, %v1578_v6 }
 0xe20   : > { %v1580_v8 = vrot.slane %v1579_v7, 1 }
 0xe22   : > { %v1581_v60 = vmax.f32 %v1579_v7, %v1580_v8 }
 0xe24   : > { %vm1583_vm9 = vcmp.ge.f32.partialorder %v5068_v57, %v1581_v60  ;;  %vm1582_vm10 = vcmp.ge.f32.partialorder %v5071_v58, %v1581_v60  ;;  %vm1584_vm12 = vcmp.ge.f32.partialorder %v5078_v39, %v1581_v60  ;;  %v5088_v24 = vsel %vm5868_vm3, %v5051_v49, %v1581_v60 }
 0xe25   : > { %v1586_v10 = vsel %vm1583_vm9, %v4845_v50, 80  ;;  %v1585_v11 = vsel %vm1582_vm10, %v4848_v51, 80  ;;  %v1587_v13 = vsel %vm1584_vm12, %v4851_v52, 80 }
 0xe26   : > { %v1603_v18 = vsel %vm961_vm6, %v1586_v10, 2147483647  ;;  %v1588_v44 = vsel %vm961_vm6, %v1585_v11, 2147483647  ;;  %v1618_v19 = vsel %vm964_vm7, %v1587_v13, 2147483647 }
 0xe27   : > { %v1605_v61 = vshra.s32 %v1603_v18, 16  ;;  %v1590_v20 = vshra.s32 %v1588_v44, 16  ;;  %v1620_v53 = vshra.s32 %v1618_v19, 16  ;;  %v1604_v0 = vand.u32 65535, %v1603_v18 }
 0xe28   : > { %v1589_v22 = vand.u32 65535, %v1588_v44  ;;  %v1619_v14 = vand.u32 65535, %v1618_v19 }
 0xe29   : > { %v1607_v21 = vcvt.s32.f32 %v1605_v61  ;;  %v1592_v62 = vcvt.s32.f32 %v1590_v20  ;;  %v1622_v49 = vcvt.s32.f32 %v1620_v53  ;;  %v1606_v32 = vcvt.s32.f32 %v1604_v0 }
 0xe2a   : > { %v1591_v33 = vcvt.s32.f32 %v1589_v22  ;;  %v1621_v36 = vcvt.s32.f32 %v1619_v14 }
 0xe2b   : > { %1608 = vmin.xlane.f32.xlu0 %v1607_v21  ;;  %1593 = vmin.xlane.f32.xlu1 %v1592_v62 }
 0xe2f   : > { %1623 = vmin.xlane.f32.xlu1 %v1622_v49 }
 0xeb8   : > { %v1609_v23 = vpop.xlane.xlu0 %1608  ;;  %v1594_v31 = vpop.xlane.xlu1 %1593 }
 0xeb9   : > { %vm1610_vm13 = vcmp.eq.f32.partialorder %v1607_v21, %v1609_v23  ;;  %vm1595_vm14 = vcmp.eq.f32.partialorder %v1592_v62, %v1594_v31  ;;  %v1615_v15 = vcvt.f32.s32 %v1609_v23  ;;  %v1600_v38 = vcvt.f32.s32 %v1594_v31 }
 0xeba   : > { %v1611_v34 = vsel %vm1610_vm13, %v1606_v32, inf  ;;  %v1596_v35 = vsel %vm1595_vm14, %v1591_v33, inf }
 0xebb   : > { %1612 = vmin.xlane.f32.xlu1 %v1611_v34  ;;  %1597 = vmin.xlane.f32.xlu0 %v1596_v35  ;;  %v1616_v42 = vshll.u32 %v1615_v15, 16  ;;  %v1601_v29 = vshll.u32 %v1600_v38, 16 }
 0xebc   : > { %v1624_v16 = vpop.xlane.xlu1 %1623 }
 0xebd   : > { %vm1625_vm1 = vcmp.eq.f32.partialorder %v1622_v49, %v1624_v16  ;;  %v1630_v48 = vcvt.f32.s32 %v1624_v16 }
 0xebe   : > { %v1626_v37 = vsel %vm1625_vm1, %v1621_v36, inf }
 0xebf   : > { %1627 = vmin.xlane.f32.xlu0 %v1626_v37  ;;  %v1631_v56 = vshll.u32 %v1630_v48, 16 }
 0xf48   : > { %v1613_v43 = vpop.xlane.xlu1 %1612  ;;  %v1598_v47 = vpop.xlane.xlu0 %1597 }
 0xf49   : > { %v1614_v54 = vcvt.f32.s32 %v1613_v43  ;;  %v1599_v30 = vcvt.f32.s32 %v1598_v47 }
 0xf4b   : > { %v1617_v27 = vadd.s32 %v1616_v42, %v1614_v54  ;;  %v1602_v55 = vadd.s32 %v1601_v29, %v1599_v30 }
 0xf4c   : > { %v1628_v1 = vpop.xlane.xlu0 %1627 }
 0xf4d   : > { %v1629_v59 = vcvt.f32.s32 %v1628_v1  ;;  %vm1634_vm9 = vcmp.lt.s32.totalorder %v1602_v55, %v1617_v27 }
 0xf4e   : > { %v1635_v28 = vsel %vm1634_vm9, %v1602_v55, %v1617_v27 }
 0xf4f   : > { %v1632_v63 = vadd.s32 %v1631_v56, %v1629_v59 }
 0xf51   : > { %v1633_v40 = vsel %vm1038_vm8, %v1632_v63, 2147483647 }
 0xf52   : > { %vm1636_vm10 = vcmp.lt.s32.totalorder %v1635_v28, %v1633_v40 }
 0xf53   : > { %v1637_v2 = vsel %vm1636_vm10, %v1635_v28, %v1633_v40  ;;  %vm2815_vm10 = vcmask 1046528  }
 0xf54   : > { %v1638_v45 = vrot.slane %v1637_v2, 4 }
 0xf56   : > { %vm1639_vm12 = vcmp.lt.s32.totalorder %v1637_v2, %v1638_v45 }
 0xf57   : > { %v1640_v41 = vsel %vm1639_vm12, %v1637_v2, %v1638_v45 }
 0xf58   : > { %v1641_v3 = vrot.slane %v1640_v41, 2 }
 0xf5a   : > { %vm1642_vm13 = vcmp.lt.s32.totalorder %v1640_v41, %v1641_v3 }
 0xf5b   : > { %v1643_v4 = vsel %vm1642_vm13, %v1640_v41, %v1641_v3 }
 0xf5c   : > { %v1644_v17 = vrot.slane %v1643_v4, 1 }
 0xf5e   : > { %vm1645_vm14 = vcmp.lt.s32.totalorder %v1643_v4, %v1644_v17 }
 0xf5f   : > { %v1646_v5 = vsel %vm1645_vm14, %v1643_v4, %v1644_v17 }
 0xf60   : > { %vm1648_vm1 = vcmp.eq.s32.totalorder %v4845_v50, %v1646_v5  ;;  %v5100_v6 = vsel %vm5868_vm3, %v5063_v25, %v1646_v5  ;;  %vm1647_vm9 = vcmp.eq.s32.totalorder %v4848_v51, %v1646_v5  ;;  %vm1649_vm5 = vcmp.eq.s32.totalorder %v4851_v52, %v1646_v5 }
 0xf61   : > { %v5105_v7 = vsel %vm1648_vm1, -3e+38, %v5068_v57  ;;  %v5108_v8 = vsel %vm1647_vm9, -3e+38, %v5071_v58  ;;  %v5115_v25 = vsel %vm1649_vm5, -3e+38, %v5078_v39 }
 0xf62   : > { %v1656_v60 = vsel %vm961_vm6, %v5105_v7, -inf  ;;  %v1653_v10 = vsel %vm961_vm6, %v5108_v8, -inf  ;;  %v1659_v11 = vsel %vm964_vm7, %v5115_v25, -inf }
 0xf63   : > { %1657 = vmax.xlane.f32.xlu0 %v1656_v60  ;;  %1654 = vmax.xlane.f32.xlu1 %v1653_v10 }
 0xf67   : > { %1660 = vmax.xlane.f32.xlu1 %v1659_v11 }
 0xff0   : > { %v1655_v57 = vpop.xlane.xlu1 %1654  ;;  %v1658_v13 = vpop.xlane.xlu0 %1657 }
 0xff1   : > { %v1663_v18 = vmax.f32 %v1655_v57, %v1658_v13 }
 0xff4   : > { %v1661_v58 = vpop.xlane.xlu1 %1660 }
 0xff5   : > { %v1662_v44 = vsel %vm1038_vm8, %v1661_v58, -inf }
 0xff6   : > { %v1664_v19 = vmax.f32 %v1663_v18, %v1662_v44 }
 0xff8   : > { %v1665_v61 = vrot.slane %v1664_v19, 4 }
 0xffa   : > { %v1666_v20 = vmax.f32 %v1664_v19, %v1665_v61 }
 0xffc   : > { %v1667_v21 = vrot.slane %v1666_v20, 2 }
 0xffe   : > { %v1668_v62 = vmax.f32 %v1666_v20, %v1667_v21 }
0x1000   : > { %v1669_v53 = vrot.slane %v1668_v62, 1 }
0x1002   : > { %v1670_v49 = vmax.f32 %v1668_v62, %v1669_v53 }
0x1004   : > { %vm1672_vm5 = vcmp.ge.f32.partialorder %v5105_v7, %v1670_v49  ;;  %vm1671_vm12 = vcmp.ge.f32.partialorder %v5108_v8, %v1670_v49  ;;  %vm1673_vm13 = vcmp.ge.f32.partialorder %v5115_v25, %v1670_v49  ;;  %v5125_v39 = vsel %vm2815_vm10, %v5088_v24, %v1670_v49 }
0x1005   : > { %v1675_v0 = vsel %vm1672_vm5, %v4845_v50, 80  ;;  %v1674_v22 = vsel %vm1671_vm12, %v4848_v51, 80  ;;  %v1676_v23 = vsel %vm1673_vm13, %v4851_v52, 80 }
0x1006   : > { %v1692_v31 = vsel %vm961_vm6, %v1675_v0, 2147483647  ;;  %v1677_v32 = vsel %vm961_vm6, %v1674_v22, 2147483647  ;;  %v1707_v33 = vsel %vm964_vm7, %v1676_v23, 2147483647 }
0x1007   : > { %v1694_v14 = vshra.s32 %v1692_v31, 16  ;;  %v1679_v34 = vshra.s32 %v1677_v32, 16  ;;  %v1709_v36 = vshra.s32 %v1707_v33, 16  ;;  %v1693_v37 = vand.u32 65535, %v1692_v31 }
0x1008   : > { %v1678_v15 = vand.u32 65535, %v1677_v32  ;;  %v1708_v29 = vand.u32 65535, %v1707_v33 }
0x1009   : > { %v1696_v35 = vcvt.s32.f32 %v1694_v14  ;;  %v1681_v16 = vcvt.s32.f32 %v1679_v34  ;;  %v1711_v24 = vcvt.s32.f32 %v1709_v36  ;;  %v1695_v43 = vcvt.s32.f32 %v1693_v37 }
0x100a   : > { %v1680_v47 = vcvt.s32.f32 %v1678_v15  ;;  %v1710_v27 = vcvt.s32.f32 %v1708_v29 }
0x100b   : > { %1697 = vmin.xlane.f32.xlu1 %v1696_v35  ;;  %1682 = vmin.xlane.f32.xlu0 %v1681_v16 }
0x100f   : > { %1712 = vmin.xlane.f32.xlu0 %v1711_v24 }
0x1098   : > { %v1698_v38 = vpop.xlane.xlu1 %1697  ;;  %v1683_v42 = vpop.xlane.xlu0 %1682 }
0x1099   : > { %vm1699_vm14 = vcmp.eq.f32.partialorder %v1696_v35, %v1698_v38  ;;  %vm1684_vm1 = vcmp.eq.f32.partialorder %v1681_v16, %v1683_v42  ;;  %v1704_v1 = vcvt.f32.s32 %v1698_v38  ;;  %v1689_v56 = vcvt.f32.s32 %v1683_v42 }
0x109a   : > { %v1700_v48 = vsel %vm1699_vm14, %v1695_v43, inf  ;;  %v1685_v54 = vsel %vm1684_vm1, %v1680_v47, inf }
0x109b   : > { %1701 = vmin.xlane.f32.xlu0 %v1700_v48  ;;  %1686 = vmin.xlane.f32.xlu1 %v1685_v54  ;;  %v1705_v59 = vshll.u32 %v1704_v1, 16  ;;  %v1690_v40 = vshll.u32 %v1689_v56, 16 }
0x109c   : > { %v1713_v30 = vpop.xlane.xlu0 %1712 }
0x109d   : > { %vm1714_vm9 = vcmp.eq.f32.partialorder %v1711_v24, %v1713_v30  ;;  %v1719_v2 = vcvt.f32.s32 %v1713_v30 }
0x109e   : > { %v1715_v55 = vsel %vm1714_vm9, %v1710_v27, inf  ;;  %vm3593_vm9 = vcmask 7168  }
0x109f   : > { %1716 = vmin.xlane.f32.xlu1 %v1715_v55  ;;  %v1720_v5 = vshll.u32 %v1719_v2, 16 }
0x1128   : > { %v1702_v63 = vpop.xlane.xlu0 %1701  ;;  %v1687_v28 = vpop.xlane.xlu1 %1686 }
0x1129   : > { %v1703_v45 = vcvt.f32.s32 %v1702_v63  ;;  %v1688_v41 = vcvt.f32.s32 %v1687_v28 }
0x112b   : > { %v1706_v3 = vadd.s32 %v1705_v59, %v1703_v45  ;;  %v1691_v4 = vadd.s32 %v1690_v40, %v1688_v41 }
0x112c   : > { %v1717_v17 = vpop.xlane.xlu1 %1716 }
0x112d   : > { %v1718_v60 = vcvt.f32.s32 %v1717_v17  ;;  %vm1723_vm5 = vcmp.lt.s32.totalorder %v1691_v4, %v1706_v3 }
0x112e   : > { %v1724_v11 = vsel %vm1723_vm5, %v1691_v4, %v1706_v3 }
0x112f   : > { %v1721_v10 = vadd.s32 %v1720_v5, %v1718_v60 }
0x1131   : > { %v1722_v57 = vsel %vm1038_vm8, %v1721_v10, 2147483647 }
0x1132   : > { %vm1725_vm12 = vcmp.lt.s32.totalorder %v1724_v11, %v1722_v57 }
0x1133   : > { %v1726_v13 = vsel %vm1725_vm12, %v1724_v11, %v1722_v57 }
0x1134   : > { %v1727_v18 = vrot.slane %v1726_v13, 4 }
0x1136   : > { %vm1728_vm13 = vcmp.lt.s32.totalorder %v1726_v13, %v1727_v18 }
0x1137   : > { %v1729_v58 = vsel %vm1728_vm13, %v1726_v13, %v1727_v18 }
0x1138   : > { %v1730_v44 = vrot.slane %v1729_v58, 2 }
0x113a   : > { %vm1731_vm14 = vcmp.lt.s32.totalorder %v1729_v58, %v1730_v44 }
0x113b   : > { %v1732_v19 = vsel %vm1731_vm14, %v1729_v58, %v1730_v44 }
0x113c   : > { %v1733_v61 = vrot.slane %v1732_v19, 1 }
0x113e   : > { %vm1734_vm1 = vcmp.lt.s32.totalorder %v1732_v19, %v1733_v61 }
0x113f   : > { %v1735_v20 = vsel %vm1734_vm1, %v1732_v19, %v1733_v61 }
0x1140   : > { %vm1737_vm4 = vcmp.eq.s32.totalorder %v4845_v50, %v1735_v20  ;;  %vm1736_vm3 = vcmp.eq.s32.totalorder %v4848_v51, %v1735_v20  ;;  %vm1738_vm5 = vcmp.eq.s32.totalorder %v4851_v52, %v1735_v20  ;;  %v5139_v21 = vsel %vm2815_vm10, %v5100_v6, %v1735_v20 }
0x1141   : > { %v5142_v62 = vsel %vm1737_vm4, -3e+38, %v5105_v7  ;;  %v5145_v53 = vsel %vm1736_vm3, -3e+38, %v5108_v8  ;;  %3615 = vst.msk [vmem:[%s4738_s6] sm:$0xff] %vm3593_vm9, %v5139_v21 }
0x1142   : > { %v1745_v49 = vsel %vm961_vm6, %v5142_v62, -inf  ;;  %v1742_v0 = vsel %vm961_vm6, %v5145_v53, -inf  ;;  %v5155_v6 = vsel %vm1738_vm5, -3e+38, %v5115_v25 }
0x1143   : > { %1746 = vmax.xlane.f32.xlu1 %v1745_v49  ;;  %1743 = vmax.xlane.f32.xlu0 %v1742_v0  ;;  %v1748_v7 = vsel %vm964_vm7, %v5155_v6, -inf }
0x1147   : > { %1749 = vmax.xlane.f32.xlu0 %v1748_v7 }
0x11d0   : > { %v1744_v8 = vpop.xlane.xlu0 %1743  ;;  %v1747_v22 = vpop.xlane.xlu1 %1746 }
0x11d1   : > { %v1752_v23 = vmax.f32 %v1744_v8, %v1747_v22 }
0x11d4   : > { %v1750_v31 = vpop.xlane.xlu0 %1749 }
0x11d5   : > { %v1751_v32 = vsel %vm1038_vm8, %v1750_v31, -inf }
0x11d6   : > { %v1753_v33 = vmax.f32 %v1752_v23, %v1751_v32 }
0x11d8   : > { %v1754_v14 = vrot.slane %v1753_v33, 4 }
0x11da   : > { %v1755_v34 = vmax.f32 %v1753_v33, %v1754_v14 }
0x11dc   : > { %v1756_v35 = vrot.slane %v1755_v34, 2 }
0x11de   : > { %v1757_v16 = vmax.f32 %v1755_v34, %v1756_v35 }
0x11e0   : > { %v1758_v36 = vrot.slane %v1757_v16, 1 }
0x11e2   : > { %v5160_v24 = vmax.f32 %v1757_v16, %v1758_v36 }
0x11e4   : > { %vm1761_vm4 = vcmp.ge.f32.partialorder %v5142_v62, %v5160_v24  ;;  %vm1760_vm3 = vcmp.ge.f32.partialorder %v5145_v53, %v5160_v24  ;;  %vm1762_vm12 = vcmp.ge.f32.partialorder %v5155_v6, %v5160_v24 }
0x11e5   : > { %v1764_v25 = vsel %vm1761_vm4, %v4845_v50, 80  ;;  %v1763_v37 = vsel %vm1760_vm3, %v4848_v51, 80  ;;  %v1765_v15 = vsel %vm1762_vm12, %v4851_v52, 80 }
0x11e6   : > { %v1781_v38 = vsel %vm961_vm6, %v1764_v25, 2147483647  ;;  %v1766_v42 = vsel %vm961_vm6, %v1763_v37, 2147483647  ;;  %v1796_v43 = vsel %vm964_vm7, %v1765_v15, 2147483647 }
0x11e7   : > { %v1783_v47 = vshra.s32 %v1781_v38, 16  ;;  %v1768_v29 = vshra.s32 %v1766_v42, 16  ;;  %v1798_v30 = vshra.s32 %v1796_v43, 16  ;;  %v1782_v55 = vand.u32 65535, %v1781_v38 }
0x11e8   : > { %v1767_v1 = vand.u32 65535, %v1766_v42  ;;  %v1797_v40 = vand.u32 65535, %v1796_v43 }
0x11e9   : > { %v1785_v48 = vcvt.s32.f32 %v1783_v47  ;;  %v1770_v54 = vcvt.s32.f32 %v1768_v29  ;;  %v1800_v27 = vcvt.s32.f32 %v1798_v30  ;;  %v1784_v63 = vcvt.s32.f32 %v1782_v55 }
0x11ea   : > { %v1769_v28 = vcvt.s32.f32 %v1767_v1  ;;  %v1799_v3 = vcvt.s32.f32 %v1797_v40 }
0x11eb   : > { %1786 = vmin.xlane.f32.xlu0 %v1785_v48  ;;  %1771 = vmin.xlane.f32.xlu1 %v1770_v54 }
0x11ef   : > { %1801 = vmin.xlane.f32.xlu1 %v1800_v27 }
0x1278   : > { %v1787_v56 = vpop.xlane.xlu0 %1786  ;;  %v1772_v59 = vpop.xlane.xlu1 %1771 }
0x1279   : > { %vm1788_vm13 = vcmp.eq.f32.partialorder %v1785_v48, %v1787_v56  ;;  %vm1773_vm14 = vcmp.eq.f32.partialorder %v1770_v54, %v1772_v59  ;;  %v1793_v17 = vcvt.f32.s32 %v1787_v56  ;;  %v1778_v5 = vcvt.f32.s32 %v1772_v59 }
0x127a   : > { %v1789_v2 = vsel %vm1788_vm13, %v1784_v63, inf  ;;  %v1774_v45 = vsel %vm1773_vm14, %v1769_v28, inf }
0x127b   : > { %1790 = vmin.xlane.f32.xlu1 %v1789_v2  ;;  %1775 = vmin.xlane.f32.xlu0 %v1774_v45  ;;  %v1794_v60 = vshll.u32 %v1793_v17, 16  ;;  %v1779_v57 = vshll.u32 %v1778_v5, 16 }
0x127c   : > { %v1802_v41 = vpop.xlane.xlu1 %1801 }
0x127d   : > { %vm1803_vm1 = vcmp.eq.f32.partialorder %v1800_v27, %v1802_v41  ;;  %v1808_v13 = vcvt.f32.s32 %v1802_v41 }
0x127e   : > { %v1804_v4 = vsel %vm1803_vm1, %v1799_v3, inf }
0x127f   : > { %1805 = vmin.xlane.f32.xlu0 %v1804_v4  ;;  %v1809_v20 = vshll.u32 %v1808_v13, 16 }
0x1308   : > { %v1791_v10 = vpop.xlane.xlu1 %1790  ;;  %v1776_v11 = vpop.xlane.xlu0 %1775 }
0x1309   : > { %v1792_v18 = vcvt.f32.s32 %v1791_v10  ;;  %v1777_v58 = vcvt.f32.s32 %v1776_v11 }
0x130b   : > { %v1795_v44 = vadd.s32 %v1794_v60, %v1792_v18  ;;  %v1780_v19 = vadd.s32 %v1779_v57, %v1777_v58 }
0x130c   : > { %v1806_v61 = vpop.xlane.xlu0 %1805 }
0x130d   : > { %v1807_v49 = vcvt.f32.s32 %v1806_v61  ;;  %vm1812_vm5 = vcmp.lt.s32.totalorder %v1780_v19, %v1795_v44 }
0x130e   : > { %v1813_v7 = vsel %vm1812_vm5, %v1780_v19, %v1795_v44 }
0x130f   : > { %v1810_v0 = vadd.s32 %v1809_v20, %v1807_v49 }
0x1311   : > { %v1811_v8 = vsel %vm1038_vm8, %v1810_v0, 2147483647 }
0x1312   : > { %vm1814_vm4 = vcmp.lt.s32.totalorder %v1813_v7, %v1811_v8 }
0x1313   : > { %v1815_v22 = vsel %vm1814_vm4, %v1813_v7, %v1811_v8 }
0x1314   : > { %v1816_v23 = vrot.slane %v1815_v22, 4 }
0x1316   : > { %vm1817_vm3 = vcmp.lt.s32.totalorder %v1815_v22, %v1816_v23 }
0x1317   : > { %v1818_v31 = vsel %vm1817_vm3, %v1815_v22, %v1816_v23 }
0x1318   : > { %v1819_v32 = vrot.slane %v1818_v31, 2 }
0x131a   : > { %vm1820_vm12 = vcmp.lt.s32.totalorder %v1818_v31, %v1819_v32 }
0x131b   : > { %v1821_v33 = vsel %vm1820_vm12, %v1818_v31, %v1819_v32 }
0x131c   : > { %v1822_v14 = vrot.slane %v1821_v33, 1 }
0x131e   : > { %vm1823_vm13 = vcmp.lt.s32.totalorder %v1821_v33, %v1822_v14 }
0x131f   : > { %v5175_v34 = vsel %vm1823_vm13, %v1821_v33, %v1822_v14 }
0x1320   : > { %vm1826_vm14 = vcmp.eq.s32.totalorder %v4845_v50, %v5175_v34  ;;  %vm1825_vm1 = vcmp.eq.s32.totalorder %v4848_v51, %v5175_v34  ;;  %vm1827_vm5 = vcmp.eq.s32.totalorder %v4851_v52, %v5175_v34 }
0x1321   : > { %v5184_v35 = vsel %vm1826_vm14, -3e+38, %v5142_v62  ;;  %v5187_v16 = vsel %vm1825_vm1, -3e+38, %v5145_v53  ;;  %v5194_v37 = vsel %vm1827_vm5, -3e+38, %v5155_v6 }
0x1322   : > { %v1834_v36 = vsel %vm961_vm6, %v5184_v35, -inf  ;;  %v1831_v25 = vsel %vm961_vm6, %v5187_v16, -inf  ;;  %v1837_v15 = vsel %vm964_vm7, %v5194_v37, -inf }
0x1323   : > { %1835 = vmax.xlane.f32.xlu0 %v1834_v36  ;;  %1832 = vmax.xlane.f32.xlu1 %v1831_v25 }
0x1327   : > { %1838 = vmax.xlane.f32.xlu1 %v1837_v15 }
0x13b0   : > { %v1833_v62 = vpop.xlane.xlu1 %1832  ;;  %v1836_v38 = vpop.xlane.xlu0 %1835 }
0x13b1   : > { %v1841_v42 = vmax.f32 %v1833_v62, %v1836_v38 }
0x13b4   : > { %v1839_v53 = vpop.xlane.xlu1 %1838 }
0x13b5   : > { %v1840_v43 = vsel %vm1038_vm8, %v1839_v53, -inf }
0x13b6   : > { %v1842_v47 = vmax.f32 %v1841_v42, %v1840_v43 }
0x13b8   : > { %v1843_v29 = vrot.slane %v1842_v47, 4 }
0x13ba   : > { %v1844_v48 = vmax.f32 %v1842_v47, %v1843_v29 }
0x13bc   : > { %v1845_v54 = vrot.slane %v1844_v48, 2 }
0x13be   : > { %v1846_v30 = vmax.f32 %v1844_v48, %v1845_v54 }
0x13c0   : > { %v1847_v27 = vrot.slane %v1846_v30, 1 }
0x13c2   : > { %v5199_v55 = vmax.f32 %v1846_v30, %v1847_v27 }
0x13c4   : > { %vm1850_vm4 = vcmp.ge.f32.partialorder %v5184_v35, %v5199_v55  ;;  %vm1849_vm3 = vcmp.ge.f32.partialorder %v5187_v16, %v5199_v55  ;;  %vm1851_vm12 = vcmp.ge.f32.partialorder %v5194_v37, %v5199_v55 }
0x13c5   : > { %v1853_v6 = vsel %vm1850_vm4, %v4845_v50, 80  ;;  %v1852_v1 = vsel %vm1849_vm3, %v4848_v51, 80  ;;  %v1854_v56 = vsel %vm1851_vm12, %v4851_v52, 80 }
0x13c6   : > { %v1870_v59 = vsel %vm961_vm6, %v1853_v6, 2147483647  ;;  %v1855_v63 = vsel %vm961_vm6, %v1852_v1, 2147483647  ;;  %v1885_v28 = vsel %vm964_vm7, %v1854_v56, 2147483647 }
0x13c7   : > { %v1872_v40 = vshra.s32 %v1870_v59, 16  ;;  %v1857_v2 = vshra.s32 %v1855_v63, 16  ;;  %v1887_v3 = vshra.s32 %v1885_v28, 16  ;;  %v1871_v17 = vand.u32 65535, %v1870_v59 }
0x13c8   : > { %v1856_v5 = vand.u32 65535, %v1855_v63  ;;  %v1886_v13 = vand.u32 65535, %v1885_v28 }
0x13c9   : > { %v1874_v45 = vcvt.s32.f32 %v1872_v40  ;;  %v1859_v41 = vcvt.s32.f32 %v1857_v2  ;;  %v1889_v4 = vcvt.s32.f32 %v1887_v3  ;;  %v1873_v11 = vcvt.s32.f32 %v1871_v17 }
0x13ca   : > { %v1858_v57 = vcvt.s32.f32 %v1856_v5  ;;  %v1888_v19 = vcvt.s32.f32 %v1886_v13 }
0x13cb   : > { %1875 = vmin.xlane.f32.xlu1 %v1874_v45  ;;  %1860 = vmin.xlane.f32.xlu0 %v1859_v41 }
0x13cf   : > { %1890 = vmin.xlane.f32.xlu0 %v1889_v4 }
0x1458   : > { %v1876_v60 = vpop.xlane.xlu1 %1875  ;;  %v1861_v10 = vpop.xlane.xlu0 %1860 }
0x1459   : > { %vm1877_vm13 = vcmp.eq.f32.partialorder %v1874_v45, %v1876_v60  ;;  %vm1862_vm14 = vcmp.eq.f32.partialorder %v1859_v41, %v1861_v10  ;;  %v1882_v20 = vcvt.f32.s32 %v1876_v60  ;;  %v1867_v49 = vcvt.f32.s32 %v1861_v10 }
0x145a   : > { %v1878_v18 = vsel %vm1877_vm13, %v1873_v11, inf  ;;  %v1863_v58 = vsel %vm1862_vm14, %v1858_v57, inf }
0x145b   : > { %1879 = vmin.xlane.f32.xlu0 %v1878_v18  ;;  %1864 = vmin.xlane.f32.xlu1 %v1863_v58  ;;  %v1883_v0 = vshll.u32 %v1882_v20, 16  ;;  %v1868_v22 = vshll.u32 %v1867_v49, 16 }
0x145c   : > { %v1891_v44 = vpop.xlane.xlu0 %1890 }
0x145d   : > { %vm1892_vm1 = vcmp.eq.f32.partialorder %v1889_v4, %v1891_v44  ;;  %v1897_v23 = vcvt.f32.s32 %v1891_v44 }
0x145e   : > { %v1893_v61 = vsel %vm1892_vm1, %v1888_v19, inf }
0x145f   : > { %1894 = vmin.xlane.f32.xlu1 %v1893_v61  ;;  %v1898_v25 = vshll.u32 %v1897_v23, 16 }
0x14e8   : > { %v1880_v7 = vpop.xlane.xlu0 %1879  ;;  %v1865_v8 = vpop.xlane.xlu1 %1864 }
0x14e9   : > { %v1881_v31 = vcvt.f32.s32 %v1880_v7  ;;  %v1866_v32 = vcvt.f32.s32 %v1865_v8 }
0x14eb   : > { %v1884_v33 = vadd.s32 %v1883_v0, %v1881_v31  ;;  %v1869_v14 = vadd.s32 %v1868_v22, %v1866_v32 }
0x14ec   : > { %v1895_v36 = vpop.xlane.xlu1 %1894 }
0x14ed   : > { %v1896_v15 = vcvt.f32.s32 %v1895_v36  ;;  %vm1901_vm5 = vcmp.lt.s32.totalorder %v1869_v14, %v1884_v33 }
0x14ee   : > { %v1902_v38 = vsel %vm1901_vm5, %v1869_v14, %v1884_v33 }
0x14ef   : > { %v1899_v62 = vadd.s32 %v1898_v25, %v1896_v15 }
0x14f1   : > { %v1900_v42 = vsel %vm1038_vm8, %v1899_v62, 2147483647 }
0x14f2   : > { %vm1903_vm4 = vcmp.lt.s32.totalorder %v1902_v38, %v1900_v42 }
0x14f3   : > { %v1904_v53 = vsel %vm1903_vm4, %v1902_v38, %v1900_v42 }
0x14f4   : > { %v1905_v43 = vrot.slane %v1904_v53, 4 }
0x14f6   : > { %vm1906_vm3 = vcmp.lt.s32.totalorder %v1904_v53, %v1905_v43 }
0x14f7   : > { %v1907_v47 = vsel %vm1906_vm3, %v1904_v53, %v1905_v43 }
0x14f8   : > { %v1908_v29 = vrot.slane %v1907_v47, 2 }
0x14fa   : > { %vm1909_vm12 = vcmp.lt.s32.totalorder %v1907_v47, %v1908_v29 }
0x14fb   : > { %v1910_v48 = vsel %vm1909_vm12, %v1907_v47, %v1908_v29 }
0x14fc   : > { %v1911_v54 = vrot.slane %v1910_v48, 1 }
0x14fe   : > { %vm1912_vm13 = vcmp.lt.s32.totalorder %v1910_v48, %v1911_v54 }
0x14ff   : > { %v5214_v30 = vsel %vm1912_vm13, %v1910_v48, %v1911_v54 }
0x1500   : > { %vm1915_vm14 = vcmp.eq.s32.totalorder %v4845_v50, %v5214_v30  ;;  %vm1914_vm1 = vcmp.eq.s32.totalorder %v4848_v51, %v5214_v30  ;;  %vm1916_vm5 = vcmp.eq.s32.totalorder %v4851_v52, %v5214_v30 }
0x1501   : > { %v5223_v27 = vsel %vm1915_vm14, -3e+38, %v5184_v35  ;;  %v5226_v6 = vsel %vm1914_vm1, -3e+38, %v5187_v16  ;;  %v5233_v59 = vsel %vm1916_vm5, -3e+38, %v5194_v37  ;;  %v2817_v37 = vsel %vm2804_vm15, %v5160_v24, %v5199_v55 }
0x1502   : > { %v1923_v1 = vsel %vm961_vm6, %v5223_v27, -inf  ;;  %v1920_v56 = vsel %vm961_vm6, %v5226_v6, -inf  ;;  %v1926_v63 = vsel %vm964_vm7, %v5233_v59, -inf }
0x1503   : > { %1924 = vmax.xlane.f32.xlu1 %v1923_v1  ;;  %1921 = vmax.xlane.f32.xlu0 %v1920_v56 }
0x1507   : > { %1927 = vmax.xlane.f32.xlu0 %v1926_v63 }
0x1590   : > { %v1922_v35 = vpop.xlane.xlu0 %1921  ;;  %v1925_v28 = vpop.xlane.xlu1 %1924 }
0x1591   : > { %v1930_v40 = vmax.f32 %v1922_v35, %v1925_v28 }
0x1594   : > { %v1928_v16 = vpop.xlane.xlu0 %1927 }
0x1595   : > { %v1929_v2 = vsel %vm1038_vm8, %v1928_v16, -inf }
0x1596   : > { %v1931_v45 = vmax.f32 %v1930_v40, %v1929_v2 }
0x1598   : > { %v1932_v41 = vrot.slane %v1931_v45, 4 }
0x159a   : > { %v1933_v3 = vmax.f32 %v1931_v45, %v1932_v41 }
0x159c   : > { %v1934_v4 = vrot.slane %v1933_v3, 2 }
0x159e   : > { %v1935_v17 = vmax.f32 %v1933_v3, %v1934_v4 }
0x15a0   : > { %v1936_v5 = vrot.slane %v1935_v17, 1 }
0x15a2   : > { %v1937_v60 = vmax.f32 %v1935_v17, %v1936_v5 }
0x15a4   : > { %v5242_v10 = vsel %vm2806_vm0, %v2817_v37, %v1937_v60  ;;  %vm1939_vm4 = vcmp.ge.f32.partialorder %v5223_v27, %v1937_v60  ;;  %vm1938_vm3 = vcmp.ge.f32.partialorder %v5226_v6, %v1937_v60  ;;  %vm1940_vm12 = vcmp.ge.f32.partialorder %v5233_v59, %v1937_v60 }
0x15a5   : > { %v1942_v11 = vsel %vm1939_vm4, %v4845_v50, 80  ;;  %v1941_v57 = vsel %vm1938_vm3, %v4848_v51, 80  ;;  %v1943_v13 = vsel %vm1940_vm12, %v4851_v52, 80  ;;  %v2834_v60 = vsel %vm2804_vm15, %v5175_v34, %v5214_v30 }
0x15a6   : > { %v1959_v18 = vsel %vm961_vm6, %v1942_v11, 2147483647  ;;  %v1944_v58 = vsel %vm961_vm6, %v1941_v57, 2147483647  ;;  %v1974_v24 = vsel %vm964_vm7, %v1943_v13, 2147483647 }
0x15a7   : > { %v1961_v55 = vshra.s32 %v1959_v18, 16  ;;  %v1946_v44 = vshra.s32 %v1944_v58, 16  ;;  %v1976_v20 = vshra.s32 %v1974_v24, 16  ;;  %v1945_v0 = vand.u32 65535, %v1944_v58 }
0x15a8   : > { %v1960_v7 = vand.u32 65535, %v1959_v18  ;;  %v1975_v8 = vand.u32 65535, %v1974_v24 }
0x15a9   : > { %v1963_v19 = vcvt.s32.f32 %v1961_v55  ;;  %v1948_v61 = vcvt.s32.f32 %v1946_v44  ;;  %v1978_v49 = vcvt.s32.f32 %v1976_v20  ;;  %v1947_v32 = vcvt.s32.f32 %v1945_v0 }
0x15aa   : > { %v1962_v31 = vcvt.s32.f32 %v1960_v7  ;;  %v1977_v25 = vcvt.s32.f32 %v1975_v8 }
0x15ab   : > { %1964 = vmin.xlane.f32.xlu0 %v1963_v19  ;;  %1949 = vmin.xlane.f32.xlu1 %v1948_v61 }
0x15af   : > { %1979 = vmin.xlane.f32.xlu1 %v1978_v49 }
0x1638   : > { %v1965_v22 = vpop.xlane.xlu0 %1964  ;;  %v1950_v23 = vpop.xlane.xlu1 %1949 }
0x1639   : > { %vm1966_vm13 = vcmp.eq.f32.partialorder %v1963_v19, %v1965_v22  ;;  %vm1951_vm14 = vcmp.eq.f32.partialorder %v1948_v61, %v1950_v23  ;;  %v1971_v62 = vcvt.f32.s32 %v1965_v22  ;;  %v1956_v38 = vcvt.f32.s32 %v1950_v23 }
0x163a   : > { %v1967_v33 = vsel %vm1966_vm13, %v1962_v31, inf  ;;  %v1952_v14 = vsel %vm1951_vm14, %v1947_v32, inf }
0x163b   : > { %1968 = vmin.xlane.f32.xlu1 %v1967_v33  ;;  %1953 = vmin.xlane.f32.xlu0 %v1952_v14  ;;  %v1972_v42 = vshll.u32 %v1971_v62, 16  ;;  %v1957_v47 = vshll.u32 %v1956_v38, 16 }
0x163c   : > { %v1980_v36 = vpop.xlane.xlu1 %1979 }
0x163d   : > { %vm1981_vm1 = vcmp.eq.f32.partialorder %v1978_v49, %v1980_v36  ;;  %v1986_v29 = vcvt.f32.s32 %v1980_v36 }
0x163e   : > { %v1982_v15 = vsel %vm1981_vm1, %v1977_v25, inf }
0x163f   : > { %1983 = vmin.xlane.f32.xlu0 %v1982_v15  ;;  %v1987_v35 = vshll.u32 %v1986_v29, 16 }
0x16c8   : > { %v1969_v53 = vpop.xlane.xlu1 %1968  ;;  %v1954_v43 = vpop.xlane.xlu0 %1953 }
0x16c9   : > { %v1970_v48 = vcvt.f32.s32 %v1969_v53  ;;  %v1955_v54 = vcvt.f32.s32 %v1954_v43 }
0x16cb   : > { %v1973_v1 = vadd.s32 %v1972_v42, %v1970_v48  ;;  %v1958_v56 = vadd.s32 %v1957_v47, %v1955_v54 }
0x16cc   : > { %v1984_v63 = vpop.xlane.xlu0 %1983 }
0x16cd   : > { %v1985_v28 = vcvt.f32.s32 %v1984_v63  ;;  %vm1990_vm5 = vcmp.lt.s32.totalorder %v1958_v56, %v1973_v1 }
0x16ce   : > { %v1991_v16 = vsel %vm1990_vm5, %v1958_v56, %v1973_v1 }
0x16cf   : > { %v1988_v40 = vadd.s32 %v1987_v35, %v1985_v28 }
0x16d1   : > { %v1989_v2 = vsel %vm1038_vm8, %v1988_v40, 2147483647 }
0x16d2   : > { %vm1992_vm4 = vcmp.lt.s32.totalorder %v1991_v16, %v1989_v2 }
0x16d3   : > { %v1993_v45 = vsel %vm1992_vm4, %v1991_v16, %v1989_v2 }
0x16d4   : > { %v1994_v41 = vrot.slane %v1993_v45, 4 }
0x16d6   : > { %vm1995_vm3 = vcmp.lt.s32.totalorder %v1993_v45, %v1994_v41 }
0x16d7   : > { %v1996_v3 = vsel %vm1995_vm3, %v1993_v45, %v1994_v41 }
0x16d8   : > { %v1997_v4 = vrot.slane %v1996_v3, 2 }
0x16da   : > { %vm1998_vm12 = vcmp.lt.s32.totalorder %v1996_v3, %v1997_v4 }
0x16db   : > { %v1999_v17 = vsel %vm1998_vm12, %v1996_v3, %v1997_v4 }
0x16dc   : > { %v2000_v5 = vrot.slane %v1999_v17, 1 }
0x16de   : > { %vm2001_vm13 = vcmp.lt.s32.totalorder %v1999_v17, %v2000_v5 }
0x16df   : > { %v2002_v37 = vsel %vm2001_vm13, %v1999_v17, %v2000_v5 }
0x16e0   : > { %vm2004_vm14 = vcmp.eq.s32.totalorder %v4845_v50, %v2002_v37  ;;  %v5259_v11 = vsel %vm2806_vm0, %v2834_v60, %v2002_v37  ;;  %vm2003_vm1 = vcmp.eq.s32.totalorder %v4848_v51, %v2002_v37  ;;  %vm2005_vm5 = vcmp.eq.s32.totalorder %v4851_v52, %v2002_v37 }
0x16e1   : > { %v5264_v57 = vsel %vm2004_vm14, -3e+38, %v5223_v27  ;;  %v5267_v13 = vsel %vm2003_vm1, -3e+38, %v5226_v6  ;;  %v5274_v30 = vsel %vm2005_vm5, -3e+38, %v5233_v59 }
0x16e2   : > { %v2012_v18 = vsel %vm961_vm6, %v5264_v57, -inf  ;;  %v2009_v34 = vsel %vm961_vm6, %v5267_v13, -inf  ;;  %v2015_v58 = vsel %vm964_vm7, %v5274_v30, -inf }
0x16e3   : > { %2013 = vmax.xlane.f32.xlu0 %v2012_v18  ;;  %2010 = vmax.xlane.f32.xlu1 %v2009_v34 }
0x16e7   : > { %2016 = vmax.xlane.f32.xlu1 %v2015_v58 }
0x1770   : > { %v2011_v27 = vpop.xlane.xlu1 %2010  ;;  %v2014_v24 = vpop.xlane.xlu0 %2013 }
0x1771   : > { %v2019_v55 = vmax.f32 %v2011_v27, %v2014_v24 }
0x1774   : > { %v2017_v6 = vpop.xlane.xlu1 %2016 }
0x1775   : > { %v2018_v44 = vsel %vm1038_vm8, %v2017_v6, -inf }
0x1776   : > { %v2020_v19 = vmax.f32 %v2019_v55, %v2018_v44 }
0x1778   : > { %v2021_v61 = vrot.slane %v2020_v19, 4 }
0x177a   : > { %v2022_v20 = vmax.f32 %v2020_v19, %v2021_v61 }
0x177c   : > { %v2023_v49 = vrot.slane %v2022_v20, 2 }
0x177e   : > { %v2024_v0 = vmax.f32 %v2022_v20, %v2023_v49 }
0x1780   : > { %v2025_v7 = vrot.slane %v2024_v0, 1 }
0x1782   : > { %v2026_v8 = vmax.f32 %v2024_v0, %v2025_v7 }
0x1784   : > { %v5281_v59 = vsel %vm2808_vm11, %v5242_v10, %v2026_v8  ;;  %vm2028_vm4 = vcmp.ge.f32.partialorder %v5264_v57, %v2026_v8  ;;  %vm2027_vm3 = vcmp.ge.f32.partialorder %v5267_v13, %v2026_v8  ;;  %vm2029_vm12 = vcmp.ge.f32.partialorder %v5274_v30, %v2026_v8 }
0x1785   : > { %v2031_v22 = vsel %vm2028_vm4, %v4845_v50, 80  ;;  %v2030_v23 = vsel %vm2027_vm3, %v4848_v51, 80  ;;  %v2032_v31 = vsel %vm2029_vm12, %v4851_v52, 80 }
0x1786   : > { %v2048_v32 = vsel %vm961_vm6, %v2031_v22, 2147483647  ;;  %v2033_v33 = vsel %vm961_vm6, %v2030_v23, 2147483647  ;;  %v2063_v14 = vsel %vm964_vm7, %v2032_v31, 2147483647 }
0x1787   : > { %v2050_v10 = vshra.s32 %v2048_v32, 16  ;;  %v2035_v36 = vshra.s32 %v2033_v33, 16  ;;  %v2065_v62 = vshra.s32 %v2063_v14, 16  ;;  %v2049_v42 = vand.u32 65535, %v2048_v32 }
0x1788   : > { %v2034_v53 = vand.u32 65535, %v2033_v33  ;;  %v2064_v54 = vand.u32 65535, %v2063_v14 }
0x1789   : > { %v2052_v25 = vcvt.s32.f32 %v2050_v10  ;;  %v2037_v15 = vcvt.s32.f32 %v2035_v36  ;;  %v2067_v38 = vcvt.s32.f32 %v2065_v62  ;;  %v2051_v29 = vcvt.s32.f32 %v2049_v42 }
0x178a   : > { %v2036_v48 = vcvt.s32.f32 %v2034_v53  ;;  %v2066_v35 = vcvt.s32.f32 %v2064_v54 }
0x178b   : > { %2053 = vmin.xlane.f32.xlu1 %v2052_v25  ;;  %2038 = vmin.xlane.f32.xlu0 %v2037_v15 }
0x178f   : > { %2068 = vmin.xlane.f32.xlu0 %v2067_v38 }
0x1818   : > { %v2054_v43 = vpop.xlane.xlu1 %2053  ;;  %v2039_v47 = vpop.xlane.xlu0 %2038 }
0x1819   : > { %vm2055_vm13 = vcmp.eq.f32.partialorder %v2052_v25, %v2054_v43  ;;  %vm2040_vm14 = vcmp.eq.f32.partialorder %v2037_v15, %v2039_v47  ;;  %v2060_v40 = vcvt.f32.s32 %v2054_v43  ;;  %v2045_v16 = vcvt.f32.s32 %v2039_v47 }
0x181a   : > { %v2056_v1 = vsel %vm2055_vm13, %v2051_v29, inf  ;;  %v2041_v56 = vsel %vm2040_vm14, %v2036_v48, inf }
0x181b   : > { %2057 = vmin.xlane.f32.xlu0 %v2056_v1  ;;  %2042 = vmin.xlane.f32.xlu1 %v2041_v56  ;;  %v2061_v2 = vshll.u32 %v2060_v40, 16  ;;  %v2046_v3 = vshll.u32 %v2045_v16, 16 }
0x181c   : > { %v2069_v63 = vpop.xlane.xlu0 %2068 }
0x181d   : > { %vm2070_vm1 = vcmp.eq.f32.partialorder %v2067_v38, %v2069_v63  ;;  %v2075_v4 = vcvt.f32.s32 %v2069_v63 }
0x181e   : > { %v2071_v28 = vsel %vm2070_vm1, %v2066_v35, inf }
0x181f   : > { %2072 = vmin.xlane.f32.xlu1 %v2071_v28  ;;  %v2076_v34 = vshll.u32 %v2075_v4, 16 }
0x18a8   : > { %v2058_v45 = vpop.xlane.xlu0 %2057  ;;  %v2043_v41 = vpop.xlane.xlu1 %2042 }
0x18a9   : > { %v2059_v17 = vcvt.f32.s32 %v2058_v45  ;;  %v2044_v5 = vcvt.f32.s32 %v2043_v41 }
0x18ab   : > { %v2062_v60 = vadd.s32 %v2061_v2, %v2059_v17  ;;  %v2047_v37 = vadd.s32 %v2046_v3, %v2044_v5 }
0x18ac   : > { %v2073_v18 = vpop.xlane.xlu1 %2072 }
0x18ad   : > { %v2074_v58 = vcvt.f32.s32 %v2073_v18  ;;  %vm2079_vm5 = vcmp.lt.s32.totalorder %v2047_v37, %v2062_v60 }
0x18ae   : > { %v2080_v24 = vsel %vm2079_vm5, %v2047_v37, %v2062_v60 }
0x18af   : > { %v2077_v27 = vadd.s32 %v2076_v34, %v2074_v58 }
0x18b1   : > { %v2078_v55 = vsel %vm1038_vm8, %v2077_v27, 2147483647 }
0x18b2   : > { %vm2081_vm4 = vcmp.lt.s32.totalorder %v2080_v24, %v2078_v55 }
0x18b3   : > { %v2082_v6 = vsel %vm2081_vm4, %v2080_v24, %v2078_v55 }
0x18b4   : > { %v2083_v44 = vrot.slane %v2082_v6, 4 }
0x18b6   : > { %vm2084_vm3 = vcmp.lt.s32.totalorder %v2082_v6, %v2083_v44 }
0x18b7   : > { %v2085_v19 = vsel %vm2084_vm3, %v2082_v6, %v2083_v44 }
0x18b8   : > { %v2086_v61 = vrot.slane %v2085_v19, 2 }
0x18ba   : > { %vm2087_vm12 = vcmp.lt.s32.totalorder %v2085_v19, %v2086_v61 }
0x18bb   : > { %v2088_v20 = vsel %vm2087_vm12, %v2085_v19, %v2086_v61 }
0x18bc   : > { %v2089_v49 = vrot.slane %v2088_v20, 1 }
0x18be   : > { %vm2090_vm13 = vcmp.lt.s32.totalorder %v2088_v20, %v2089_v49 }
0x18bf   : > { %v2091_v0 = vsel %vm2090_vm13, %v2088_v20, %v2089_v49 }
0x18c0   : > { %vm2093_vm14 = vcmp.eq.s32.totalorder %v4845_v50, %v2091_v0  ;;  %v5296_v7 = vsel %vm2808_vm11, %v5259_v11, %v2091_v0  ;;  %vm2092_vm1 = vcmp.eq.s32.totalorder %v4848_v51, %v2091_v0  ;;  %vm2094_vm5 = vcmp.eq.s32.totalorder %v4851_v52, %v2091_v0 }
0x18c1   : > { %v5301_v8 = vsel %vm2093_vm14, -3e+38, %v5264_v57  ;;  %v5304_v22 = vsel %vm2092_vm1, -3e+38, %v5267_v13  ;;  %v5311_v11 = vsel %vm2094_vm5, -3e+38, %v5274_v30 }
0x18c2   : > { %v2101_v23 = vsel %vm961_vm6, %v5301_v8, -inf  ;;  %v2098_v31 = vsel %vm961_vm6, %v5304_v22, -inf  ;;  %v2104_v32 = vsel %vm964_vm7, %v5311_v11, -inf }
0x18c3   : > { %2102 = vmax.xlane.f32.xlu1 %v2101_v23  ;;  %2099 = vmax.xlane.f32.xlu0 %v2098_v31 }
0x18c7   : > { %2105 = vmax.xlane.f32.xlu0 %v2104_v32 }
0x1950   : > { %v2100_v57 = vpop.xlane.xlu0 %2099  ;;  %v2103_v33 = vpop.xlane.xlu1 %2102 }
0x1951   : > { %v2108_v14 = vmax.f32 %v2100_v57, %v2103_v33 }
0x1954   : > { %v2106_v13 = vpop.xlane.xlu0 %2105 }
0x1955   : > { %v2107_v10 = vsel %vm1038_vm8, %v2106_v13, -inf }
0x1956   : > { %v2109_v36 = vmax.f32 %v2108_v14, %v2107_v10 }
0x1958   : > { %v2110_v25 = vrot.slane %v2109_v36, 4 }
0x195a   : > { %v2111_v15 = vmax.f32 %v2109_v36, %v2110_v25 }
0x195c   : > { %v2112_v62 = vrot.slane %v2111_v15, 2 }
0x195e   : > { %v2113_v38 = vmax.f32 %v2111_v15, %v2112_v62 }
0x1960   : > { %v2114_v42 = vrot.slane %v2113_v38, 1 }
0x1962   : > { %v2115_v53 = vmax.f32 %v2113_v38, %v2114_v42 }
0x1964   : > { %v5318_v30 = vsel %vm1038_vm8, %v5281_v59, %v2115_v53  ;;  %vm2117_vm4 = vcmp.ge.f32.partialorder %v5301_v8, %v2115_v53  ;;  %vm2116_vm3 = vcmp.ge.f32.partialorder %v5304_v22, %v2115_v53  ;;  %vm2118_vm12 = vcmp.ge.f32.partialorder %v5311_v11, %v2115_v53 }
0x1965   : > { %v2120_v43 = vsel %vm2117_vm4, %v4845_v50, 80  ;;  %v2119_v47 = vsel %vm2116_vm3, %v4848_v51, 80  ;;  %v2121_v29 = vsel %vm2118_vm12, %v4851_v52, 80 }
0x1966   : > { %v2137_v48 = vsel %vm961_vm6, %v2120_v43, 2147483647  ;;  %v2122_v54 = vsel %vm961_vm6, %v2119_v47, 2147483647  ;;  %v2152_v1 = vsel %vm964_vm7, %v2121_v29, 2147483647 }
0x1967   : > { %v2139_v59 = vshra.s32 %v2137_v48, 16  ;;  %v2124_v56 = vshra.s32 %v2122_v54, 16  ;;  %v2154_v28 = vshra.s32 %v2152_v1, 16  ;;  %v2138_v16 = vand.u32 65535, %v2137_v48 }
0x1968   : > { %v2123_v2 = vand.u32 65535, %v2122_v54  ;;  %v2153_v17 = vand.u32 65535, %v2152_v1 }
0x1969   : > { %v2141_v63 = vcvt.s32.f32 %v2139_v59  ;;  %v2126_v35 = vcvt.s32.f32 %v2124_v56  ;;  %v2156_v40 = vcvt.s32.f32 %v2154_v28  ;;  %v2140_v3 = vcvt.s32.f32 %v2138_v16 }
0x196a   : > { %v2125_v4 = vcvt.s32.f32 %v2123_v2  ;;  %v2155_v18 = vcvt.s32.f32 %v2153_v17 }
0x196b   : > { %2142 = vmin.xlane.f32.xlu0 %v2141_v63  ;;  %2127 = vmin.xlane.f32.xlu1 %v2126_v35 }
0x196f   : > { %2157 = vmin.xlane.f32.xlu1 %v2156_v40 }
0x19f8   : > { %v2143_v45 = vpop.xlane.xlu0 %2142  ;;  %v2128_v41 = vpop.xlane.xlu1 %2127 }
0x19f9   : > { %vm2144_vm13 = vcmp.eq.f32.partialorder %v2141_v63, %v2143_v45  ;;  %vm2129_vm14 = vcmp.eq.f32.partialorder %v2126_v35, %v2128_v41  ;;  %v2149_v58 = vcvt.f32.s32 %v2143_v45  ;;  %v2134_v27 = vcvt.f32.s32 %v2128_v41 }
0x19fa   : > { %v2145_v5 = vsel %vm2144_vm13, %v2140_v3, inf  ;;  %v2130_v60 = vsel %vm2129_vm14, %v2125_v4, inf }
0x19fb   : > { %2146 = vmin.xlane.f32.xlu1 %v2145_v5  ;;  %2131 = vmin.xlane.f32.xlu0 %v2130_v60  ;;  %v2150_v24 = vshll.u32 %v2149_v58, 16  ;;  %v2135_v44 = vshll.u32 %v2134_v27, 16 }
0x19fc   : > { %v2158_v37 = vpop.xlane.xlu1 %2157 }
0x19fd   : > { %vm2159_vm1 = vcmp.eq.f32.partialorder %v2156_v40, %v2158_v37  ;;  %v2164_v19 = vcvt.f32.s32 %v2158_v37 }
0x19fe   : > { %v2160_v34 = vsel %vm2159_vm1, %v2155_v18, inf }
0x19ff   : > { %2161 = vmin.xlane.f32.xlu0 %v2160_v34  ;;  %v2165_v31 = vshll.u32 %v2164_v19, 16 }
0x1a88   : > { %v2147_v55 = vpop.xlane.xlu1 %2146  ;;  %v2132_v6 = vpop.xlane.xlu0 %2131 }
0x1a89   : > { %v2148_v61 = vcvt.f32.s32 %v2147_v55  ;;  %v2133_v20 = vcvt.f32.s32 %v2132_v6 }
0x1a8b   : > { %v2151_v49 = vadd.s32 %v2150_v24, %v2148_v61  ;;  %v2136_v0 = vadd.s32 %v2135_v44, %v2133_v20 }
0x1a8c   : > { %v2162_v23 = vpop.xlane.xlu0 %2161 }
0x1a8d   : > { %v2163_v32 = vcvt.f32.s32 %v2162_v23  ;;  %vm2168_vm5 = vcmp.lt.s32.totalorder %v2136_v0, %v2151_v49 }
0x1a8e   : > { %v2169_v33 = vsel %vm2168_vm5, %v2136_v0, %v2151_v49 }
0x1a8f   : > { %v2166_v57 = vadd.s32 %v2165_v31, %v2163_v32 }
0x1a91   : > { %v2167_v14 = vsel %vm1038_vm8, %v2166_v57, 2147483647 }
0x1a92   : > { %vm2170_vm4 = vcmp.lt.s32.totalorder %v2169_v33, %v2167_v14 }
0x1a93   : > { %v2171_v13 = vsel %vm2170_vm4, %v2169_v33, %v2167_v14 }
0x1a94   : > { %v2172_v10 = vrot.slane %v2171_v13, 4 }
0x1a96   : > { %vm2173_vm3 = vcmp.lt.s32.totalorder %v2171_v13, %v2172_v10 }
0x1a97   : > { %v2174_v36 = vsel %vm2173_vm3, %v2171_v13, %v2172_v10 }
0x1a98   : > { %v2175_v25 = vrot.slane %v2174_v36, 2 }
0x1a9a   : > { %vm2176_vm12 = vcmp.lt.s32.totalorder %v2174_v36, %v2175_v25 }
0x1a9b   : > { %v2177_v15 = vsel %vm2176_vm12, %v2174_v36, %v2175_v25 }
0x1a9c   : > { %v2178_v62 = vrot.slane %v2177_v15, 1 }
0x1a9e   : > { %vm2179_vm13 = vcmp.lt.s32.totalorder %v2177_v15, %v2178_v62 }
0x1a9f   : > { %v2180_v38 = vsel %vm2179_vm13, %v2177_v15, %v2178_v62 }
0x1aa0   : > { %vm2182_vm14 = vcmp.eq.s32.totalorder %v4845_v50, %v2180_v38  ;;  %v5333_v42 = vsel %vm1038_vm8, %v5296_v7, %v2180_v38  ;;  %vm2181_vm1 = vcmp.eq.s32.totalorder %v4848_v51, %v2180_v38  ;;  %vm2183_vm5 = vcmp.eq.s32.totalorder %v4851_v52, %v2180_v38 }
0x1aa1   : > { %v5338_v53 = vsel %vm2182_vm14, -3e+38, %v5301_v8  ;;  %v5341_v43 = vsel %vm2181_vm1, -3e+38, %v5304_v22  ;;  %v5348_v7 = vsel %vm2183_vm5, -3e+38, %v5311_v11 }
0x1aa2   : > { %v2190_v47 = vsel %vm961_vm6, %v5338_v53, -inf  ;;  %v2187_v29 = vsel %vm961_vm6, %v5341_v43, -inf  ;;  %v2193_v48 = vsel %vm964_vm7, %v5348_v7, -inf }
0x1aa3   : > { %2191 = vmax.xlane.f32.xlu0 %v2190_v47  ;;  %2188 = vmax.xlane.f32.xlu1 %v2187_v29 }
0x1aa7   : > { %2194 = vmax.xlane.f32.xlu1 %v2193_v48 }
0x1b30   : > { %v2189_v8 = vpop.xlane.xlu1 %2188  ;;  %v2192_v54 = vpop.xlane.xlu0 %2191 }
0x1b31   : > { %v2197_v1 = vmax.f32 %v2189_v8, %v2192_v54 }
0x1b34   : > { %v2195_v22 = vpop.xlane.xlu1 %2194 }
0x1b35   : > { %v2196_v59 = vsel %vm1038_vm8, %v2195_v22, -inf }
0x1b36   : > { %v2198_v56 = vmax.f32 %v2197_v1, %v2196_v59 }
0x1b38   : > { %v2199_v63 = vrot.slane %v2198_v56, 4 }
0x1b3a   : > { %v2200_v35 = vmax.f32 %v2198_v56, %v2199_v63 }
0x1b3c   : > { %v2201_v28 = vrot.slane %v2200_v35, 2 }
0x1b3e   : > { %v2202_v40 = vmax.f32 %v2200_v35, %v2201_v28 }
0x1b40   : > { %v2203_v16 = vrot.slane %v2202_v40, 1 }
0x1b42   : > { %v2204_v2 = vmax.f32 %v2202_v40, %v2203_v16 }
0x1b44   : > { %v5355_v11 = vsel %vm2811_vm2, %v5318_v30, %v2204_v2  ;;  %vm2206_vm4 = vcmp.ge.f32.partialorder %v5338_v53, %v2204_v2  ;;  %vm2205_vm3 = vcmp.ge.f32.partialorder %v5341_v43, %v2204_v2  ;;  %vm2207_vm12 = vcmp.ge.f32.partialorder %v5348_v7, %v2204_v2 }
0x1b45   : > { %v2209_v45 = vsel %vm2206_vm4, %v4845_v50, 80  ;;  %v2208_v41 = vsel %vm2205_vm3, %v4848_v51, 80  ;;  %v2210_v3 = vsel %vm2207_vm12, %v4851_v52, 80 }
0x1b46   : > { %v2226_v4 = vsel %vm961_vm6, %v2209_v45, 2147483647  ;;  %v2211_v17 = vsel %vm961_vm6, %v2208_v41, 2147483647  ;;  %v2241_v5 = vsel %vm964_vm7, %v2210_v3, 2147483647 }
0x1b47   : > { %v2228_v30 = vshra.s32 %v2226_v4, 16  ;;  %v2213_v60 = vshra.s32 %v2211_v17, 16  ;;  %v2243_v34 = vshra.s32 %v2241_v5, 16  ;;  %v2227_v27 = vand.u32 65535, %v2226_v4 }
0x1b48   : > { %v2212_v24 = vand.u32 65535, %v2211_v17  ;;  %v2242_v61 = vand.u32 65535, %v2241_v5 }
0x1b49   : > { %v2230_v37 = vcvt.s32.f32 %v2228_v30  ;;  %v2215_v18 = vcvt.s32.f32 %v2213_v60  ;;  %v2245_v58 = vcvt.s32.f32 %v2243_v34  ;;  %v2229_v44 = vcvt.s32.f32 %v2227_v27 }
0x1b4a   : > { %v2214_v19 = vcvt.s32.f32 %v2212_v24  ;;  %v2244_v23 = vcvt.s32.f32 %v2242_v61 }
0x1b4b   : > { %2231 = vmin.xlane.f32.xlu1 %v2230_v37  ;;  %2216 = vmin.xlane.f32.xlu0 %v2215_v18 }
0x1b4f   : > { %2246 = vmin.xlane.f32.xlu0 %v2245_v58 }
0x1bd8   : > { %v2232_v55 = vpop.xlane.xlu1 %2231  ;;  %v2217_v6 = vpop.xlane.xlu0 %2216 }
0x1bd9   : > { %vm2233_vm13 = vcmp.eq.f32.partialorder %v2230_v37, %v2232_v55  ;;  %vm2218_vm14 = vcmp.eq.f32.partialorder %v2215_v18, %v2217_v6  ;;  %v2238_v32 = vcvt.f32.s32 %v2232_v55  ;;  %v2223_v57 = vcvt.f32.s32 %v2217_v6 }
0x1bda   : > { %v2234_v20 = vsel %vm2233_vm13, %v2229_v44, inf  ;;  %v2219_v49 = vsel %vm2218_vm14, %v2214_v19, inf }
0x1bdb   : > { %2235 = vmin.xlane.f32.xlu0 %v2234_v20  ;;  %2220 = vmin.xlane.f32.xlu1 %v2219_v49  ;;  %v2239_v33 = vshll.u32 %v2238_v32, 16  ;;  %v2224_v10 = vshll.u32 %v2223_v57, 16 }
0x1bdc   : > { %v2247_v0 = vpop.xlane.xlu0 %2246 }
0x1bdd   : > { %vm2248_vm1 = vcmp.eq.f32.partialorder %v2245_v58, %v2247_v0  ;;  %v2253_v36 = vcvt.f32.s32 %v2247_v0 }
0x1bde   : > { %v2249_v31 = vsel %vm2248_vm1, %v2244_v23, inf }
0x1bdf   : > { %2250 = vmin.xlane.f32.xlu1 %v2249_v31  ;;  %v2254_v29 = vshll.u32 %v2253_v36, 16 }
0x1c68   : > { %v2236_v14 = vpop.xlane.xlu0 %2235  ;;  %v2221_v13 = vpop.xlane.xlu1 %2220 }
0x1c69   : > { %v2237_v25 = vcvt.f32.s32 %v2236_v14  ;;  %v2222_v15 = vcvt.f32.s32 %v2221_v13 }
0x1c6b   : > { %v2240_v62 = vadd.s32 %v2239_v33, %v2237_v25  ;;  %v2225_v38 = vadd.s32 %v2224_v10, %v2222_v15 }
0x1c6c   : > { %v2251_v47 = vpop.xlane.xlu1 %2250 }
0x1c6d   : > { %v2252_v48 = vcvt.f32.s32 %v2251_v47  ;;  %vm2257_vm5 = vcmp.lt.s32.totalorder %v2225_v38, %v2240_v62 }
0x1c6e   : > { %v2258_v54 = vsel %vm2257_vm5, %v2225_v38, %v2240_v62 }
0x1c6f   : > { %v2255_v8 = vadd.s32 %v2254_v29, %v2252_v48 }
0x1c71   : > { %v2256_v1 = vsel %vm1038_vm8, %v2255_v8, 2147483647 }
0x1c72   : > { %vm2259_vm4 = vcmp.lt.s32.totalorder %v2258_v54, %v2256_v1 }
0x1c73   : > { %v2260_v22 = vsel %vm2259_vm4, %v2258_v54, %v2256_v1 }
0x1c74   : > { %v2261_v59 = vrot.slane %v2260_v22, 4 }
0x1c76   : > { %vm2262_vm3 = vcmp.lt.s32.totalorder %v2260_v22, %v2261_v59 }
0x1c77   : > { %v2263_v56 = vsel %vm2262_vm3, %v2260_v22, %v2261_v59 }
0x1c78   : > { %v2264_v63 = vrot.slane %v2263_v56, 2 }
0x1c7a   : > { %vm2265_vm12 = vcmp.lt.s32.totalorder %v2263_v56, %v2264_v63 }
0x1c7b   : > { %v2266_v35 = vsel %vm2265_vm12, %v2263_v56, %v2264_v63 }
0x1c7c   : > { %v2267_v28 = vrot.slane %v2266_v35, 1 }
0x1c7e   : > { %vm2268_vm13 = vcmp.lt.s32.totalorder %v2266_v35, %v2267_v28 }
0x1c7f   : > { %v2269_v40 = vsel %vm2268_vm13, %v2266_v35, %v2267_v28 }
0x1c80   : > { %vm2271_vm14 = vcmp.eq.s32.totalorder %v4845_v50, %v2269_v40  ;;  %v5370_v16 = vsel %vm2811_vm2, %v5333_v42, %v2269_v40  ;;  %vm2270_vm1 = vcmp.eq.s32.totalorder %v4848_v51, %v2269_v40  ;;  %vm2272_vm5 = vcmp.eq.s32.totalorder %v4851_v52, %v2269_v40 }
0x1c81   : > { %v5375_v2 = vsel %vm2271_vm14, -3e+38, %v5338_v53  ;;  %v5378_v45 = vsel %vm2270_vm1, -3e+38, %v5341_v43  ;;  %v5385_v42 = vsel %vm2272_vm5, -3e+38, %v5348_v7 }
0x1c82   : > { %v2279_v41 = vsel %vm961_vm6, %v5375_v2, -inf  ;;  %v2276_v3 = vsel %vm961_vm6, %v5378_v45, -inf  ;;  %v2282_v4 = vsel %vm964_vm7, %v5385_v42, -inf  ;;  %vm5904_vm2 = vcmask 1045504  }
0x1c83   : > { %2280 = vmax.xlane.f32.xlu1 %v2279_v41  ;;  %2277 = vmax.xlane.f32.xlu0 %v2276_v3 }
0x1c87   : > { %2283 = vmax.xlane.f32.xlu0 %v2282_v4 }
0x1d10   : > { %v2278_v53 = vpop.xlane.xlu0 %2277  ;;  %v2281_v17 = vpop.xlane.xlu1 %2280 }
0x1d11   : > { %v2286_v5 = vmax.f32 %v2278_v53, %v2281_v17 }
0x1d14   : > { %v2284_v43 = vpop.xlane.xlu0 %2283 }
0x1d15   : > { %v2285_v30 = vsel %vm1038_vm8, %v2284_v43, -inf }
0x1d16   : > { %v2287_v60 = vmax.f32 %v2286_v5, %v2285_v30 }
0x1d18   : > { %v2288_v37 = vrot.slane %v2287_v60, 4 }
0x1d1a   : > { %v2289_v18 = vmax.f32 %v2287_v60, %v2288_v37 }
0x1d1c   : > { %v2290_v34 = vrot.slane %v2289_v18, 2 }
0x1d1e   : > { %v2291_v58 = vmax.f32 %v2289_v18, %v2290_v34 }
0x1d20   : > { %v2292_v27 = vrot.slane %v2291_v58, 1 }
0x1d22   : > { %v2293_v24 = vmax.f32 %v2291_v58, %v2292_v27 }
0x1d24   : > { %v5392_v7 = vsel %vm5904_vm2, %v5355_v11, %v2293_v24  ;;  %vm2295_vm4 = vcmp.ge.f32.partialorder %v5375_v2, %v2293_v24  ;;  %vm2294_vm3 = vcmp.ge.f32.partialorder %v5378_v45, %v2293_v24  ;;  %vm2296_vm12 = vcmp.ge.f32.partialorder %v5385_v42, %v2293_v24 }
0x1d25   : > { %v2298_v55 = vsel %vm2295_vm4, %v4845_v50, 80  ;;  %v2297_v6 = vsel %vm2294_vm3, %v4848_v51, 80  ;;  %v2299_v44 = vsel %vm2296_vm12, %v4851_v52, 80 }
0x1d26   : > { %v2315_v19 = vsel %vm961_vm6, %v2298_v55, 2147483647  ;;  %v2300_v61 = vsel %vm961_vm6, %v2297_v6, 2147483647  ;;  %v2330_v20 = vsel %vm964_vm7, %v2299_v44, 2147483647 }
0x1d27   : > { %v2317_v11 = vshra.s32 %v2315_v19, 16  ;;  %v2302_v49 = vshra.s32 %v2300_v61, 16  ;;  %v2332_v31 = vshra.s32 %v2330_v20, 16  ;;  %v2316_v57 = vand.u32 65535, %v2315_v19 }
0x1d28   : > { %v2301_v33 = vand.u32 65535, %v2300_v61  ;;  %v2331_v25 = vand.u32 65535, %v2330_v20 }
0x1d29   : > { %v2319_v0 = vcvt.s32.f32 %v2317_v11  ;;  %v2304_v23 = vcvt.s32.f32 %v2302_v49  ;;  %v2334_v32 = vcvt.s32.f32 %v2332_v31  ;;  %v2318_v10 = vcvt.s32.f32 %v2316_v57 }
0x1d2a   : > { %v2303_v36 = vcvt.s32.f32 %v2301_v33  ;;  %v2333_v47 = vcvt.s32.f32 %v2331_v25 }
0x1d2b   : > { %2320 = vmin.xlane.f32.xlu0 %v2319_v0  ;;  %2305 = vmin.xlane.f32.xlu1 %v2304_v23 }
0x1d2f   : > { %2335 = vmin.xlane.f32.xlu1 %v2334_v32 }
0x1db8   : > { %v2321_v14 = vpop.xlane.xlu0 %2320  ;;  %v2306_v13 = vpop.xlane.xlu1 %2305 }
0x1db9   : > { %vm2322_vm13 = vcmp.eq.f32.partialorder %v2319_v0, %v2321_v14  ;;  %vm2307_vm14 = vcmp.eq.f32.partialorder %v2304_v23, %v2306_v13  ;;  %v2327_v48 = vcvt.f32.s32 %v2321_v14  ;;  %v2312_v8 = vcvt.f32.s32 %v2306_v13 }
0x1dba   : > { %v2323_v15 = vsel %vm2322_vm13, %v2318_v10, inf  ;;  %v2308_v62 = vsel %vm2307_vm14, %v2303_v36, inf }
0x1dbb   : > { %2324 = vmin.xlane.f32.xlu1 %v2323_v15  ;;  %2309 = vmin.xlane.f32.xlu0 %v2308_v62  ;;  %v2328_v54 = vshll.u32 %v2327_v48, 16  ;;  %v2313_v59 = vshll.u32 %v2312_v8, 16 }
0x1dbc   : > { %v2336_v38 = vpop.xlane.xlu1 %2335 }
0x1dbd   : > { %vm2337_vm1 = vcmp.eq.f32.partialorder %v2334_v32, %v2336_v38  ;;  %v2342_v56 = vcvt.f32.s32 %v2336_v38 }
0x1dbe   : > { %v2338_v29 = vsel %vm2337_vm1, %v2333_v47, inf }
0x1dbf   : > { %2339 = vmin.xlane.f32.xlu0 %v2338_v29  ;;  %v2343_v3 = vshll.u32 %v2342_v56, 16 }
0x1e48   : > { %v2325_v1 = vpop.xlane.xlu1 %2324  ;;  %v2310_v22 = vpop.xlane.xlu0 %2309 }
0x1e49   : > { %v2326_v63 = vcvt.f32.s32 %v2325_v1  ;;  %v2311_v35 = vcvt.f32.s32 %v2310_v22 }
0x1e4b   : > { %v2329_v28 = vadd.s32 %v2328_v54, %v2326_v63  ;;  %v2314_v40 = vadd.s32 %v2313_v59, %v2311_v35 }
0x1e4c   : > { %v2340_v41 = vpop.xlane.xlu0 %2339 }
0x1e4d   : > { %v2341_v4 = vcvt.f32.s32 %v2340_v41  ;;  %vm2346_vm5 = vcmp.lt.s32.totalorder %v2314_v40, %v2329_v28 }
0x1e4e   : > { %v2347_v17 = vsel %vm2346_vm5, %v2314_v40, %v2329_v28  ;;  %vm5905_vm5 = vcmask 1045504  }
0x1e4f   : > { %v2344_v53 = vadd.s32 %v2343_v3, %v2341_v4 }
0x1e51   : > { %v2345_v5 = vsel %vm1038_vm8, %v2344_v53, 2147483647 }
0x1e52   : > { %vm2348_vm2 = vcmp.lt.s32.totalorder %v2347_v17, %v2345_v5 }
0x1e53   : > { %v2349_v43 = vsel %vm2348_vm2, %v2347_v17, %v2345_v5 }
0x1e54   : > { %v2350_v30 = vrot.slane %v2349_v43, 4 }
0x1e56   : > { %vm2351_vm4 = vcmp.lt.s32.totalorder %v2349_v43, %v2350_v30 }
0x1e57   : > { %v2352_v60 = vsel %vm2351_vm4, %v2349_v43, %v2350_v30 }
0x1e58   : > { %v2353_v37 = vrot.slane %v2352_v60, 2 }
0x1e5a   : > { %vm2354_vm3 = vcmp.lt.s32.totalorder %v2352_v60, %v2353_v37 }
0x1e5b   : > { %v2355_v18 = vsel %vm2354_vm3, %v2352_v60, %v2353_v37 }
0x1e5c   : > { %v2356_v34 = vrot.slane %v2355_v18, 1 }
0x1e5e   : > { %vm2357_vm12 = vcmp.lt.s32.totalorder %v2355_v18, %v2356_v34 }
0x1e5f   : > { %v2358_v58 = vsel %vm2357_vm12, %v2355_v18, %v2356_v34 }
0x1e60   : > { %vm2360_vm13 = vcmp.eq.s32.totalorder %v4845_v50, %v2358_v58  ;;  %vm2359_vm14 = vcmp.eq.s32.totalorder %v4848_v51, %v2358_v58  ;;  %vm2361_vm1 = vcmp.eq.s32.totalorder %v4851_v52, %v2358_v58  ;;  %v5409_v27 = vsel %vm5905_vm5, %v5370_v16, %v2358_v58 }
0x1e61   : > { %v5412_v24 = vsel %vm2360_vm13, -3e+38, %v5375_v2  ;;  %v5415_v55 = vsel %vm2359_vm14, -3e+38, %v5378_v45  ;;  %v5422_v19 = vsel %vm2361_vm1, -3e+38, %v5385_v42 }
0x1e62   : > { %v2368_v6 = vsel %vm961_vm6, %v5412_v24, -inf  ;;  %v2365_v44 = vsel %vm961_vm6, %v5415_v55, -inf  ;;  %v2371_v16 = vsel %vm964_vm7, %v5422_v19, -inf  ;;  %v5429_v42 = vsel %vm3593_vm9, %v5125_v39, -inf }
0x1e63   : > { %2369 = vmax.xlane.f32.xlu0 %v2368_v6  ;;  %2366 = vmax.xlane.f32.xlu1 %v2365_v44 }
0x1e67   : > { %2372 = vmax.xlane.f32.xlu1 %v2371_v16 }
0x1ef0   : > { %v2367_v2 = vpop.xlane.xlu1 %2366  ;;  %v2370_v61 = vpop.xlane.xlu0 %2369 }
0x1ef1   : > { %v2375_v20 = vmax.f32 %v2367_v2, %v2370_v61 }
0x1ef4   : > { %v2373_v45 = vpop.xlane.xlu1 %2372 }
0x1ef5   : > { %v2374_v11 = vsel %vm1038_vm8, %v2373_v45, -inf }
0x1ef6   : > { %v2376_v49 = vmax.f32 %v2375_v20, %v2374_v11 }
0x1ef8   : > { %v2377_v0 = vrot.slane %v2376_v49, 4 }
0x1efa   : > { %v2378_v23 = vmax.f32 %v2376_v49, %v2377_v0 }
0x1efc   : > { %v2379_v31 = vrot.slane %v2378_v23, 2 }
0x1efe   : > { %v2380_v32 = vmax.f32 %v2378_v23, %v2379_v31 }
0x1f00   : > { %v2381_v57 = vrot.slane %v2380_v32, 1 }
0x1f02   : > { %v2382_v33 = vmax.f32 %v2380_v32, %v2381_v57 }
0x1f04   : > { %vm2384_vm2 = vcmp.ge.f32.partialorder %v5412_v24, %v2382_v33  ;;  %vm2383_vm4 = vcmp.ge.f32.partialorder %v5415_v55, %v2382_v33  ;;  %vm2385_vm3 = vcmp.ge.f32.partialorder %v5422_v19, %v2382_v33  ;;  %v5436_v14 = vsel %vm2815_vm10, %v5392_v7, %v2382_v33 }
0x1f05   : > { %v2387_v13 = vsel %vm2384_vm2, %v4845_v50, 80  ;;  %v2386_v10 = vsel %vm2383_vm4, %v4848_v51, 80  ;;  %v2388_v36 = vsel %vm2385_vm3, %v4851_v52, 80  ;;  %v5443_v25 = vsel %vm3593_vm9, %v5436_v14, -inf }
0x1f06   : > { %v2404_v15 = vsel %vm961_vm6, %v2387_v13, 2147483647  ;;  %v2389_v62 = vsel %vm961_vm6, %v2386_v10, 2147483647  ;;  %v2419_v38 = vsel %vm964_vm7, %v2388_v36, 2147483647  ;;  %v3598_v7 = vmax.f32 %v5429_v42, %v5443_v25 }
0x1f07   : > { %v2406_v47 = vshra.s32 %v2404_v15, 16  ;;  %v2391_v29 = vshra.s32 %v2389_v62, 16  ;;  %v2421_v54 = vshra.s32 %v2419_v38, 16  ;;  %v2405_v22 = vand.u32 65535, %v2404_v15 }
0x1f08   : > { %v2390_v59 = vand.u32 65535, %v2389_v62  ;;  %v2420_v40 = vand.u32 65535, %v2419_v38 }
0x1f09   : > { %v2408_v48 = vcvt.s32.f32 %v2406_v47  ;;  %v2393_v8 = vcvt.s32.f32 %v2391_v29  ;;  %v2423_v1 = vcvt.s32.f32 %v2421_v54  ;;  %v2407_v35 = vcvt.s32.f32 %v2405_v22 }
0x1f0a   : > { %v2392_v28 = vcvt.s32.f32 %v2390_v59  ;;  %v2422_v53 = vcvt.s32.f32 %v2420_v40 }
0x1f0b   : > { %2409 = vmin.xlane.f32.xlu1 %v2408_v48  ;;  %2394 = vmin.xlane.f32.xlu0 %v2393_v8 }
0x1f0f   : > { %2424 = vmin.xlane.f32.xlu0 %v2423_v1 }
0x1f98   : > { %v2410_v56 = vpop.xlane.xlu1 %2409  ;;  %v2395_v63 = vpop.xlane.xlu0 %2394 }
0x1f99   : > { %vm2411_vm12 = vcmp.eq.f32.partialorder %v2408_v48, %v2410_v56  ;;  %vm2396_vm13 = vcmp.eq.f32.partialorder %v2393_v8, %v2395_v63  ;;  %v2416_v5 = vcvt.f32.s32 %v2410_v56  ;;  %v2401_v43 = vcvt.f32.s32 %v2395_v63 }
0x1f9a   : > { %v2412_v41 = vsel %vm2411_vm12, %v2407_v35, inf  ;;  %v2397_v3 = vsel %vm2396_vm13, %v2392_v28, inf }
0x1f9b   : > { %2413 = vmin.xlane.f32.xlu0 %v2412_v41  ;;  %2398 = vmin.xlane.f32.xlu1 %v2397_v3  ;;  %v2417_v30 = vshll.u32 %v2416_v5, 16  ;;  %v2402_v18 = vshll.u32 %v2401_v43, 16 }
0x1f9c   : > { %v2425_v4 = vpop.xlane.xlu0 %2424 }
0x1f9d   : > { %vm2426_vm14 = vcmp.eq.f32.partialorder %v2423_v1, %v2425_v4  ;;  %v2431_v34 = vcvt.f32.s32 %v2425_v4 }
0x1f9e   : > { %v2427_v17 = vsel %vm2426_vm14, %v2422_v53, inf }
0x1f9f   : > { %2428 = vmin.xlane.f32.xlu1 %v2427_v17  ;;  %v2432_v61 = vshll.u32 %v2431_v34, 16 }
0x2028   : > { %v2414_v60 = vpop.xlane.xlu0 %2413  ;;  %v2399_v37 = vpop.xlane.xlu1 %2398 }
0x2029   : > { %v2415_v58 = vcvt.f32.s32 %v2414_v60  ;;  %v2400_v6 = vcvt.f32.s32 %v2399_v37 }
0x202b   : > { %v2418_v44 = vadd.s32 %v2417_v30, %v2415_v58  ;;  %v2403_v16 = vadd.s32 %v2402_v18, %v2400_v6 }
0x202c   : > { %v2429_v2 = vpop.xlane.xlu1 %2428 }
0x202d   : > { %v2430_v20 = vcvt.f32.s32 %v2429_v2  ;;  %vm2435_vm1 = vcmp.lt.s32.totalorder %v2403_v16, %v2418_v44 }
0x202e   : > { %v2436_v11 = vsel %vm2435_vm1, %v2403_v16, %v2418_v44 }
0x202f   : > { %v2433_v45 = vadd.s32 %v2432_v61, %v2430_v20 }
0x2031   : > { %v2434_v49 = vsel %vm1038_vm8, %v2433_v45, 2147483647 }
0x2032   : > { %vm2437_vm5 = vcmp.lt.s32.totalorder %v2436_v11, %v2434_v49 }
0x2033   : > { %v2438_v0 = vsel %vm2437_vm5, %v2436_v11, %v2434_v49 }
0x2034   : > { %v2439_v23 = vrot.slane %v2438_v0, 4 }
0x2036   : > { %vm2440_vm2 = vcmp.lt.s32.totalorder %v2438_v0, %v2439_v23 }
0x2037   : > { %v2441_v31 = vsel %vm2440_vm2, %v2438_v0, %v2439_v23 }
0x2038   : > { %v2442_v32 = vrot.slane %v2441_v31, 2 }
0x203a   : > { %vm2443_vm4 = vcmp.lt.s32.totalorder %v2441_v31, %v2442_v32 }
0x203b   : > { %v2444_v57 = vsel %vm2443_vm4, %v2441_v31, %v2442_v32 }
0x203c   : > { %v2445_v33 = vrot.slane %v2444_v57, 1 }
0x203e   : > { %vm2446_vm3 = vcmp.lt.s32.totalorder %v2444_v57, %v2445_v33 }
0x203f   : > { %v2447_v13 = vsel %vm2446_vm3, %v2444_v57, %v2445_v33 }
0x2040   : > { %vm2449_vm12 = vcmp.eq.s32.totalorder %v4845_v50, %v2447_v13  ;;  %vm2448_vm13 = vcmp.eq.s32.totalorder %v4848_v51, %v2447_v13  ;;  %vm2450_vm14 = vcmp.eq.s32.totalorder %v4851_v52, %v2447_v13  ;;  %v5456_v10 = vsel %vm2815_vm10, %v5409_v27, %v2447_v13 }
0x2041   : > { %v5459_v36 = vsel %vm2449_vm12, -3e+38, %v5412_v24  ;;  %v5462_v15 = vsel %vm2448_vm13, -3e+38, %v5415_v55  ;;  %3616 = vst.msk [vmem:[%s4738_s6 + $0x8] sm:$0xff] %vm3593_vm9, %v5456_v10 }
0x2042   : > { %v2457_v62 = vsel %vm961_vm6, %v5459_v36, -inf  ;;  %v2454_v38 = vsel %vm961_vm6, %v5462_v15, -inf  ;;  %v5472_v27 = vsel %vm2450_vm14, -3e+38, %v5422_v19 }
0x2043   : > { %2458 = vmax.xlane.f32.xlu1 %v2457_v62  ;;  %2455 = vmax.xlane.f32.xlu0 %v2454_v38  ;;  %v2460_v24 = vsel %vm964_vm7, %v5472_v27, -inf }
0x2047   : > { %2461 = vmax.xlane.f32.xlu0 %v2460_v24 }
0x20d0   : > { %v2456_v55 = vpop.xlane.xlu0 %2455  ;;  %v2459_v47 = vpop.xlane.xlu1 %2458 }
0x20d1   : > { %v2464_v29 = vmax.f32 %v2456_v55, %v2459_v47 }
0x20d4   : > { %v2462_v48 = vpop.xlane.xlu0 %2461 }
0x20d5   : > { %v2463_v8 = vsel %vm1038_vm8, %v2462_v48, -inf }
0x20d6   : > { %v2465_v54 = vmax.f32 %v2464_v29, %v2463_v8 }
0x20d8   : > { %v2466_v1 = vrot.slane %v2465_v54, 4 }
0x20da   : > { %v2467_v22 = vmax.f32 %v2465_v54, %v2466_v1 }
0x20dc   : > { %v2468_v59 = vrot.slane %v2467_v22, 2 }
0x20de   : > { %v2469_v56 = vmax.f32 %v2467_v22, %v2468_v59 }
0x20e0   : > { %v2470_v63 = vrot.slane %v2469_v56, 1 }
0x20e2   : > { %v5477_v35 = vmax.f32 %v2469_v56, %v2470_v63 }
0x20e4   : > { %vm2473_vm10 = vcmp.ge.f32.partialorder %v5459_v36, %v5477_v35  ;;  %vm2472_vm1 = vcmp.ge.f32.partialorder %v5462_v15, %v5477_v35  ;;  %vm2474_vm5 = vcmp.ge.f32.partialorder %v5472_v27, %v5477_v35 }
0x20e5   : > { %v2476_v19 = vsel %vm2473_vm10, %v4845_v50, 80  ;;  %v2475_v28 = vsel %vm2472_vm1, %v4848_v51, 80  ;;  %v2477_v40 = vsel %vm2474_vm5, %v4851_v52, 80 }
0x20e6   : > { %v2493_v41 = vsel %vm961_vm6, %v2476_v19, 2147483647  ;;  %v2478_v3 = vsel %vm961_vm6, %v2475_v28, 2147483647  ;;  %v2508_v4 = vsel %vm964_vm7, %v2477_v40, 2147483647 }
0x20e7   : > { %v2495_v53 = vshra.s32 %v2493_v41, 16  ;;  %v2480_v17 = vshra.s32 %v2478_v3, 16  ;;  %v2510_v30 = vshra.s32 %v2508_v4, 16  ;;  %v2494_v37 = vand.u32 65535, %v2493_v41 }
0x20e8   : > { %v2479_v18 = vand.u32 65535, %v2478_v3  ;;  %v2509_v16 = vand.u32 65535, %v2508_v4 }
0x20e9   : > { %v2497_v5 = vcvt.s32.f32 %v2495_v53  ;;  %v2482_v43 = vcvt.s32.f32 %v2480_v17  ;;  %v2512_v60 = vcvt.s32.f32 %v2510_v30  ;;  %v2496_v6 = vcvt.s32.f32 %v2494_v37 }
0x20ea   : > { %v2481_v44 = vcvt.s32.f32 %v2479_v18  ;;  %v2511_v45 = vcvt.s32.f32 %v2509_v16 }
0x20eb   : > { %2498 = vmin.xlane.f32.xlu0 %v2497_v5  ;;  %2483 = vmin.xlane.f32.xlu1 %v2482_v43 }
0x20ef   : > { %2513 = vmin.xlane.f32.xlu1 %v2512_v60 }
0x2178   : > { %v2499_v34 = vpop.xlane.xlu0 %2498  ;;  %v2484_v58 = vpop.xlane.xlu1 %2483 }
0x2179   : > { %vm2500_vm2 = vcmp.eq.f32.partialorder %v2497_v5, %v2499_v34  ;;  %vm2485_vm4 = vcmp.eq.f32.partialorder %v2482_v43, %v2484_v58  ;;  %v2505_v49 = vcvt.f32.s32 %v2499_v34  ;;  %v2490_v0 = vcvt.f32.s32 %v2484_v58 }
0x217a   : > { %v2501_v2 = vsel %vm2500_vm2, %v2496_v6, inf  ;;  %v2486_v61 = vsel %vm2485_vm4, %v2481_v44, inf }
0x217b   : > { %2502 = vmin.xlane.f32.xlu1 %v2501_v2  ;;  %2487 = vmin.xlane.f32.xlu0 %v2486_v61  ;;  %v2506_v23 = vshll.u32 %v2505_v49, 16  ;;  %v2491_v57 = vshll.u32 %v2490_v0, 16 }
0x217c   : > { %v2514_v20 = vpop.xlane.xlu1 %2513 }
0x217d   : > { %vm2515_vm3 = vcmp.eq.f32.partialorder %v2512_v60, %v2514_v20  ;;  %v2520_v33 = vcvt.f32.s32 %v2514_v20 }
0x217e   : > { %v2516_v11 = vsel %vm2515_vm3, %v2511_v45, inf }
0x217f   : > { %2517 = vmin.xlane.f32.xlu0 %v2516_v11  ;;  %v2521_v47 = vshll.u32 %v2520_v33, 16 }
0x2208   : > { %v2503_v31 = vpop.xlane.xlu1 %2502  ;;  %v2488_v32 = vpop.xlane.xlu0 %2487 }
0x2209   : > { %v2504_v13 = vcvt.f32.s32 %v2503_v31  ;;  %v2489_v62 = vcvt.f32.s32 %v2488_v32 }
0x220b   : > { %v2507_v38 = vadd.s32 %v2506_v23, %v2504_v13  ;;  %v2492_v24 = vadd.s32 %v2491_v57, %v2489_v62 }
0x220c   : > { %v2518_v55 = vpop.xlane.xlu0 %2517 }
0x220d   : > { %v2519_v29 = vcvt.f32.s32 %v2518_v55  ;;  %vm2524_vm12 = vcmp.lt.s32.totalorder %v2492_v24, %v2507_v38 }
0x220e   : > { %v2525_v8 = vsel %vm2524_vm12, %v2492_v24, %v2507_v38 }
0x220f   : > { %v2522_v48 = vadd.s32 %v2521_v47, %v2519_v29 }
0x2211   : > { %v2523_v54 = vsel %vm1038_vm8, %v2522_v48, 2147483647 }
0x2212   : > { %vm2526_vm13 = vcmp.lt.s32.totalorder %v2525_v8, %v2523_v54 }
0x2213   : > { %v2527_v1 = vsel %vm2526_vm13, %v2525_v8, %v2523_v54 }
0x2214   : > { %v2528_v22 = vrot.slane %v2527_v1, 4 }
0x2216   : > { %vm2529_vm14 = vcmp.lt.s32.totalorder %v2527_v1, %v2528_v22 }
0x2217   : > { %v2530_v59 = vsel %vm2529_vm14, %v2527_v1, %v2528_v22 }
0x2218   : > { %v2531_v56 = vrot.slane %v2530_v59, 2 }
0x221a   : > { %vm2532_vm10 = vcmp.lt.s32.totalorder %v2530_v59, %v2531_v56 }
0x221b   : > { %v2533_v63 = vsel %vm2532_vm10, %v2530_v59, %v2531_v56 }
0x221c   : > { %v2534_v19 = vrot.slane %v2533_v63, 1 }
0x221e   : > { %vm2535_vm1 = vcmp.lt.s32.totalorder %v2533_v63, %v2534_v19 }
0x221f   : > { %v5492_v28 = vsel %vm2535_vm1, %v2533_v63, %v2534_v19 }
0x2220   : > { %vm2538_vm5 = vcmp.eq.s32.totalorder %v4845_v50, %v5492_v28  ;;  %vm2537_vm2 = vcmp.eq.s32.totalorder %v4848_v51, %v5492_v28  ;;  %vm2539_vm4 = vcmp.eq.s32.totalorder %v4851_v52, %v5492_v28 }
0x2221   : > { %v5501_v40 = vsel %vm2538_vm5, -3e+38, %v5459_v36  ;;  %v5504_v41 = vsel %vm2537_vm2, -3e+38, %v5462_v15  ;;  %v5511_v53 = vsel %vm2539_vm4, -3e+38, %v5472_v27 }
0x2222   : > { %v2546_v3 = vsel %vm961_vm6, %v5501_v40, -inf  ;;  %v2543_v4 = vsel %vm961_vm6, %v5504_v41, -inf  ;;  %v2549_v17 = vsel %vm964_vm7, %v5511_v53, -inf }
0x2223   : > { %2547 = vmax.xlane.f32.xlu0 %v2546_v3  ;;  %2544 = vmax.xlane.f32.xlu1 %v2543_v4 }
0x2227   : > { %2550 = vmax.xlane.f32.xlu1 %v2549_v17 }
0x22b0   : > { %v2545_v36 = vpop.xlane.xlu1 %2544  ;;  %v2548_v5 = vpop.xlane.xlu0 %2547 }
0x22b1   : > { %v2553_v43 = vmax.f32 %v2545_v36, %v2548_v5 }
0x22b4   : > { %v2551_v15 = vpop.xlane.xlu1 %2550 }
0x22b5   : > { %v2552_v30 = vsel %vm1038_vm8, %v2551_v15, -inf }
0x22b6   : > { %v2554_v60 = vmax.f32 %v2553_v43, %v2552_v30 }
0x22b8   : > { %v2555_v37 = vrot.slane %v2554_v60, 4 }
0x22ba   : > { %v2556_v18 = vmax.f32 %v2554_v60, %v2555_v37 }
0x22bc   : > { %v2557_v34 = vrot.slane %v2556_v18, 2 }
0x22be   : > { %v2558_v58 = vmax.f32 %v2556_v18, %v2557_v34 }
0x22c0   : > { %v2559_v6 = vrot.slane %v2558_v58, 1 }
0x22c2   : > { %v5516_v44 = vmax.f32 %v2558_v58, %v2559_v6 }
0x22c4   : > { %vm2562_vm3 = vcmp.ge.f32.partialorder %v5501_v40, %v5516_v44  ;;  %vm2561_vm12 = vcmp.ge.f32.partialorder %v5504_v41, %v5516_v44  ;;  %vm2563_vm13 = vcmp.ge.f32.partialorder %v5511_v53, %v5516_v44 }
0x22c5   : > { %v2565_v27 = vsel %vm2562_vm3, %v4845_v50, 80  ;;  %v2564_v16 = vsel %vm2561_vm12, %v4848_v51, 80  ;;  %v2566_v2 = vsel %vm2563_vm13, %v4851_v52, 80 }
0x22c6   : > { %v2582_v61 = vsel %vm961_vm6, %v2565_v27, 2147483647  ;;  %v2567_v20 = vsel %vm961_vm6, %v2564_v16, 2147483647  ;;  %v2597_v45 = vsel %vm964_vm7, %v2566_v2, 2147483647 }
0x22c7   : > { %v2584_v11 = vshra.s32 %v2582_v61, 16  ;;  %v2569_v49 = vshra.s32 %v2567_v20, 16  ;;  %v2599_v31 = vshra.s32 %v2597_v45, 16  ;;  %v2583_v57 = vand.u32 65535, %v2582_v61 }
0x22c8   : > { %v2568_v33 = vand.u32 65535, %v2567_v20  ;;  %v2598_v55 = vand.u32 65535, %v2597_v45 }
0x22c9   : > { %v2586_v0 = vcvt.s32.f32 %v2584_v11  ;;  %v2571_v23 = vcvt.s32.f32 %v2569_v49  ;;  %v2601_v32 = vcvt.s32.f32 %v2599_v31  ;;  %v2585_v38 = vcvt.s32.f32 %v2583_v57 }
0x22ca   : > { %v2570_v24 = vcvt.s32.f32 %v2568_v33  ;;  %v2600_v8 = vcvt.s32.f32 %v2598_v55 }
0x22cb   : > { %2587 = vmin.xlane.f32.xlu1 %v2586_v0  ;;  %2572 = vmin.xlane.f32.xlu0 %v2571_v23 }
0x22cf   : > { %2602 = vmin.xlane.f32.xlu0 %v2601_v32 }
0x2358   : > { %v2588_v13 = vpop.xlane.xlu1 %2587  ;;  %v2573_v62 = vpop.xlane.xlu0 %2572 }
0x2359   : > { %vm2589_vm14 = vcmp.eq.f32.partialorder %v2586_v0, %v2588_v13  ;;  %vm2574_vm10 = vcmp.eq.f32.partialorder %v2571_v23, %v2573_v62  ;;  %v2594_v1 = vcvt.f32.s32 %v2588_v13  ;;  %v2579_v22 = vcvt.f32.s32 %v2573_v62 }
0x235a   : > { %v2590_v47 = vsel %vm2589_vm14, %v2585_v38, inf  ;;  %v2575_v29 = vsel %vm2574_vm10, %v2570_v24, inf }
0x235b   : > { %2591 = vmin.xlane.f32.xlu0 %v2590_v47  ;;  %2576 = vmin.xlane.f32.xlu1 %v2575_v29  ;;  %v2595_v59 = vshll.u32 %v2594_v1, 16  ;;  %v2580_v19 = vshll.u32 %v2579_v22, 16 }
0x235c   : > { %v2603_v48 = vpop.xlane.xlu0 %2602 }
0x235d   : > { %vm2604_vm1 = vcmp.eq.f32.partialorder %v2601_v32, %v2603_v48  ;;  %v2609_v3 = vcvt.f32.s32 %v2603_v48 }
0x235e   : > { %v2605_v54 = vsel %vm2604_vm1, %v2600_v8, inf }
0x235f   : > { %2606 = vmin.xlane.f32.xlu1 %v2605_v54  ;;  %v2610_v15 = vshll.u32 %v2609_v3, 16 }
0x23e8   : > { %v2592_v56 = vpop.xlane.xlu0 %2591  ;;  %v2577_v63 = vpop.xlane.xlu1 %2576 }
0x23e9   : > { %v2593_v4 = vcvt.f32.s32 %v2592_v56  ;;  %v2578_v17 = vcvt.f32.s32 %v2577_v63 }
0x23eb   : > { %v2596_v36 = vadd.s32 %v2595_v59, %v2593_v4  ;;  %v2581_v5 = vadd.s32 %v2580_v19, %v2578_v17 }
0x23ec   : > { %v2607_v43 = vpop.xlane.xlu1 %2606 }
0x23ed   : > { %v2608_v30 = vcvt.f32.s32 %v2607_v43  ;;  %vm2613_vm5 = vcmp.lt.s32.totalorder %v2581_v5, %v2596_v36 }
0x23ee   : > { %v2614_v37 = vsel %vm2613_vm5, %v2581_v5, %v2596_v36 }
0x23ef   : > { %v2611_v60 = vadd.s32 %v2610_v15, %v2608_v30 }
0x23f1   : > { %v2612_v18 = vsel %vm1038_vm8, %v2611_v60, 2147483647 }
0x23f2   : > { %vm2615_vm2 = vcmp.lt.s32.totalorder %v2614_v37, %v2612_v18 }
0x23f3   : > { %v2616_v34 = vsel %vm2615_vm2, %v2614_v37, %v2612_v18 }
0x23f4   : > { %v2617_v58 = vrot.slane %v2616_v34, 4 }
0x23f6   : > { %vm2618_vm4 = vcmp.lt.s32.totalorder %v2616_v34, %v2617_v58 }
0x23f7   : > { %v2619_v6 = vsel %vm2618_vm4, %v2616_v34, %v2617_v58 }
0x23f8   : > { %v2620_v27 = vrot.slane %v2619_v6, 2 }
0x23fa   : > { %vm2621_vm3 = vcmp.lt.s32.totalorder %v2619_v6, %v2620_v27 }
0x23fb   : > { %v2622_v16 = vsel %vm2621_vm3, %v2619_v6, %v2620_v27 }
0x23fc   : > { %v2623_v2 = vrot.slane %v2622_v16, 1 }
0x23fe   : > { %vm2624_vm12 = vcmp.lt.s32.totalorder %v2622_v16, %v2623_v2 }
0x23ff   : > { %v5531_v61 = vsel %vm2624_vm12, %v2622_v16, %v2623_v2 }
0x2400   : > { %vm2627_vm13 = vcmp.eq.s32.totalorder %v4845_v50, %v5531_v61  ;;  %vm2626_vm14 = vcmp.eq.s32.totalorder %v4848_v51, %v5531_v61  ;;  %vm2628_vm10 = vcmp.eq.s32.totalorder %v4851_v52, %v5531_v61 }
0x2401   : > { %v5540_v20 = vsel %vm2627_vm13, -3e+38, %v5501_v40  ;;  %v5543_v45 = vsel %vm2626_vm14, -3e+38, %v5504_v41  ;;  %v5550_v0 = vsel %vm2628_vm10, -3e+38, %v5511_v53  ;;  %v2824_v53 = vsel %vm2804_vm15, %v5477_v35, %v5516_v44 }
0x2402   : > { %v2635_v11 = vsel %vm961_vm6, %v5540_v20, -inf  ;;  %v2632_v49 = vsel %vm961_vm6, %v5543_v45, -inf  ;;  %v2638_v23 = vsel %vm964_vm7, %v5550_v0, -inf }
0x2403   : > { %2636 = vmax.xlane.f32.xlu1 %v2635_v11  ;;  %2633 = vmax.xlane.f32.xlu0 %v2632_v49 }
0x2407   : > { %2639 = vmax.xlane.f32.xlu0 %v2638_v23 }
0x2490   : > { %v2634_v40 = vpop.xlane.xlu0 %2633  ;;  %v2637_v31 = vpop.xlane.xlu1 %2636 }
0x2491   : > { %v2642_v32 = vmax.f32 %v2634_v40, %v2637_v31 }
0x2494   : > { %v2640_v41 = vpop.xlane.xlu0 %2639 }
0x2495   : > { %v2641_v57 = vsel %vm1038_vm8, %v2640_v41, -inf }
0x2496   : > { %v2643_v33 = vmax.f32 %v2642_v32, %v2641_v57 }
0x2498   : > { %v2644_v13 = vrot.slane %v2643_v33, 4 }
0x249a   : > { %v2645_v62 = vmax.f32 %v2643_v33, %v2644_v13 }
0x249c   : > { %v2646_v38 = vrot.slane %v2645_v62, 2 }
0x249e   : > { %v2647_v24 = vmax.f32 %v2645_v62, %v2646_v38 }
0x24a0   : > { %v2648_v55 = vrot.slane %v2647_v24, 1 }
0x24a2   : > { %v2649_v47 = vmax.f32 %v2647_v24, %v2648_v55 }
0x24a4   : > { %v5559_v29 = vsel %vm2806_vm0, %v2824_v53, %v2649_v47  ;;  %vm2651_vm1 = vcmp.ge.f32.partialorder %v5540_v20, %v2649_v47  ;;  %vm2650_vm5 = vcmp.ge.f32.partialorder %v5543_v45, %v2649_v47  ;;  %vm2652_vm2 = vcmp.ge.f32.partialorder %v5550_v0, %v2649_v47 }
0x24a5   : > { %v2654_v48 = vsel %vm2651_vm1, %v4845_v50, 80  ;;  %v2653_v8 = vsel %vm2650_vm5, %v4848_v51, 80  ;;  %v2655_v54 = vsel %vm2652_vm2, %v4851_v52, 80 }
0x24a6   : > { %v2671_v1 = vsel %vm961_vm6, %v2654_v48, 2147483647  ;;  %v2656_v22 = vsel %vm961_vm6, %v2653_v8, 2147483647  ;;  %v2686_v35 = vsel %vm964_vm7, %v2655_v54, 2147483647 }
0x24a7   : > { %v2673_v44 = vshra.s32 %v2671_v1, 16  ;;  %v2658_v59 = vshra.s32 %v2656_v22, 16  ;;  %v2688_v19 = vshra.s32 %v2686_v35, 16  ;;  %v2672_v4 = vand.u32 65535, %v2671_v1 }
0x24a8   : > { %v2657_v17 = vand.u32 65535, %v2656_v22  ;;  %v2687_v30 = vand.u32 65535, %v2686_v35  ;;  %v2841_v1 = vsel %vm2804_vm15, %v5492_v28, %v5531_v61 }
0x24a9   : > { %v2675_v56 = vcvt.s32.f32 %v2673_v44  ;;  %v2660_v63 = vcvt.s32.f32 %v2658_v59  ;;  %v2690_v3 = vcvt.s32.f32 %v2688_v19  ;;  %v2674_v43 = vcvt.s32.f32 %v2672_v4 }
0x24aa   : > { %v2659_v15 = vcvt.s32.f32 %v2657_v17  ;;  %v2689_v34 = vcvt.s32.f32 %v2687_v30 }
0x24ab   : > { %2676 = vmin.xlane.f32.xlu0 %v2675_v56  ;;  %2661 = vmin.xlane.f32.xlu1 %v2660_v63 }
0x24af   : > { %2691 = vmin.xlane.f32.xlu1 %v2690_v3 }
0x2538   : > { %v2677_v36 = vpop.xlane.xlu0 %2676  ;;  %v2662_v5 = vpop.xlane.xlu1 %2661 }
0x2539   : > { %vm2678_vm4 = vcmp.eq.f32.partialorder %v2675_v56, %v2677_v36  ;;  %vm2663_vm3 = vcmp.eq.f32.partialorder %v2660_v63, %v2662_v5  ;;  %v2683_v6 = vcvt.f32.s32 %v2677_v36  ;;  %v2668_v27 = vcvt.f32.s32 %v2662_v5 }
0x253a   : > { %v2679_v60 = vsel %vm2678_vm4, %v2674_v43, inf  ;;  %v2664_v37 = vsel %vm2663_vm3, %v2659_v15, inf }
0x253b   : > { %2680 = vmin.xlane.f32.xlu1 %v2679_v60  ;;  %2665 = vmin.xlane.f32.xlu0 %v2664_v37  ;;  %v2684_v16 = vshll.u32 %v2683_v6, 16  ;;  %v2669_v49 = vshll.u32 %v2668_v27, 16 }
0x253c   : > { %v2692_v18 = vpop.xlane.xlu1 %2691 }
0x253d   : > { %vm2693_vm12 = vcmp.eq.f32.partialorder %v2690_v3, %v2692_v18  ;;  %v2698_v23 = vcvt.f32.s32 %v2692_v18 }
0x253e   : > { %v2694_v58 = vsel %vm2693_vm12, %v2689_v34, inf }
0x253f   : > { %2695 = vmin.xlane.f32.xlu0 %v2694_v58  ;;  %v2699_v33 = vshll.u32 %v2698_v23, 16 }
0x25c8   : > { %v2681_v2 = vpop.xlane.xlu1 %2680  ;;  %v2666_v11 = vpop.xlane.xlu0 %2665 }
0x25c9   : > { %v2682_v40 = vcvt.f32.s32 %v2681_v2  ;;  %v2667_v31 = vcvt.f32.s32 %v2666_v11 }
0x25cb   : > { %v2685_v32 = vadd.s32 %v2684_v16, %v2682_v40  ;;  %v2670_v41 = vadd.s32 %v2669_v49, %v2667_v31 }
0x25cc   : > { %v2696_v57 = vpop.xlane.xlu0 %2695 }
0x25cd   : > { %v2697_v13 = vcvt.f32.s32 %v2696_v57  ;;  %vm2702_vm13 = vcmp.lt.s32.totalorder %v2670_v41, %v2685_v32 }
0x25ce   : > { %v2703_v38 = vsel %vm2702_vm13, %v2670_v41, %v2685_v32 }
0x25cf   : > { %v2700_v62 = vadd.s32 %v2699_v33, %v2697_v13 }
0x25d1   : > { %v2701_v24 = vsel %vm1038_vm8, %v2700_v62, 2147483647 }
0x25d2   : > { %vm2704_vm14 = vcmp.lt.s32.totalorder %v2703_v38, %v2701_v24 }
0x25d3   : > { %v2705_v55 = vsel %vm2704_vm14, %v2703_v38, %v2701_v24 }
0x25d4   : > { %v2706_v47 = vrot.slane %v2705_v55, 4 }
0x25d6   : > { %vm2707_vm10 = vcmp.lt.s32.totalorder %v2705_v55, %v2706_v47 }
0x25d7   : > { %v2708_v53 = vsel %vm2707_vm10, %v2705_v55, %v2706_v47 }
0x25d8   : > { %v2709_v48 = vrot.slane %v2708_v53, 2 }
0x25da   : > { %vm2710_vm1 = vcmp.lt.s32.totalorder %v2708_v53, %v2709_v48 }
0x25db   : > { %v2711_v8 = vsel %vm2710_vm1, %v2708_v53, %v2709_v48 }
0x25dc   : > { %v2712_v54 = vrot.slane %v2711_v8, 1 }
0x25de   : > { %vm2713_vm5 = vcmp.lt.s32.totalorder %v2711_v8, %v2712_v54 }
0x25df   : > { %v2714_v22 = vsel %vm2713_vm5, %v2711_v8, %v2712_v54  ;;  %v2845_v54 = vshra.s32 %v5456_v10, 2 }
0x25e0   : > { %vm2716_vm2 = vcmp.eq.s32.totalorder %v4845_v50, %v2714_v22  ;;  %v5576_v35 = vsel %vm2806_vm0, %v2841_v1, %v2714_v22  ;;  %vm2715_vm4 = vcmp.eq.s32.totalorder %v4848_v51, %v2714_v22  ;;  %vm2717_vm3 = vcmp.eq.s32.totalorder %v4851_v52, %v2714_v22 }
0x25e1   : > { %v2719_v44 = vsel %vm2716_vm2, -3e+38, %v5540_v20  ;;  %v2718_v59 = vsel %vm2715_vm4, -3e+38, %v5543_v45  ;;  %v2720_v28 = vsel %vm2717_vm3, -3e+38, %v5550_v0 }
0x25e2   : > { %v2724_v56 = vsel %vm961_vm6, %v2719_v44, -inf  ;;  %v2721_v63 = vsel %vm961_vm6, %v2718_v59, -inf  ;;  %v2727_v61 = vsel %vm964_vm7, %v2720_v28, -inf  ;;  %vm3596_vm0 = vcmask 3072  }
0x25e3   : > { %2725 = vmax.xlane.f32.xlu0 %v2724_v56  ;;  %2722 = vmax.xlane.f32.xlu1 %v2721_v63  ;;  %v2844_v1 = vshra.s32 %v5139_v21, 2  ;;  %v2847_v22 = vand.u32 3, %v5139_v21  ;;  %vm2868_vm2 = vcmask 162816  }
0x25e7   : > { %2728 = vmax.xlane.f32.xlu1 %v2727_v61 }
0x2670   : > { %v2723_v19 = vpop.xlane.xlu1 %2722  ;;  %v2726_v3 = vpop.xlane.xlu0 %2725 }
0x2671   : > { %v2731_v4 = vmax.f32 %v2723_v19, %v2726_v3 }
0x2674   : > { %v2729_v17 = vpop.xlane.xlu1 %2728 }
0x2675   : > { %v2730_v36 = vsel %vm1038_vm8, %v2729_v17, -inf }
0x2676   : > { %v2732_v20 = vmax.f32 %v2731_v4, %v2730_v36 }
0x2678   : > { %v2733_v5 = vrot.slane %v2732_v20, 4 }
0x267a   : > { %v2734_v45 = vmax.f32 %v2732_v20, %v2733_v5 }
0x267c   : > { %v2735_v43 = vrot.slane %v2734_v45, 2 }
0x267e   : > { %v2736_v15 = vmax.f32 %v2734_v45, %v2735_v43 }
0x2680   : > { %v2737_v30 = vrot.slane %v2736_v15, 1 }
0x2682   : > { %v2738_v60 = vmax.f32 %v2736_v15, %v2737_v30 }
0x2684   : > { %v2826_v0 = vsel %vm2808_vm11, %v5559_v29, %v2738_v60  ;;  %vm2740_vm12 = vcmp.ge.f32.partialorder %v2719_v44, %v2738_v60  ;;  %vm2739_vm13 = vcmp.ge.f32.partialorder %v2718_v59, %v2738_v60  ;;  %vm2741_vm14 = vcmp.ge.f32.partialorder %v2720_v28, %v2738_v60 }
0x2685   : > { %v2743_v37 = vsel %vm2740_vm12, %v4845_v50, 80  ;;  %v2742_v18 = vsel %vm2739_vm13, %v4848_v51, 80  ;;  %v2744_v34 = vsel %vm2741_vm14, %v4851_v52, 80  ;;  %v3597_v58 = vsel %vm3596_vm0, %v2826_v0, -inf }
0x2686   : > { %v2760_v6 = vsel %vm961_vm6, %v2743_v37, 2147483647  ;;  %v2745_v27 = vsel %vm961_vm6, %v2742_v18, 2147483647  ;;  %v2775_v16 = vsel %vm964_vm7, %v2744_v34, 2147483647  ;;  %v3599_v29 = vmax.f32 %v3598_v7, %v3597_v58 }
0x2687   : > { %v2762_v2 = vshra.s32 %v2760_v6, 16  ;;  %v2747_v11 = vshra.s32 %v2745_v27, 16  ;;  %v2777_v52 = vshra.s32 %v2775_v16, 16  ;;  %v2761_v33 = vand.u32 65535, %v2760_v6 }
0x2688   : > { %v3600_v49 = vrot.slane %v3599_v29, 4  ;;  %v2746_v13 = vand.u32 65535, %v2745_v27  ;;  %v2776_v47 = vand.u32 65535, %v2775_v16  ;;  %vm5906_vm13 = vmmov 0  }
0x2689   : > { %v2764_v50 = vcvt.s32.f32 %v2762_v2  ;;  %v2749_v51 = vcvt.s32.f32 %v2747_v11  ;;  %v2779_v31 = vcvt.s32.f32 %v2777_v52  ;;  %v2763_v24 = vcvt.s32.f32 %v2761_v33 }
0x268a   : > { %v3601_v23 = vmax.f32 %v3599_v29, %v3600_v49  ;;  %v2748_v55 = vcvt.s32.f32 %v2746_v13  ;;  %v2778_v48 = vcvt.s32.f32 %v2776_v47  ;;  %v4521_v52 = vmov 1  }
0x268b   : > { %2765 = vmin.xlane.f32.xlu1 %v2764_v50  ;;  %2750 = vmin.xlane.f32.xlu0 %v2749_v51 }
0x268c   : > { %v3602_v40 = vrot.slane %v3601_v23, 2 }
0x268e   : > { %v3603_v32 = vmax.f32 %v3601_v23, %v3602_v40  ;;  %v2960_v23 = vld [vmem:[%s5834_s5] sm:$0xff]  ;;  %v2962_v40 = vld [vmem:[%s5834_s5 + $0x10] sm:$0xff] }
0x268f   : > { %2780 = vmin.xlane.f32.xlu0 %v2779_v31 }
0x2690   : > { %v3604_v41 = vrot.slane %v3603_v32, 1 }
0x2692   : > { %v3605_v57 = vmax.f32 %v3603_v32, %v3604_v41 }
0x2694   : > { %v3606_v42 = vsub.f32 %v5125_v39, %v3605_v57  ;;  %v3607_v25 = vsub.f32 %v5436_v14, %v3605_v57  ;;  %v3608_v7 = vsub.f32 %v2826_v0, %v3605_v57 }
0x2696   : > { %3609 = vst.msk [vmem:[%s4728_s11] sm:$0xff] %vm3593_vm9, %v3606_v42  ;;  %3610 = vst.msk [vmem:[%s4728_s11 + $0x8] sm:$0xff] %vm3593_vm9, %v3607_v25 }
0x2697   : > { %3611 = vst.msk [vmem:[%s4728_s11 + $0x10] sm:$0xf] %vm3596_vm0, %v3608_v7  ;;  %s5915_s11 = sld [smem:[#allocation23_spill]] }
0x2718   : > { %v2766_v62 = vpop.xlane.xlu1 %2765  ;;  %v2751_v38 = vpop.xlane.xlu0 %2750 }
0x2719   : > { %vm2767_vm10 = vcmp.eq.f32.partialorder %v2764_v50, %v2766_v62  ;;  %vm2752_vm1 = vcmp.eq.f32.partialorder %v2749_v51, %v2751_v38  ;;  %v2772_v44 = vcvt.f32.s32 %v2766_v62  ;;  %v2757_v59 = vcvt.f32.s32 %v2751_v38 }
0x271a   : > { %v2768_v53 = vsel %vm2767_vm10, %v2763_v24, inf  ;;  %v2753_v39 = vsel %vm2752_vm1, %v2748_v55, inf  ;;  %v2848_v50 = vand.u32 3, %v5456_v10  ;;  %v4520_v51 = vmov 2   ;;  %v2963_v10 = vld [vmem:[%s5834_s5 + $0x18] sm:$0xff] }
0x271b   : > { %2769 = vmin.xlane.f32.xlu0 %v2768_v53  ;;  %2754 = vmin.xlane.f32.xlu1 %v2753_v39  ;;  %v2773_v56 = vshll.u32 %v2772_v44, 16  ;;  %v2758_v61 = vshll.u32 %v2757_v59, 16  ;;  %v4243_v32 = vpack.c.bf16 %v2963_v10, %v2962_v40  ;;  %v4522_v24 = vmov 3  }
0x271c   : > { %v2781_v14 = vpop.xlane.xlu0 %2780 }
0x271d   : > { %vm2782_vm5 = vcmp.eq.f32.partialorder %v2779_v31, %v2781_v14  ;;  %v2787_v19 = vcvt.f32.s32 %v2781_v14 }
0x271e   : > { %v2783_v8 = vsel %vm2782_vm5, %v2778_v48, inf }
0x271f   : > { %2784 = vmin.xlane.f32.xlu1 %v2783_v8  ;;  %v2788_v5 = vshll.u32 %v2787_v19, 16  ;;  %v4026_v8 = vld [vmem:[%s5910_s9] ss:$0 sm:$0xff] }
0x2730   : > { %2854 = vperm.xlu1 %4355, %v2845_v54  }
0x2731   : > { %2851 = vperm.xlu0 %4354, %v2844_v1  }
0x2735   : > { %3061 = vperm.xlu0 %4354, %v2847_v22  }
0x27a8   : > { %v2770_v63 = vpop.xlane.xlu0 %2769  ;;  %v2755_v28 = vpop.xlane.xlu1 %2754 }
0x27a9   : > { %v2771_v3 = vcvt.f32.s32 %v2770_v63  ;;  %v2756_v4 = vcvt.f32.s32 %v2755_v28 }
0x27ab   : > { %v2774_v17 = vadd.s32 %v2773_v56, %v2771_v3  ;;  %v2759_v36 = vadd.s32 %v2758_v61, %v2756_v4 }
0x27ac   : > { %v2785_v20 = vpop.xlane.xlu1 %2784 }
0x27ad   : > { %v2786_v45 = vcvt.f32.s32 %v2785_v20  ;;  %vm2791_vm9 = vcmp.lt.s32.totalorder %v2759_v36, %v2774_v17 }
0x27ae   : > { %v2792_v21 = vsel %vm2791_vm9, %v2759_v36, %v2774_v17 }
0x27af   : > { %v2789_v43 = vadd.s32 %v2788_v5, %v2786_v45 }
0x27b0   : > { %v2852_v15 = vpop.permute.xlu0 %2851  ;;  %v2855_v30 = vpop.permute.xlu1 %2854 }
0x27b1   : > { %v2790_v60 = vsel %vm1038_vm8, %v2789_v43, 2147483647  ;;  %vm2859_vm4 = vcmp.eq.s32.totalorder %v2852_v15, %v4842_v46  ;;  %vm2860_vm12 = vcmp.eq.s32.totalorder %v2855_v30, %v4842_v46 }
0x27b2   : > { %vm2793_vm3 = vcmp.lt.s32.totalorder %v2792_v21, %v2790_v60  ;;  %v4019_v0 = vsel %vm2859_vm4, 1.0, %v4518_v12  ;;  %v4020_v34 = vsel %vm2860_vm12, 1.0, %v4518_v12 }
0x27b3   : > { %v2794_v37 = vsel %vm2793_vm3, %v2792_v21, %v2790_v60  ;;  %4143 = vmatmul.mubr.msk.f32.vlgmr.msra.gmra.mrb[4].mxu0 %vm2868_vm2, %v4019_v0 }
0x27b4   : > { %v2795_v18 = vrot.slane %v2794_v37, 4  ;;  %4145 = vmatprep.mubr.msk.f32.mxu0 %vm5906_vm13, %v4518_v12  ;;  %v3062_v41 = vpop.permute.xlu0 %3061 }
0x27b6   : > { %vm2796_vm14 = vcmp.lt.s32.totalorder %v2794_v37, %v2795_v18 }
0x27b7   : > { %v2797_v58 = vsel %vm2796_vm14, %v2794_v37, %v2795_v18  ;;  %4146 = vmatmul.mubr.msk.f32.gmra.mrb[6].mxu0 %vm2868_vm2, %v4020_v34 }
0x27b8   : > { %v2798_v6 = vrot.slane %v2797_v58, 2  ;;  %4148 = vmatprep.mubr.msk.f32.mxu0 %vm5906_vm13, %v4518_v12 }
0x27ba   : > { %vm2799_vm10 = vcmp.lt.s32.totalorder %v2797_v58, %v2798_v6 }
0x27bb   : > { %v2800_v27 = vsel %vm2799_vm10, %v2797_v58, %v2798_v6  ;;  %vm3192_vm10 = vcmask 257024  }
0x27bc   : > { %v2801_v16 = vrot.slane %v2800_v27, 1 }
0x27be   : > { %vm2802_vm1 = vcmp.lt.s32.totalorder %v2800_v27, %v2801_v16 }
0x27bf   : > { %v2803_v29 = vsel %vm2802_vm1, %v2800_v27, %v2801_v16 }
0x27c0   : > { %v2843_v2 = vsel %vm2808_vm11, %v5576_v35, %v2803_v29  ;;  %v2961_v35 = vld [vmem:[%s5834_s5 + $0x8] sm:$0xff] }
0x27c1   : > { %v2849_v11 = vand.u32 3, %v2843_v2  ;;  %3617 = vst.msk [vmem:[%s4738_s6 + $0x10] sm:$0xf] %vm3596_vm0, %v2843_v2  ;;  %v2846_v49 = vshra.s32 %v2843_v2, 2  ;;  %v4240_v31 = vpack.c.bf16 %v2961_v35, %v2960_v23  ;;  %vm3069_vm0 = vcmp.eq.s32.totalorder %v3062_v41, %v4842_v46 }
0x27c2   : > { %v4030_v7 = vsel %vm3069_vm0, 1.0, %v4518_v12 }
0x27c3   : > { %3067 = vperm.xlu0 %4354, %v2849_v11   ;;  %2857 = vperm.xlu1 %4355, %v2846_v49  }
0x27c4   : > { %4241 = vmatpush3.bf16.msra.mxu1 %v4240_v31 }
0x27c5   : > { %4242 = vmatprep.subr.bf16.mxu1 %v4516_v9 }
0x27c7   : > { %3064 = vperm.xlu1 %4355, %v2848_v50   ;;  %4362 = vset.pattern.permute.xlu0 %v4520_v51 }
0x27c8   : > { %4244 = vmatpush3.bf16.msra.mxu1 %v4243_v32 }
0x27c9   : > { %4251 = vmatprep.subr.bf16.mxu1 %v4516_v9 }
0x27cb   : > { %4356 = vset.pattern.permute.xlu1 %v4521_v52 }
0x2842   : > { %v2858_v57 = vpop.permute.xlu1 %2857  ;;  %v3068_v33 = vpop.permute.xlu0 %3067 }
0x2843   : > { %vm2861_vm11 = vcmp.eq.s32.totalorder %v2858_v57, %v4842_v46  ;;  %vm3071_vm9 = vcmp.eq.s32.totalorder %v3068_v33, %v4842_v46 }
0x2844   : > { %v4021_v42 = vsel %vm2861_vm11, 1.0, %v4518_v12  ;;  %v4032_v38 = vsel %vm3071_vm9, 1.0, %v4518_v12 }
0x2845   : > { %4149 = vmatmul.mubr.msk.f32.gmra.mrb[8].mxu0 %vm2868_vm2, %v4021_v42  ;;  %vm5907_vm2 = vcmask 261120  }
0x2846   : > { %v3065_v25 = vpop.permute.xlu1 %3064  ;;  %4176 = vmatprep.mubr.msk.f32.mxu0 %vm5906_vm13, %v4518_v12  ;;  %vm5908_vm4 = vmmov %vm5907_vm2 }
0x2847   : > { %vm3070_vm5 = vcmp.eq.s32.totalorder %v3065_v25, %v4842_v46  ;;  %vm5909_vm3 = vmmov %vm5907_vm2 }
0x2848   : > { %v4031_v13 = vsel %vm3070_vm5, 1.0, %v4518_v12  ;;  %vm5911_vm12 = vmmov %vm5907_vm2 }
0x2849   : > { %v4363_v62 = vpack.i.bf16 %v4031_v13, %v4030_v7  ;;  %vm5912_vm14 = vmmov %vm5907_vm2 }
0x284a   : > { %vm5913_vm1 = vmmov %vm5907_vm2 }
0x284b   : > { %4364 = vperm.xlu0 %4362, %v4363_v62   ;;  %4358 = vperm.xlu1 %4356, %v4363_v62   ;;  %vm5914_vm11 = vmmov %vm5913_vm1 }
0x284f   : > { %3135 = vperm.xlu0 %4362, %v4032_v38   ;;  %4368 = vset.pattern.permute.xlu1 %v4522_v24 }
0x2850   : > { %4370 = vperm.xlu1 %4368, %v4363_v62  }
0x2853   : > { %4376 = vset.pattern.permute.xlu0 %v4519_v26 }
0x2854   : > { %4378 = vperm.xlu0 %4376, %v4363_v62   ;;  %4374 = vset.pattern.permute.xlu1 %v4521_v52 }
0x2855   : > { %3105 = vperm.xlu1 %4374, %v4032_v38  }
0x2858   : > { %4383 = vset.pattern.permute.xlu0 %v4522_v24 }
0x2859   : > { %4375 = vset.pattern.permute.xlu1 %v4522_v24 }
0x285a   : > { %3165 = vperm.xlu1 %4375, %v4032_v38  }
0x285e   : > { %4382 = vset.pattern.permute.xlu1 %v4519_v26 }
0x2886   : > { %v2946_v55 = vpop.f32.mrb[4].mxu0 }
0x2887   : > { %v4144_v46 = vpop.f32.mrb[5].mxu0  ;;  %4160 = vmatmul.mubr.msk.f32.vlgmr.msra.gmra.mrb[8].mxu1 %vm5907_vm2, %v2946_v55 }
0x2888   : > { %4162 = vmatprep.mubr.msk.f32.mxu1 %vm5906_vm13, %v4518_v12 }
0x288a   : > { %v2951_v47 = vpop.f32.mrb[6].mxu0 }
0x288b   : > { %v4147_v53 = vpop.f32.mrb[7].mxu0  ;;  %4163 = vmatmul.mubr.msk.f32.gmra.mrb[10].mxu1 %vm5908_vm4, %v2951_v47  ;;  %vm5918_vm4 = vmmov %vm5913_vm1 }
0x288c   : > { %4165 = vmatprep.mubr.msk.f32.mxu1 %vm5906_vm13, %v4518_v12 }
0x28ca   : > { %v4359_v26 = vpop.permute.xlu1 %4358  ;;  %v4365_v48 = vpop.permute.xlu0 %4364 }
0x28cb   : > { %v4366_v1 = vunpack.i.l.bf16 %v4365_v48  ;;  %v4360_v22 = vunpack.i.l.bf16 %v4359_v26  ;;  %v4361_v36 = vunpack.i.h.bf16 %v4359_v26  ;;  %v4367_v5 = vunpack.i.h.bf16 %v4365_v48 }
0x28ce   : > { %v3136_v16 = vpop.permute.xlu0 %3135 }
0x28cf   : > { %v4371_v56 = vpop.permute.xlu1 %4370 }
0x28d0   : > { %v4372_v19 = vunpack.i.l.bf16 %v4371_v56  ;;  %v4373_v43 = vunpack.i.h.bf16 %v4371_v56  ;;  %v3269_v56 = vld [vmem:[%s5915_s11 + $0x8] sm:$0xff] }
0x28d3   : > { %v4379_v2 = vpop.permute.xlu0 %4378 }
0x28d4   : > { %v3106_v30 = vpop.permute.xlu1 %3105  ;;  %v4380_v49 = vunpack.i.l.bf16 %v4379_v2  ;;  %v4381_v35 = vunpack.i.h.bf16 %v4379_v2 }
0x28d9   : > { %v3166_v21 = vpop.permute.xlu1 %3165 }
0x2918   : > { %v2956_v39 = vpop.f32.mrb[8].mxu0 }
0x2919   : > { %v4150_v14 = vpop.f32.mrb[9].mxu0  ;;  %4166 = vmatmul.mubr.msk.f32.gmra.mrb[12].mxu1 %vm5909_vm3, %v2956_v39  ;;  %vm5919_vm3 = vmmov %vm5913_vm1 }
0x291a   : > { %4193 = vmatprep.mubr.msk.f32.mxu1 %vm5906_vm13, %v4518_v12 }
0x295a   : > { %v3046_v54 = vpop.f32.mrb[8].mxu1 }
0x295b   : > { %v3047_v44 = vadd.f32 %v4026_v8, %v3046_v54  ;;  %v4161_v59 = vpop.f32.mrb[9].mxu1 }
0x295c   : > { %v3268_v59 = vld [vmem:[%s5915_s11] sm:$0xff] }
0x295d   : > { %v3138_v63 = vmul.f32 %v4366_v1, %v3047_v44  ;;  %v3108_v28 = vmul.f32 %v4360_v22, %v3047_v44  ;;  %v3168_v17 = vmul.f32 %v4372_v19, %v3047_v44  ;;  %v3093_v50 = vmul.f32 %v4380_v49, %v3047_v44  ;;  %v4033_v49 = vld [vmem:[%s5916_s24] ss:$0 sm:$0xff] }
0x295e   : > { %v3051_v61 = vpop.f32.mrb[10].mxu1 }
0x295f   : > { %3144 = vrot.lane.b32.xlu0 %v3138_v63, %s4523_s0  ;;  %3114 = vrot.lane.b32.xlu1 %v3108_v28, %s4524_s22  ;;  %v4164_v3 = vpop.f32.mrb[11].mxu1  ;;  %v3052_v4 = vadd.f32 %v4026_v8, %v3051_v61  ;;  %v3270_v63 = vld [vmem:[%s5915_s11 + $0x10] sm:$0xff]  ;;  %v4246_v28 = vpack.c.bf16 %v3269_v56, %v3268_v59  ;;  %v3271_v61 = vld [vmem:[%s5915_s11 + $0x18] sm:$0xff] }
0x2960   : > { %v4249_v19 = vpack.c.bf16 %v3271_v61, %v3270_v63 }
0x2961   : > { %v3109_v20 = vmul.f32 %v4361_v36, %v3052_v4  ;;  %v3139_v45 = vmul.f32 %v4367_v5, %v3052_v4  ;;  %v3169_v15 = vmul.f32 %v4373_v43, %v3052_v4  ;;  %v3094_v40 = vmul.f32 %v4381_v35, %v3052_v4  ;;  %4247 = vmatpush3.bf16.msra.mxu0 %v4246_v28  ;;  %v3368_v5 = vld [vmem:[%s4707_s29] sm:$0xff] }
0x2962   : > { %4248 = vmatprep.subr.bf16.mxu0 %v4516_v9 }
0x2963   : > { %3174 = vrot.lane.b32.xlu0 %v3168_v17, %s4525_s23  ;;  %3090 = vperm.xlu1 %4382, %v4032_v38  }
0x2965   : > { %4250 = vmatpush3.bf16.msra.mxu0 %v4249_v19 }
0x2966   : > { %4202 = vmatprep.subr.mxu0 %v4518_v12 }
0x2967   : > { %3116 = vrot.lane.b32.xlu1 %v3109_v20, %s4524_s22 }
0x296b   : > { %3146 = vrot.lane.b32.xlu1 %v3139_v45, %s4523_s0  ;;  %v3369_v45 = vld [vmem:[%s4707_s29 + $0x8] sm:$0xff] }
0x296c   : > { %v4252_v43 = vpack.c.bf16 %v3369_v45, %v3368_v5 }
0x296e   : > { %4253 = vmatpush3.bf16.msra.mxu1 %v4252_v43 }
0x296f   : > { %3176 = vrot.lane.b32.xlu1 %v3169_v15, %s4525_s23  ;;  %4254 = vmatprep.subr.bf16.mxu1 %v4516_v9 }
0x29d1   : > { %v3115_v60 = vpop.permute.xlu1 %3114  ;;  %v3145_v51 = vpop.permute.xlu0 %3144 }
0x29d2   : > { %v3123_v52 = vadd.f32 %v3115_v60, %v3093_v50 }
0x29d4   : > { %v3153_v31 = vadd.f32 %v3145_v51, %v3123_v52 }
0x29d5   : > { %v3175_v10 = vpop.permute.xlu0 %3174 }
0x29d6   : > { %v3183_v42 = vadd.f32 %v3175_v10, %v3153_v31 }
0x29d8   : > { %v3186_v7 = vsel %vm5911_vm12, %v3183_v42, 0.0  ;;  %vm5920_vm12 = vmmov %vm5913_vm1 }
0x29e2   : > { %v3091_v34 = vpop.permute.xlu1 %3090 }
0x29e6   : > { %v3117_v11 = vpop.permute.xlu1 %3116 }
0x29e7   : > { %v3124_v32 = vadd.f32 %v3117_v11, %v3094_v40 }
0x29ea   : > { %v3147_v23 = vpop.permute.xlu1 %3146 }
0x29eb   : > { %v3154_v57 = vadd.f32 %v3147_v23, %v3124_v32 }
0x29ec   : > { %v3056_v0 = vpop.f32.mrb[12].mxu1 }
0x29ed   : > { %v3057_v37 = vadd.f32 %v4026_v8, %v3056_v0  ;;  %v4167_v18 = vpop.f32.mrb[13].mxu1 }
0x29ee   : > { %v3177_v41 = vpop.permute.xlu1 %3176 }
0x29ef   : > { %v3170_v58 = vmul.f32 %v3166_v21, %v3057_v37  ;;  %v3110_v6 = vmul.f32 %v3106_v30, %v3057_v37  ;;  %v3095_v27 = vmul.f32 %v3091_v34, %v3057_v37  ;;  %v3140_v29 = vmul.f32 %v3136_v16, %v3057_v37 }
0x29f0   : > { %v3184_v25 = vadd.f32 %v3177_v41, %v3154_v57 }
0x29f1   : > { %3178 = vrot.lane.b32.xlu1 %v3170_v58, %s4525_s23  ;;  %3118 = vrot.lane.b32.xlu0 %v3110_v6, %s4524_s22  ;;  %s5917_s22 = sld [smem:[#allocation22_spill]] }
0x29f2   : > { %v3189_v33 = vsel %vm5912_vm14, %v3184_v25, 0.0  ;;  %vm5921_vm14 = vmmov %vm5913_vm1 }
0x29f5   : > { %3148 = vrot.lane.b32.xlu0 %v3140_v29, %s4523_s0 }
0x29f7   : > { %v4034_v23 = vld [vmem:[%s5917_s22] ss:$0 sm:$0xff] }
0x2a14   : > { %3187 = vadd.xlane.f32.xlu0 %v3186_v7 }
0x2a15   : > { %3190 = vadd.xlane.f32.xlu1 %v3189_v33 }
0x2a63   : > { %v3119_v13 = vpop.permute.xlu0 %3118  ;;  %v3179_v55 = vpop.permute.xlu1 %3178 }
0x2a64   : > { %v3125_v62 = vadd.f32 %v3119_v13, %v3095_v27 }
0x2a67   : > { %v3149_v38 = vpop.permute.xlu0 %3148 }
0x2a68   : > { %v3155_v24 = vadd.f32 %v3149_v38, %v3125_v62  ;;  %v3370_v38 = vld [vmem:[%s4707_s29 + $0x10] sm:$0xff] }
0x2a6a   : > { %v3185_v46 = vadd.f32 %v3179_v55, %v3155_v24  ;;  %v3371_v24 = vld [vmem:[%s4707_s29 + $0x18] sm:$0xff] }
0x2a6c   : > { %v3193_v47 = vsel %vm3192_vm10, %v3185_v46, 0.0 }
0x2a6d   : > { %3194 = vadd.xlane.f32.xlu0 %v3193_v47 }
0x2aa1   : > { %v3188_v53 = vpop.xlane.xlu0 %3187 }
0x2aa2   : > { %v3197_v39 = vmul.f32 0.03125, %v3188_v53  ;;  %v3191_v14 = vpop.xlane.xlu1 %3190 }
0x2aa3   : > { %v3198_v26 = vmul.f32 0.03125, %v3191_v14  ;;  %v4035_v14 = vld [vmem:[%s5923_s20] ss:$0 sm:$0xff] }
0x2aa4   : > { %v3200_v48 = vsub.f32 %v3183_v42, %v3197_v39 }
0x2aa5   : > { %v3201_v8 = vsub.f32 %v3184_v25, %v3198_v26 }
0x2aa6   : > { %v3203_v54 = vmul.f32 %v3200_v48, %v3200_v48  ;;  %v3252_v50 = vmul.f32 %v4033_v49, %v3200_v48 }
0x2aa7   : > { %v3204_v1 = vmul.f32 %v3201_v8, %v3201_v8  ;;  %v3253_v52 = vmul.f32 %v4033_v49, %v3201_v8 }
0x2aa8   : > { %v3206_v22 = vsel %vm5913_vm1, %v3203_v54, 0.0 }
0x2aa9   : > { %3207 = vadd.xlane.f32.xlu0 %v3206_v22  ;;  %v3209_v44 = vsel %vm5914_vm11, %v3204_v1, 0.0 }
0x2aaa   : > { %3210 = vadd.xlane.f32.xlu1 %v3209_v44 }
0x2afa   : > { %v3195_v3 = vpop.xlane.xlu0 %3194 }
0x2afb   : > { %v3199_v4 = vmul.f32 0.03125, %v3195_v3 }
0x2afd   : > { %v5687_v17 = vsub.f32 %v3185_v46, %v3199_v4  ;;  %v4255_v46 = vpack.c.bf16 %v3371_v24, %v3370_v38  ;;  %v4526_v38 = vmov (!%p4046_p1), 0.0|0.0  }
0x2aff   : > { %v3205_v36 = vmul.f32 %v5687_v17, %v5687_v17  ;;  %v3254_v55 = vmul.f32 %v4033_v49, %v5687_v17  ;;  %4256 = vmatpush3.bf16.msra.mxu1 %v4255_v46  ;;  %v4528_v46 = vmov (!%p4046_p1), 0.0  }
0x2b01   : > { %v3212_v20 = vsel %vm3192_vm10, %v3205_v36, 0.0 }
0x2b02   : > { %3213 = vadd.xlane.f32.xlu0 %v3212_v20 }
0x2b36   : > { %v3208_v15 = vpop.xlane.xlu0 %3207 }
0x2b37   : > { %v3215_v30 = vmul.f32 0.032258064, %v3208_v15  ;;  %v3211_v21 = vpop.xlane.xlu1 %3210 }
0x2b38   : > { %v3216_v60 = vmul.f32 0.032258064, %v3211_v21 }
0x2b39   : > { %4392 = vrsqrt.f32 %v3215_v30  ;;  %vm3220_vm0 = vcmp.eq.f32.partialorder %v3215_v30, inf  ;;  %v3223_v34 = vand.u32 2147483648, %v3215_v30  ;;  %vm3222_vm5 = vcmp.eq.f32.partialorder %v3215_v30, 0.0 }
0x2b3a   : > { %4394 = vrsqrt.f32 %v3216_v60  ;;  %vm3227_vm9 = vcmp.eq.f32.partialorder %v3216_v60, inf  ;;  %v3230_v27 = vand.u32 2147483648, %v3216_v60  ;;  %vm3229_vm2 = vcmp.eq.f32.partialorder %v3216_v60, 0.0 }
0x2b43   : > { %v4393_v0 = vpop.eup %4392 }
0x2b44   : > { %v4395_v37 = vpop.eup %4394  ;;  %v3219_v18 = vmul.f32 %v4393_v0, %v3215_v30 }
0x2b45   : > { %v3226_v58 = vmul.f32 %v4395_v37, %v3216_v60 }
0x2b46   : > { %v3221_v6 = vsel %vm3220_vm0, %v3215_v30, %v3219_v18  ;;  %vm5922_vm0 = vmmov %vm5919_vm3 }
0x2b47   : > { %v3224_v16 = vsel %vm3222_vm5, %v3223_v34, %v3221_v6  ;;  %v3228_v29 = vsel %vm3227_vm9, %v3216_v60, %v3226_v58  ;;  %vm5924_vm5 = vmmov %vm5922_vm0 }
0x2b48   : > { %v3239_v2 = vadd.f32 1e-06, %v3224_v16  ;;  %v3231_v9 = vsel %vm3229_vm2, %v3230_v27, %v3228_v29  ;;  %vm5925_vm9 = vmmov %vm5922_vm0  ;;  %v3497_v27 = vld [vmem:[%s4718_s7] sm:$0xf] }
0x2b49   : > { %v3240_v11 = vadd.f32 1e-06, %v3231_v9  ;;  %vm5926_vm2 = vmmov %vm5922_vm0 }
0x2b4a   : > { %4396 = vrcp.f32 %v3239_v2 }
0x2b4b   : > { %4398 = vrcp.f32 %v3240_v11 }
0x2b54   : > { %v4397_v51 = vpop.eup %4396 }
0x2b55   : > { %v4399_v35 = vpop.eup %4398  ;;  %v3255_v40 = vmul.f32 %v4397_v51, %v3252_v50 }
0x2b56   : > { %v3256_v31 = vmul.f32 %v4399_v35, %v3253_v52 }
0x2b57   : > { %v5701_v10 = vadd.f32 %v4034_v23, %v3255_v40 }
0x2b58   : > { %v3266_v32 = vadd.f32 %v4034_v23, %v3256_v31 }
0x2b59   : > { %4177 = vmatmul.mubr.msk.f32.vlgmr.msra.gmra.mrb[10].mxu0 %vm5918_vm4, %v5701_v10  ;;  %3590 = vst.msk [vmem:[%s4723_s19] sm:$0xff] %vm5919_vm3, %v5701_v10 }
0x2b5a   : > { %4179 = vmatprep.mubr.msk.f32.mxu0 %vm5906_vm13, %v4518_v12  ;;  %3591 = vst.msk [vmem:[%s4723_s19 + $0x8] sm:$0xff] %vm5920_vm12, %v3266_v32  ;;  %4203 = vmatpush3.msk.msra.mxu0 %vm1038_vm8, %v3497_v27  ;;  %vm5928_vm8 = vmmov %vm5922_vm0 }
0x2b5b   : > { %4257 = vmatprep.subr.bf16.mxu0 (!%p4046_p1), %v4526_v38 }
0x2b5d   : > { %4180 = vmatmul.mubr.msk.f32.gmra.mrb[12].mxu0 %vm5921_vm14, %v3266_v32 }
0x2b5e   : > { %4182 = vmatprep.mubr.msk.f32.mxu0 %vm5906_vm13, %v4518_v12 }
0x2b8f   : > { %v3214_v41 = vpop.xlane.xlu0 %3213 }
0x2b90   : > { %v3217_v57 = vmul.f32 0.032258064, %v3214_v41 }
0x2b92   : > { %4400 = vrsqrt.f32 %v3217_v57  ;;  %vm3234_vm1 = vcmp.eq.f32.partialorder %v3217_v57, inf  ;;  %v3237_v7 = vand.u32 2147483648, %v3217_v57  ;;  %vm3236_vm11 = vcmp.eq.f32.partialorder %v3217_v57, 0.0 }
0x2b9c   : > { %v4401_v42 = vpop.eup %4400 }
0x2b9d   : > { %v3233_v25 = vmul.f32 %v4401_v42, %v3217_v57 }
0x2b9f   : > { %v3235_v33 = vsel %vm3234_vm1, %v3217_v57, %v3233_v25 }
0x2ba0   : > { %v3238_v13 = vsel %vm3236_vm11, %v3237_v7, %v3235_v33 }
0x2ba1   : > { %v3241_v62 = vadd.f32 1e-06, %v3238_v13 }
0x2ba3   : > { %4402 = vrcp.f32 %v3241_v62 }
0x2bad   : > { %v4403_v47 = vpop.eup %4402 }
0x2bae   : > { %v3257_v53 = vmul.f32 %v4403_v47, %v3254_v55 }
0x2bb0   : > { %v3267_v39 = vadd.f32 %v4034_v23, %v3257_v53  ;;  %v3626_v53 = vld [vmem:[%s5931_s14] sm:$0x1] (!%p4046_p1) }
0x2bb2   : > { %4183 = vmatmul.mubr.msk.f32.gmra.mrb[14].mxu0 %vm5922_vm0, %v3267_v39  ;;  %3592 = vst.msk [vmem:[%s4723_s19 + $0x10] sm:$0xf] %vm3192_vm10, %v3267_v39  ;;  %s5929_s19 = sld [smem:[#allocation27_spill]] (!%p4046_p1) }
0x2bb3   : > { %4204 = vmatprep.mubr.msk.f32.mxu0 %vm5906_vm13, %v4518_v12 }
0x2bb8   : > { %v3623_v13 = vld [vmem:[%s5929_s19 + $0x8] sm:$0xff] (!%p4046_p1)  ;;  %v3624_v62 = vld [vmem:[%s5929_s19 + $0x10] sm:$0xff] (!%p4046_p1)  ;;  %v3625_v55 = vld [vmem:[%s5929_s19 + $0x18] sm:$0xff] (!%p4046_p1) }
0x2bb9   : > { %v4261_v47 = vpack.c.bf16 (!%p4046_p1), %v3625_v55, %v3624_v62 }
0x2c2c   : > { %v3354_v26 = vpop.f32.mrb[10].mxu0 }
0x2c2d   : > { %v3355_v48 = vadd.f32 %v4035_v14, %v3354_v26  ;;  %v4178_v8 = vpop.f32.mrb[11].mxu0 }
0x2c2f   : > { %4194 = vmatmul.mubr.msk.f32.vlgmr.msra.gmra.mrb[14].mxu1 %vm5924_vm5, %v3355_v48 }
0x2c30   : > { %v3359_v54 = vpop.f32.mrb[12].mxu0  ;;  %4196 = vmatprep.mubr.msk.f32.mxu1 %vm5906_vm13, %v4518_v12 }
0x2c31   : > { %v3360_v1 = vadd.f32 %v4035_v14, %v3359_v54  ;;  %v4181_v22 = vpop.f32.mrb[13].mxu0 }
0x2c33   : > { %4197 = vmatmul.mubr.msk.f32.gmra.mrb[16].mxu1 %vm5925_vm9, %v3360_v1 }
0x2c34   : > { %4199 = vmatprep.mubr.msk.f32.mxu1 %vm5906_vm13, %v4518_v12 }
0x2c85   : > { %v3364_v44 = vpop.f32.mrb[14].mxu0 }
0x2c86   : > { %v3365_v59 = vadd.f32 %v4035_v14, %v3364_v44  ;;  %v4184_v56 = vpop.f32.mrb[15].mxu0 }
0x2c88   : > { %4200 = vmatmul.mubr.msk.f32.gmra.mrb[18].mxu1 %vm5926_vm2, %v3365_v59 }
0x2d02   : > { %v3447_v63 = vpop.f32.mrb[14].mxu1 }
0x2d03   : > { %v3461_v28 = vmul.f32 0.17677669, %v3447_v63  ;;  %v4195_v61 = vpop.f32.mrb[15].mxu1 }
0x2d05   : > { %v3464_v19 = vsel %vm961_vm6, %v3461_v28, -inf }
0x2d06   : > { %3465 = vmax.xlane.f32.xlu1 %v3464_v19  ;;  %v3452_v3 = vpop.f32.mrb[16].mxu1 }
0x2d07   : > { %v3462_v4 = vmul.f32 0.17677669, %v3452_v3  ;;  %v4198_v17 = vpop.f32.mrb[17].mxu1 }
0x2d09   : > { %v3467_v36 = vsel %vm961_vm6, %v3462_v4, -inf }
0x2d0a   : > { %3468 = vmax.xlane.f32.xlu0 %v3467_v36 }
0x2d5b   : > { %v3457_v20 = vpop.f32.mrb[18].mxu1 }
0x2d5c   : > { %v3463_v5 = vmul.f32 0.17677669, %v3457_v20  ;;  %v4201_v45 = vpop.f32.mrb[19].mxu1 }
0x2d5e   : > { %v3470_v43 = vsel %vm964_vm7, %v3463_v5, -inf }
0x2d5f   : > { %3471 = vmax.xlane.f32.xlu1 %v3470_v43 }
0x2d93   : > { %v3466_v15 = vpop.xlane.xlu1 %3465 }
0x2d94   : > { %v3473_v30 = vsub.f32 %v3461_v28, %v3466_v15 }
0x2d96   : > { %v3476_v21 = vmul.f32 1.442695, %v3473_v30 }
0x2d97   : > { %v3469_v60 = vpop.xlane.xlu0 %3468 }
0x2d98   : > { %4404 = vpow2.f32 %v3476_v21  ;;  %v3474_v0 = vsub.f32 %v3462_v4, %v3469_v60 }
0x2d9a   : > { %v3478_v37 = vmul.f32 1.442695, %v3474_v0 }
0x2d9c   : > { %4406 = vpow2.f32 %v3478_v37 }
0x2da2   : > { %v4405_v18 = vpop.eup %4404 }
0x2da3   : > { %v3482_v34 = vsel %vm961_vm6, %v4405_v18, 0.0 }
0x2da4   : > { %3483 = vadd.xlane.f32.xlu0 %v3482_v34 }
0x2da6   : > { %v4407_v58 = vpop.eup %4406 }
0x2da7   : > { %v3485_v6 = vsel %vm961_vm6, %v4407_v58, 0.0 }
0x2da8   : > { %3486 = vadd.xlane.f32.xlu1 %v3485_v6 }
0x2dec   : > { %v3472_v16 = vpop.xlane.xlu1 %3471 }
0x2ded   : > { %v3475_v29 = vsub.f32 %v3463_v5, %v3472_v16 }
0x2def   : > { %v3480_v2 = vmul.f32 1.442695, %v3475_v29 }
0x2df1   : > { %4408 = vpow2.f32 %v3480_v2 }
0x2dfb   : > { %v4409_v9 = vpop.eup %4408 }
0x2dfc   : > { %v3488_v11 = vsel %vm964_vm7, %v4409_v9, 0.0  ;;  %vm5927_vm7 = vmmov %vm5922_vm0 }
0x2dfd   : > { %3489 = vadd.xlane.f32.xlu0 %v3488_v11 }
0x2e31   : > { %v3484_v49 = vpop.xlane.xlu0 %3483 }
0x2e32   : > { %4410 = vrcp.f32 %v3484_v49 }
0x2e35   : > { %v3487_v50 = vpop.xlane.xlu1 %3486 }
0x2e36   : > { %4412 = vrcp.f32 %v3487_v50 }
0x2e3c   : > { %v4411_v51 = vpop.eup %4410 }
0x2e3d   : > { %v3494_v52 = vmul.f32 %v4411_v51, %v4405_v18 }
0x2e3f   : > { %4205 = vmatmul.mubr.msk.f32.vlgmr.msra.gmra.mrb[16].mxu0 %vm961_vm6, %v3494_v52 }
0x2e40   : > { %v4413_v23 = vpop.eup %4412  ;;  %4207 = vmatprep.mubr.msk.f32.mxu0 %vm5906_vm13, %v4518_v12 }
0x2e41   : > { %v3495_v35 = vmul.f32 %v4413_v23, %v4407_v58 }
0x2e43   : > { %4208 = vmatmul.mubr.msk.f32.gmra.mrb[18].mxu0 %vm961_vm6, %v3495_v35 }
0x2e44   : > { %4210 = vmatprep.mubr.msk.f32.mxu0 %vm5906_vm13, %v4518_v12  ;;  %v3622_v12 = vld [vmem:[%s5929_s19] sm:$0xff] (!%p4046_p1)  ;;  %vm5930_vm13 = vcmask (!%p4046_p1), 261120  }
0x2e45   : > { %v4258_v24 = vpack.c.bf16 (!%p4046_p1), %v3623_v13, %v3622_v12 }
0x2e47   : > { %4259 = vmatpush3.bf16.msra.mxu0 (!%p4046_p1), %v4258_v24 }
0x2e48   : > { %4260 = vmatprep.subr.bf16.mxu0 (!%p4046_p1), %v4526_v38 }
0x2e4b   : > { %4262 = vmatpush3.bf16.msra.mxu0 (!%p4046_p1), %v4261_v47 }
0x2e8a   : > { %v3490_v40 = vpop.xlane.xlu0 %3489 }
0x2e8b   : > { %4414 = vrcp.f32 %v3490_v40 }
0x2e95   : > { %v4415_v31 = vpop.eup %4414 }
0x2e96   : > { %v3496_v32 = vmul.f32 %v4415_v31, %v4409_v9 }
0x2e98   : > { %4211 = vmatmul.mubr.msk.f32.gmra.mrb[20].mxu0 %vm961_vm6, %v3496_v32  ;;  %vm4527_vm6 = vmmov (!%p4046_p1), 0  }
0x2e99   : > { %4221 = vmatprep.mubr.msk.f32.mxu0 (!%p4046_p1), %vm4527_vm6, %v4528_v46 }
0x2e9c   : > { %4222 = vmatmul.mubr.msk.f32.vlgmr.msra.gmra.mrb[0].mxu0 (!%p4046_p1), %vm5930_vm13, %v5701_v10 }
0x2f12   : > { %v3576_v41 = vpop.f32.mrb[16].mxu0 }
0x2f13   : > { %3612 = vst.msk [vmem:[%s4733_s8] sm:$0xff] %vm5927_vm7, %v3576_v41  ;;  %v4206_v57 = vpop.f32.mrb[17].mxu0 }
0x2f16   : > { %v3581_v42 = vpop.f32.mrb[18].mxu0 }
0x2f17   : > { %3613 = vst.msk [vmem:[%s4733_s8 + $0x8] sm:$0xff] %vm5928_vm8, %v3581_v42  ;;  %v4209_v25 = vpop.f32.mrb[19].mxu0 }
0x2f66   : > { %3621 = sbr.rel (%p4046_p1) target bundleno = 12463 (0x30af), region = 88 }
0x2f6b   : > { %v3586_v7 = vpop.f32.mrb[20].mxu0 }
0x2f6c   : > { %3614 = vst.msk [vmem:[%s4733_s8 + $0x10] sm:$0xf] %vm3192_vm10, %v3586_v7  ;;  %v4212_v33 = vpop.f32.mrb[21].mxu0 }
0x2f6f   : > { %v3693_v39 = vpop.f32.mrb[0].mxu0 }
0x2f70   : > { %v3694_v14 = vadd.f32 %v3693_v39, %v3626_v53  ;;  %v4223_v26 = vpop.f32.mrb[1].mxu0 }
0x2f72   : > { %v3697_v48 = vsel %vm2804_vm15, %v3694_v14, -inf }
0x2f73   : > { %3698 = vmax.xlane.f32.xlu0 %v3697_v48 }
0x3000   : > { %v3699_v8 = vpop.xlane.xlu0 %3698 }
0x3001   : > { %v3700_v54 = vsub.f32 %v3694_v14, %v3699_v8 }
0x3003   : > { %v3701_v1 = vmul.f32 1.442695, %v3700_v54 }
0x3005   : > { %4416 = vpow2.f32 %v3701_v1 }
0x300f   : > { %v4417_v22 = vpop.eup %4416 }
0x3010   : > { %v3703_v44 = vsel %vm2804_vm15, %v4417_v22, 0.0 }
0x3011   : > { %3704 = vadd.xlane.f32.xlu0 %v3703_v44 }
0x309e   : > { %v3705_v10 = vpop.xlane.xlu0 %3704 }
0x309f   : > { %4418 = vlog2.f32 %v3705_v10 }
0x30a9   : > { %v4419_v59 = vpop.eup %4418 }
0x30aa   : > { %v3707_v56 = vmul.f32 0.6931472, %v4419_v59 }
0x30ac   : > { %v3708_v63 = vsub.f32 %v3700_v54, %v3707_v56 }
0x30ae   : > { %3709 = vst [vmem:[%s4742_s12] sm:$0x1] %v3708_v63 }
0x30af PF: > { %s5932_s1 = sld [smem:[#allocation7_spill]]  ;;  %s3763_s7 = sshll.u32 %s4742_s12, 4  ;;  %s3764_s7 = int_to_ptr.vmem [resolvable:$true] %s3763_s7 }
0x30b0   : > { %s5934_s23 = sld [smem:[#allocation29_spill]]  ;;  %s5936_s29 = sand.u32 1, %s4490_s30  }
0x30b1   : > { %s3739_s27 = scalar_lea.sflag [#allocation3], %s5936_s29  ;;  %s4420_s2 = scalar_lea.vmem %s3764_s7, 16 }
0x30b2   : > { %p4421_p2 = scmp.ne.s32.totalorder %s3764_s7, %s4420_s2  ;;  %s4529_s10 = smov [#allocation2]  }
0x30b3   : > { %s4424_s3 = sshll.u32 %s4529_s10, 4  ;;  %s4425_s3 = int_to_ptr.vmem [resolvable:$false] %s4424_s3 }
0x30b4   : > { %p4422_p4 = pnand %p4421_p2, %p4679_p3  ;;  %s4426_s8 = scalar_lea.vmem %s4425_s3, 32 }
0x30b5   : > { %s4048_s9 = sshll.u32 %s5932_s1, 4  ;;  %p4427_p6 = scmp.lt.s32.totalorder %s3764_s7, %s4425_s3 }
0x30b6   : > { %s5935_s28 = smov %s5934_s23  ;;  %s5779_s20 = scalar_lea.hbm %s5934_s23, %s4048_s9 }
0x30b7   : > { %p4423_p5 = pneg %p4422_p4  ;;  %p4428_p7 = scmp.lt.s32.totalorder %s4426_s8, %s4420_s2 }
0x30b9   : > { %p4429_p8 = por %p4428_p7, %p4427_p6 }
0x30bb   : > { %p4430_p10 = pnand %p4429_p8, %p4423_p5 }
0x30bd   : > { %4433 = shalt.err (!%p4430_p10)
}
0x30be   : > { %s4434_s12 = scalar_lea.hbm %s5779_s20, 16  ;;  %s4438_s13 = scalar_lea.hbm %s5935_s28, 32 }
0x30bf   : > { %p4435_p11 = scmp.ne.s32.totalorder %s5779_s20, %s4434_s12  ;;  %p4439_p0 = scmp.lt.u32.totalorder %s5779_s20, %s5935_s28 }
0x30c0   : > { %p4440_p1 = scmp.lt.u32.totalorder %s4438_s13, %s4434_s12  ;;  %p4442_p4 = scmp.lt.u32.totalorder %s4434_s12, %s5779_s20 }
0x30c1   : > { %p4436_p12 = pnand %p4435_p11, %p4679_p3 }
0x30c2   : > { %p4441_p2 = por %p4440_p1, %p4439_p0 }
0x30c3   : > { %p4437_p13 = pneg %p4436_p12 }
0x30c4   : > { %p4443_p5 = por %p4442_p4, %p4441_p2 }
0x30c6   : > { %p4444_p6 = pnand %p4443_p5, %p4437_p13 }
0x30c8   : > { %4447 = shalt.err (!%p4444_p6)
}
0x30c9   : > { %4270 = dma.vmem_to_hbm [thread:$0]  (%p4679_p3), %s3764_s7, 16, %s5779_s20, %s3739_s27  }
0x30ca PF: > { %s5937_s9 = sld [smem:[#allocation10_spill]]  ;;  %s5938_s0 = sld [smem:[#allocation5_spill]] }
0x30d0   : > { %p4276_p7 = scmp.ge.s32.totalorder %s5937_s9, 2  ;;  %s3815_s23 = sand.u32 1, %s5938_s0  }
0x30d1   : > { %s3816_s29 = scalar_lea.sflag [#allocation3], %s3815_s23 }
0x30d2   : > { %p4273_p8 = pnand %p4276_p7, %p4689_p9 }
0x30d4   : > { %4481 = dma.done.wait (!%p4273_p8), %s3816_s29, 16  }
0x30d5   : > { %4483 = vsyncadd (!%p4273_p8), %s3816_s29, 4294967280  ;;  %s33_s23 = sadd.s32 1, %s5937_s9   ;;  %s5940_s2 = sld [smem:[#allocation6_spill]] }
0x30d6   : > { %p30_p10 = scmp.ge.s32.totalorder %s33_s23, 10   ;;  %s5941_s20 = sld [smem:[#allocation15_spill]] }
0x30d7   : > { %s5942_s21 = sld [smem:[#allocation8_spill]]  ;;  %s5943_s1 = sld [smem:[#allocation9_spill]] }
0x30d8   : > { %s5944_s22 = sld [smem:[#allocation11_spill]]  ;;  %s5945_s24 = sld [smem:[#allocation13_spill]] }
0x30d9   : > { %s5946_s0 = smov %s4490_s30  ;;  %32 = sbr.rel (!%p30_p10) target bundleno = 20 (0x14), region = 180 }
0x30db   : > { %s5947_s30 = smov %s5940_s2 }
0x30de   : > { %s5948_s2 = smov %s5945_s24 }
0x30e0   :  { %3820 = vsyncpa [#allocation3], 1 }
0x30e1   :  { %3822 = vsyncpa [#allocation3 + $0x1], 1 }

</bundles_post_ra>
